<compile_context>
chip_gen: v7x
topology: tpu7x:2x2x1
jax: 0.10.0
libtpu: 0.0.40
codegen_flags: <defaults>
</compile_context>

<pallas_src>
import jax
import jax.numpy as jnp
import numpy as np
from jax import lax
from jax.experimental import pallas as pl
from jax.experimental.pallas import tpu as pltpu

INPUT_SIZE = 1
HIDDEN_SIZE = 50
HIDDEN_PAD = 128            # hidden padded to one 128-lane vreg per gate
NUM_LAYERS = 2              # hard-wired as two explicit cells in the kernel


def lstm_kernel(x_ref,       # (T, B, 1)      f32   time-major input
                wih0_ref,    # (1, 4*HP)      f32   layer-0 input weights (row)
                whh0_ref,    # (HP, 4*HP)     bf16  layer-0 recurrent weights
                b0_ref,      # (1, 4*HP)      f32   b_ih_l0 + b_hh_l0
                w1_ref,      # (2*HP, 4*HP)   bf16  fused [W_ih_l1; W_hh_l1]
                b1_ref,      # (1, 4*HP)      f32   b_ih_l1 + b_hh_l1
                wfc_ref,     # (HP, 1)        f32   fc weight
                bfc_ref,     # (1, 1)         f32   fc bias
                out_ref):    # (B, 1)         f32
    T, B, _ = x_ref.shape
    HP = HIDDEN_PAD

    # Weights are tiny; load once before the serialized time loop.
    wih0 = wih0_ref[...]
    whh0 = whh0_ref[...]
    b0 = b0_ref[...]
    w1 = w1_ref[...]
    b1 = b1_ref[...]

    def gates_to_hc(gates, c):
        # PyTorch gate order i, f, g, o; every slice is exactly one 128-lane block.
        i_g = jax.nn.sigmoid(gates[:, 0:HP])
        f_g = jax.nn.sigmoid(gates[:, HP:2 * HP])
        g_g = jnp.tanh(gates[:, 2 * HP:3 * HP])
        o_g = jax.nn.sigmoid(gates[:, 3 * HP:4 * HP])
        c_new = f_g * c + i_g * g_g
        h_new = o_g * jnp.tanh(c_new)
        return h_new, c_new

    def step(t, carry):
        h0, c0, h1, c1 = carry
        # Layer 0: input projection = VPU broadcast (input_size == 1);
        #          recurrent projection = one bf16 MXU dot.
        x_t = x_ref[t]                                          # (B, 1)
        g0 = (x_t * wih0 + b0
              + jnp.dot(h0.astype(jnp.bfloat16), whh0,
                        preferred_element_type=jnp.float32))
        h0n, c0n = gates_to_hc(g0, c0)
        # Layer 1: single fused dot over the concatenated [h0_new, h1] input.
        z = jnp.concatenate([h0n, h1], axis=1).astype(jnp.bfloat16)  # (B, 2*HP)
        g1 = jnp.dot(z, w1, preferred_element_type=jnp.float32) + b1
        h1n, c1n = gates_to_hc(g1, c1)
        return h0n, c0n, h1n, c1n

    zeros = jnp.zeros((B, HP), jnp.float32)          # PyTorch default h0 = c0 = 0
    _, _, h1, _ = lax.fori_loop(0, T, step, (zeros, zeros, zeros, zeros),
                                unroll=True)

    # Final FC on the last timestep's top-layer hidden state (once, in f32).
    out_ref[...] = (jnp.dot(h1, wfc_ref[...], preferred_element_type=jnp.float32)
                    + bfc_ref[...])


def lstm_forward(x, packed):
    """x: (B, T, I) float32 (batch_first). Returns (B, 1) float32."""
    wih0_p, whh0_p, b0_p, w1_p, b1_p, wfc_p, bfc_p = packed
    B, T, I = x.shape
    assert I == INPUT_SIZE == 1, "kernel hard-codes input_size == 1"
    x_tm = jnp.transpose(x, (1, 0, 2))               # (T, B, I) time-major

    vmem = pl.BlockSpec(memory_space=pltpu.MemorySpace.VMEM)
    return pl.pallas_call(
        lstm_kernel,
        out_shape=jax.ShapeDtypeStruct((B, 1), jnp.float32),
        in_specs=[vmem] * 8,                          # everything resident once
        out_specs=vmem,
    )(x_tm, wih0_p, whh0_p, b0_p, w1_p, b1_p, wfc_p, bfc_p)


def init_params(key):
    """Deterministic init matching nn.LSTM / nn.Linear shapes (uniform(-k, k))."""
    H, I = HIDDEN_SIZE, INPUT_SIZE
    k = 1.0 / np.sqrt(H)
    keys = jax.random.split(key, 10)
    u = lambda kk, shape: jax.random.uniform(kk, shape, jnp.float32, -k, k)
    # Stored pre-transposed for row-major (B, in) @ (in, 4H) matmuls.
    wih0 = u(keys[0], (I, 4 * H))                            # W_ih_l0^T
    whh0 = u(keys[1], (H, 4 * H))                            # W_hh_l0^T
    b0 = u(keys[2], (1, 4 * H)) + u(keys[3], (1, 4 * H))     # b_ih_l0 + b_hh_l0
    wih1 = u(keys[4], (H, 4 * H))                            # W_ih_l1^T
    whh1 = u(keys[5], (H, 4 * H))                            # W_hh_l1^T
    b1 = u(keys[6], (1, 4 * H)) + u(keys[7], (1, 4 * H))     # b_ih_l1 + b_hh_l1
    wfc = u(keys[8], (H, 1))                                 # fc.weight^T
    bfc = u(keys[9], (1, 1))                                 # fc.bias
    return (wih0, whh0, b0, wih1, whh1, b1, wfc, bfc)


def pack_params(params):
    """Pad each gate block to 128 lanes, fuse layer-1 weights, cast MXU operands
    to bf16.  Zero padding keeps the padded h/c lanes exactly zero."""
    wih0, whh0, b0, wih1, whh1, b1, wfc, bfc = params
    H, HP = HIDDEN_SIZE, HIDDEN_PAD

    def pad_gates(w, rows_pad):
        # (rows, 4H) -> (rows_pad, 4*HP): zero-pad every gate block to 128 lanes
        # and zero-pad the extra input rows.
        rows = w.shape[0]
        w4 = w.reshape(rows, 4, H)
        w4 = jnp.pad(w4, ((0, rows_pad - rows), (0, 0), (0, HP - H)))
        return w4.reshape(rows_pad, 4 * HP)

    wih0_p = pad_gates(wih0, wih0.shape[0])                   # (1, 512)   f32 (VPU)
    whh0_p = pad_gates(whh0, HP).astype(jnp.bfloat16)         # (128, 512) bf16
    b0_p = pad_gates(b0, 1)                                   # (1, 512)   f32
    w1_p = jnp.concatenate([pad_gates(wih1, HP), pad_gates(whh1, HP)],
                           axis=0).astype(jnp.bfloat16)       # (256, 512) bf16
    b1_p = pad_gates(b1, 1)                                   # (1, 512)   f32
    wfc_p = jnp.pad(wfc, ((0, HP - H), (0, 0)))               # (128, 1)   f32
    return wih0_p, whh0_p, b0_p, w1_p, b1_p, wfc_p, bfc


def lstm_ref(x, params):
    """Pure-JAX f32 reference of the same forward pass (PyTorch semantics)."""
    wih0, whh0, b0, wih1, whh1, b1, wfc, bfc = params
    B, T, I = x.shape
    H = HIDDEN_SIZE

    def cell(inp, h, c, wih, whh, b):
        gates = inp @ wih + h @ whh + b
        i_g = jax.nn.sigmoid(gates[:, :H])
        f_g = jax.nn.sigmoid(gates[:, H:2 * H])
        g_g = jnp.tanh(gates[:, 2 * H:3 * H])
        o_g = jax.nn.sigmoid(gates[:, 3 * H:])
        c = f_g * c + i_g * g_g
        h = o_g * jnp.tanh(c)
        return h, c

    h0 = c0 = h1 = c1 = jnp.zeros((B, H), jnp.float32)
    for t in range(T):
        h0, c0 = cell(x[:, t, :], h0, c0, wih0, whh0, b0)
        h1, c1 = cell(h0, h1, c1, wih1, whh1, b1)
    return h1 @ wfc + bfc


if __name__ == "__main__":
    key = jax.random.PRNGKey(0)
    k_param, k_x = jax.random.split(key)

    B, T, I = 2, 8, INPUT_SIZE
    params = init_params(k_param)
    x = jax.random.normal(k_x, (B, T, I), jnp.float32)

    out = lstm_forward(x, pack_params(params))
    out = jax.block_until_ready(out)

    ref = lstm_ref(x, params)
    # Recurrent matmul operands run in bf16 on the MXU (per perf review), so the
    # comparison against the pure-f32 reference uses a correspondingly looser
    # tolerance (observed error is ~1e-3; h/c state and accumulation stay f32).
    np.testing.assert_allclose(np.asarray(out), np.asarray(ref), rtol=1e-2, atol=1e-2)

    print("KERNEL_OK")
</pallas_src>

<mosaic_0001>
module attributes {stable_mosaic.version = 11 : i64} {
  func.func @lstm_kernel(%arg0: memref<8x2x1xf32, #tpu.memory_space<vmem>>, %arg1: memref<1x512xf32, #tpu.memory_space<vmem>>, %arg2: memref<128x512xbf16, #tpu.memory_space<vmem>>, %arg3: memref<1x512xf32, #tpu.memory_space<vmem>>, %arg4: memref<256x512xbf16, #tpu.memory_space<vmem>>, %arg5: memref<1x512xf32, #tpu.memory_space<vmem>>, %arg6: memref<128x1xf32, #tpu.memory_space<vmem>>, %arg7: memref<1x1xf32, #tpu.memory_space<vmem>>, %arg8: memref<2x1xf32, #tpu.memory_space<vmem>>) attributes {dimension_semantics = [], scalar_prefetch = 0 : i64, scratch_operands = 0 : i64, tpu.core_type = #tpu.core_type<tc>} {
    %c0 = arith.constant 0 : index
    %c0_0 = arith.constant 0 : index
    %0 = vector.load %arg1[%c0, %c0_0] : memref<1x512xf32, #tpu.memory_space<vmem>>, vector<1x512xf32>
    %c0_1 = arith.constant 0 : index
    %c0_2 = arith.constant 0 : index
    %1 = vector.load %arg2[%c0_1, %c0_2] : memref<128x512xbf16, #tpu.memory_space<vmem>>, vector<128x512xbf16>
    %c0_3 = arith.constant 0 : index
    %c0_4 = arith.constant 0 : index
    %2 = vector.load %arg3[%c0_3, %c0_4] : memref<1x512xf32, #tpu.memory_space<vmem>>, vector<1x512xf32>
    %c0_5 = arith.constant 0 : index
    %c0_6 = arith.constant 0 : index
    %3 = vector.load %arg4[%c0_5, %c0_6] : memref<256x512xbf16, #tpu.memory_space<vmem>>, vector<256x512xbf16>
    %c0_7 = arith.constant 0 : index
    %c0_8 = arith.constant 0 : index
    %4 = vector.load %arg5[%c0_7, %c0_8] : memref<1x512xf32, #tpu.memory_space<vmem>>, vector<1x512xf32>
    %cst = arith.constant 0.000000e+00 : f32
    %5 = vector.broadcast %cst : f32 to vector<2x128xf32>
    %c0_i32 = arith.constant 0 : i32
    %6 = arith.index_cast %c0_i32 : i32 to index
    %c0_9 = arith.constant 0 : index
    %c0_10 = arith.constant 0 : index
    %7 = vector.load %arg0[%6, %c0_9, %c0_10] : memref<8x2x1xf32, #tpu.memory_space<vmem>>, vector<1x2x1xf32>
    %8 = vector.shape_cast %7 : vector<1x2x1xf32> to vector<2x1xf32>
    %9 = vector.broadcast %8 : vector<2x1xf32> to vector<2x512xf32>
    %10 = vector.broadcast %0 : vector<1x512xf32> to vector<2x512xf32>
    %11 = arith.mulf %9, %10 : vector<2x512xf32>
    %12 = vector.broadcast %2 : vector<1x512xf32> to vector<2x512xf32>
    %13 = arith.addf %11, %12 : vector<2x512xf32>
    %14 = arith.truncf %5 : vector<2x128xf32> to vector<2x128xbf16>
    %cst_11 = arith.constant dense<0.000000e+00> : vector<2x512xf32>
    %15 = tpu.matmul %14, %1, %cst_11 {dimension_numbers = #tpu.dot_dimension_numbers<[1], [0], [0], [1], [0, 0, 1, 1], [], []>} : vector<2x128xbf16>, vector<128x512xbf16>, vector<2x512xf32> -> vector<2x512xf32>
    %16 = arith.addf %13, %15 : vector<2x512xf32>
    %17 = vector.extract_strided_slice %16 {offsets = [0, 0], sizes = [2, 128], strides = [1, 1]} : vector<2x512xf32> to vector<2x128xf32>
    %18 = arith.negf %17 : vector<2x128xf32>
    %19 = math.exp %18 : vector<2x128xf32>
    %cst_12 = arith.constant 1.000000e+00 : f32
    %20 = vector.broadcast %cst_12 : f32 to vector<2x128xf32>
    %21 = arith.addf %20, %19 : vector<2x128xf32>
    %22 = arith.divf %20, %21 : vector<2x128xf32>
    %23 = vector.extract_strided_slice %16 {offsets = [0, 128], sizes = [2, 128], strides = [1, 1]} : vector<2x512xf32> to vector<2x128xf32>
    %24 = arith.negf %23 : vector<2x128xf32>
    %25 = math.exp %24 : vector<2x128xf32>
    %cst_13 = arith.constant 1.000000e+00 : f32
    %26 = vector.broadcast %cst_13 : f32 to vector<2x128xf32>
    %27 = arith.addf %26, %25 : vector<2x128xf32>
    %28 = arith.divf %26, %27 : vector<2x128xf32>
    %29 = vector.extract_strided_slice %16 {offsets = [0, 256], sizes = [2, 128], strides = [1, 1]} : vector<2x512xf32> to vector<2x128xf32>
    %30 = math.tanh %29 : vector<2x128xf32>
    %31 = vector.extract_strided_slice %16 {offsets = [0, 384], sizes = [2, 128], strides = [1, 1]} : vector<2x512xf32> to vector<2x128xf32>
    %32 = arith.negf %31 : vector<2x128xf32>
    %33 = math.exp %32 : vector<2x128xf32>
    %cst_14 = arith.constant 1.000000e+00 : f32
    %34 = vector.broadcast %cst_14 : f32 to vector<2x128xf32>
    %35 = arith.addf %34, %33 : vector<2x128xf32>
    %36 = arith.divf %34, %35 : vector<2x128xf32>
    %37 = arith.mulf %28, %5 : vector<2x128xf32>
    %38 = arith.mulf %22, %30 : vector<2x128xf32>
    %39 = arith.addf %37, %38 : vector<2x128xf32>
    %40 = math.tanh %39 : vector<2x128xf32>
    %41 = arith.mulf %36, %40 : vector<2x128xf32>
    %42 = tpu.concatenate %41, %5 in 1 : vector<2x128xf32>, vector<2x128xf32> -> vector<2x256xf32>
    %43 = arith.truncf %42 : vector<2x256xf32> to vector<2x256xbf16>
    %cst_15 = arith.constant dense<0.000000e+00> : vector<2x512xf32>
    %44 = tpu.matmul %43, %3, %cst_15 {dimension_numbers = #tpu.dot_dimension_numbers<[1], [0], [0], [1], [0, 0, 1, 1], [], []>} : vector<2x256xbf16>, vector<256x512xbf16>, vector<2x512xf32> -> vector<2x512xf32>
    %45 = vector.broadcast %4 : vector<1x512xf32> to vector<2x512xf32>
    %46 = arith.addf %44, %45 : vector<2x512xf32>
    %47 = vector.extract_strided_slice %46 {offsets = [0, 0], sizes = [2, 128], strides = [1, 1]} : vector<2x512xf32> to vector<2x128xf32>
    %48 = arith.negf %47 : vector<2x128xf32>
    %49 = math.exp %48 : vector<2x128xf32>
    %cst_16 = arith.constant 1.000000e+00 : f32
    %50 = vector.broadcast %cst_16 : f32 to vector<2x128xf32>
    %51 = arith.addf %50, %49 : vector<2x128xf32>
    %52 = arith.divf %50, %51 : vector<2x128xf32>
    %53 = vector.extract_strided_slice %46 {offsets = [0, 128], sizes = [2, 128], strides = [1, 1]} : vector<2x512xf32> to vector<2x128xf32>
    %54 = arith.negf %53 : vector<2x128xf32>
    %55 = math.exp %54 : vector<2x128xf32>
    %cst_17 = arith.constant 1.000000e+00 : f32
    %56 = vector.broadcast %cst_17 : f32 to vector<2x128xf32>
    %57 = arith.addf %56, %55 : vector<2x128xf32>
    %58 = arith.divf %56, %57 : vector<2x128xf32>
    %59 = vector.extract_strided_slice %46 {offsets = [0, 256], sizes = [2, 128], strides = [1, 1]} : vector<2x512xf32> to vector<2x128xf32>
    %60 = math.tanh %59 : vector<2x128xf32>
    %61 = vector.extract_strided_slice %46 {offsets = [0, 384], sizes = [2, 128], strides = [1, 1]} : vector<2x512xf32> to vector<2x128xf32>
    %62 = arith.negf %61 : vector<2x128xf32>
    %63 = math.exp %62 : vector<2x128xf32>
    %cst_18 = arith.constant 1.000000e+00 : f32
    %64 = vector.broadcast %cst_18 : f32 to vector<2x128xf32>
    %65 = arith.addf %64, %63 : vector<2x128xf32>
    %66 = arith.divf %64, %65 : vector<2x128xf32>
    %67 = arith.mulf %58, %5 : vector<2x128xf32>
    %68 = arith.mulf %52, %60 : vector<2x128xf32>
    %69 = arith.addf %67, %68 : vector<2x128xf32>
    %70 = math.tanh %69 : vector<2x128xf32>
    %71 = arith.mulf %66, %70 : vector<2x128xf32>
    %c1_i32 = arith.constant 1 : i32
    %72 = arith.index_cast %c1_i32 : i32 to index
    %c0_19 = arith.constant 0 : index
    %c0_20 = arith.constant 0 : index
    %73 = vector.load %arg0[%72, %c0_19, %c0_20] : memref<8x2x1xf32, #tpu.memory_space<vmem>>, vector<1x2x1xf32>
    %74 = vector.shape_cast %73 : vector<1x2x1xf32> to vector<2x1xf32>
    %75 = vector.broadcast %74 : vector<2x1xf32> to vector<2x512xf32>
    %76 = vector.broadcast %0 : vector<1x512xf32> to vector<2x512xf32>
    %77 = arith.mulf %75, %76 : vector<2x512xf32>
    %78 = vector.broadcast %2 : vector<1x512xf32> to vector<2x512xf32>
    %79 = arith.addf %77, %78 : vector<2x512xf32>
    %80 = arith.truncf %41 : vector<2x128xf32> to vector<2x128xbf16>
    %cst_21 = arith.constant dense<0.000000e+00> : vector<2x512xf32>
    %81 = tpu.matmul %80, %1, %cst_21 {dimension_numbers = #tpu.dot_dimension_numbers<[1], [0], [0], [1], [0, 0, 1, 1], [], []>} : vector<2x128xbf16>, vector<128x512xbf16>, vector<2x512xf32> -> vector<2x512xf32>
    %82 = arith.addf %79, %81 : vector<2x512xf32>
    %83 = vector.extract_strided_slice %82 {offsets = [0, 0], sizes = [2, 128], strides = [1, 1]} : vector<2x512xf32> to vector<2x128xf32>
    %84 = arith.negf %83 : vector<2x128xf32>
    %85 = math.exp %84 : vector<2x128xf32>
    %cst_22 = arith.constant 1.000000e+00 : f32
    %86 = vector.broadcast %cst_22 : f32 to vector<2x128xf32>
    %87 = arith.addf %86, %85 : vector<2x128xf32>
    %88 = arith.divf %86, %87 : vector<2x128xf32>
    %89 = vector.extract_strided_slice %82 {offsets = [0, 128], sizes = [2, 128], strides = [1, 1]} : vector<2x512xf32> to vector<2x128xf32>
    %90 = arith.negf %89 : vector<2x128xf32>
    %91 = math.exp %90 : vector<2x128xf32>
    %cst_23 = arith.constant 1.000000e+00 : f32
    %92 = vector.broadcast %cst_23 : f32 to vector<2x128xf32>
    %93 = arith.addf %92, %91 : vector<2x128xf32>
    %94 = arith.divf %92, %93 : vector<2x128xf32>
    %95 = vector.extract_strided_slice %82 {offsets = [0, 256], sizes = [2, 128], strides = [1, 1]} : vector<2x512xf32> to vector<2x128xf32>
    %96 = math.tanh %95 : vector<2x128xf32>
    %97 = vector.extract_strided_slice %82 {offsets = [0, 384], sizes = [2, 128], strides = [1, 1]} : vector<2x512xf32> to vector<2x128xf32>
    %98 = arith.negf %97 : vector<2x128xf32>
    %99 = math.exp %98 : vector<2x128xf32>
    %cst_24 = arith.constant 1.000000e+00 : f32
    %100 = vector.broadcast %cst_24 : f32 to vector<2x128xf32>
    %101 = arith.addf %100, %99 : vector<2x128xf32>
    %102 = arith.divf %100, %101 : vector<2x128xf32>
    %103 = arith.mulf %94, %39 : vector<2x128xf32>
    %104 = arith.mulf %88, %96 : vector<2x128xf32>
    %105 = arith.addf %103, %104 : vector<2x128xf32>
    %106 = math.tanh %105 : vector<2x128xf32>
    %107 = arith.mulf %102, %106 : vector<2x128xf32>
    %108 = tpu.concatenate %107, %71 in 1 : vector<2x128xf32>, vector<2x128xf32> -> vector<2x256xf32>
    %109 = arith.truncf %108 : vector<2x256xf32> to vector<2x256xbf16>
    %cst_25 = arith.constant dense<0.000000e+00> : vector<2x512xf32>
    %110 = tpu.matmul %109, %3, %cst_25 {dimension_numbers = #tpu.dot_dimension_numbers<[1], [0], [0], [1], [0, 0, 1, 1], [], []>} : vector<2x256xbf16>, vector<256x512xbf16>, vector<2x512xf32> -> vector<2x512xf32>
    %111 = vector.broadcast %4 : vector<1x512xf32> to vector<2x512xf32>
    %112 = arith.addf %110, %111 : vector<2x512xf32>
    %113 = vector.extract_strided_slice %112 {offsets = [0, 0], sizes = [2, 128], strides = [1, 1]} : vector<2x512xf32> to vector<2x128xf32>
    %114 = arith.negf %113 : vector<2x128xf32>
    %115 = math.exp %114 : vector<2x128xf32>
    %cst_26 = arith.constant 1.000000e+00 : f32
    %116 = vector.broadcast %cst_26 : f32 to vector<2x128xf32>
    %117 = arith.addf %116, %115 : vector<2x128xf32>
    %118 = arith.divf %116, %117 : vector<2x128xf32>
    %119 = vector.extract_strided_slice %112 {offsets = [0, 128], sizes = [2, 128], strides = [1, 1]} : vector<2x512xf32> to vector<2x128xf32>
    %120 = arith.negf %119 : vector<2x128xf32>
    %121 = math.exp %120 : vector<2x128xf32>
    %cst_27 = arith.constant 1.000000e+00 : f32
    %122 = vector.broadcast %cst_27 : f32 to vector<2x128xf32>
    %123 = arith.addf %122, %121 : vector<2x128xf32>
    %124 = arith.divf %122, %123 : vector<2x128xf32>
    %125 = vector.extract_strided_slice %112 {offsets = [0, 256], sizes = [2, 128], strides = [1, 1]} : vector<2x512xf32> to vector<2x128xf32>
    %126 = math.tanh %125 : vector<2x128xf32>
    %127 = vector.extract_strided_slice %112 {offsets = [0, 384], sizes = [2, 128], strides = [1, 1]} : vector<2x512xf32> to vector<2x128xf32>
    %128 = arith.negf %127 : vector<2x128xf32>
    %129 = math.exp %128 : vector<2x128xf32>
    %cst_28 = arith.constant 1.000000e+00 : f32
    %130 = vector.broadcast %cst_28 : f32 to vector<2x128xf32>
    %131 = arith.addf %130, %129 : vector<2x128xf32>
    %132 = arith.divf %130, %131 : vector<2x128xf32>
    %133 = arith.mulf %124, %69 : vector<2x128xf32>
    %134 = arith.mulf %118, %126 : vector<2x128xf32>
    %135 = arith.addf %133, %134 : vector<2x128xf32>
    %136 = math.tanh %135 : vector<2x128xf32>
    %137 = arith.mulf %132, %136 : vector<2x128xf32>
    %c2_i32 = arith.constant 2 : i32
    %138 = arith.index_cast %c2_i32 : i32 to index
    %c0_29 = arith.constant 0 : index
    %c0_30 = arith.constant 0 : index
    %139 = vector.load %arg0[%138, %c0_29, %c0_30] : memref<8x2x1xf32, #tpu.memory_space<vmem>>, vector<1x2x1xf32>
    %140 = vector.shape_cast %139 : vector<1x2x1xf32> to vector<2x1xf32>
    %141 = vector.broadcast %140 : vector<2x1xf32> to vector<2x512xf32>
    %142 = vector.broadcast %0 : vector<1x512xf32> to vector<2x512xf32>
    %143 = arith.mulf %141, %142 : vector<2x512xf32>
    %144 = vector.broadcast %2 : vector<1x512xf32> to vector<2x512xf32>
    %145 = arith.addf %143, %144 : vector<2x512xf32>
    %146 = arith.truncf %107 : vector<2x128xf32> to vector<2x128xbf16>
    %cst_31 = arith.constant dense<0.000000e+00> : vector<2x512xf32>
    %147 = tpu.matmul %146, %1, %cst_31 {dimension_numbers = #tpu.dot_dimension_numbers<[1], [0], [0], [1], [0, 0, 1, 1], [], []>} : vector<2x128xbf16>, vector<128x512xbf16>, vector<2x512xf32> -> vector<2x512xf32>
    %148 = arith.addf %145, %147 : vector<2x512xf32>
    %149 = vector.extract_strided_slice %148 {offsets = [0, 0], sizes = [2, 128], strides = [1, 1]} : vector<2x512xf32> to vector<2x128xf32>
    %150 = arith.negf %149 : vector<2x128xf32>
    %151 = math.exp %150 : vector<2x128xf32>
    %cst_32 = arith.constant 1.000000e+00 : f32
    %152 = vector.broadcast %cst_32 : f32 to vector<2x128xf32>
    %153 = arith.addf %152, %151 : vector<2x128xf32>
    %154 = arith.divf %152, %153 : vector<2x128xf32>
    %155 = vector.extract_strided_slice %148 {offsets = [0, 128], sizes = [2, 128], strides = [1, 1]} : vector<2x512xf32> to vector<2x128xf32>
    %156 = arith.negf %155 : vector<2x128xf32>
    %157 = math.exp %156 : vector<2x128xf32>
    %cst_33 = arith.constant 1.000000e+00 : f32
    %158 = vector.broadcast %cst_33 : f32 to vector<2x128xf32>
    %159 = arith.addf %158, %157 : vector<2x128xf32>
    %160 = arith.divf %158, %159 : vector<2x128xf32>
    %161 = vector.extract_strided_slice %148 {offsets = [0, 256], sizes = [2, 128], strides = [1, 1]} : vector<2x512xf32> to vector<2x128xf32>
    %162 = math.tanh %161 : vector<2x128xf32>
    %163 = vector.extract_strided_slice %148 {offsets = [0, 384], sizes = [2, 128], strides = [1, 1]} : vector<2x512xf32> to vector<2x128xf32>
    %164 = arith.negf %163 : vector<2x128xf32>
    %165 = math.exp %164 : vector<2x128xf32>
    %cst_34 = arith.constant 1.000000e+00 : f32
    %166 = vector.broadcast %cst_34 : f32 to vector<2x128xf32>
    %167 = arith.addf %166, %165 : vector<2x128xf32>
    %168 = arith.divf %166, %167 : vector<2x128xf32>
    %169 = arith.mulf %160, %105 : vector<2x128xf32>
    %170 = arith.mulf %154, %162 : vector<2x128xf32>
    %171 = arith.addf %169, %170 : vector<2x128xf32>
    %172 = math.tanh %171 : vector<2x128xf32>
    %173 = arith.mulf %168, %172 : vector<2x128xf32>
    %174 = tpu.concatenate %173, %137 in 1 : vector<2x128xf32>, vector<2x128xf32> -> vector<2x256xf32>
    %175 = arith.truncf %174 : vector<2x256xf32> to vector<2x256xbf16>
    %cst_35 = arith.constant dense<0.000000e+00> : vector<2x512xf32>
    %176 = tpu.matmul %175, %3, %cst_35 {dimension_numbers = #tpu.dot_dimension_numbers<[1], [0], [0], [1], [0, 0, 1, 1], [], []>} : vector<2x256xbf16>, vector<256x512xbf16>, vector<2x512xf32> -> vector<2x512xf32>
    %177 = vector.broadcast %4 : vector<1x512xf32> to vector<2x512xf32>
    %178 = arith.addf %176, %177 : vector<2x512xf32>
    %179 = vector.extract_strided_slice %178 {offsets = [0, 0], sizes = [2, 128], strides = [1, 1]} : vector<2x512xf32> to vector<2x128xf32>
    %180 = arith.negf %179 : vector<2x128xf32>
    %181 = math.exp %180 : vector<2x128xf32>
    %cst_36 = arith.constant 1.000000e+00 : f32
    %182 = vector.broadcast %cst_36 : f32 to vector<2x128xf32>
    %183 = arith.addf %182, %181 : vector<2x128xf32>
    %184 = arith.divf %182, %183 : vector<2x128xf32>
    %185 = vector.extract_strided_slice %178 {offsets = [0, 128], sizes = [2, 128], strides = [1, 1]} : vector<2x512xf32> to vector<2x128xf32>
    %186 = arith.negf %185 : vector<2x128xf32>
    %187 = math.exp %186 : vector<2x128xf32>
    %cst_37 = arith.constant 1.000000e+00 : f32
    %188 = vector.broadcast %cst_37 : f32 to vector<2x128xf32>
    %189 = arith.addf %188, %187 : vector<2x128xf32>
    %190 = arith.divf %188, %189 : vector<2x128xf32>
    %191 = vector.extract_strided_slice %178 {offsets = [0, 256], sizes = [2, 128], strides = [1, 1]} : vector<2x512xf32> to vector<2x128xf32>
    %192 = math.tanh %191 : vector<2x128xf32>
    %193 = vector.extract_strided_slice %178 {offsets = [0, 384], sizes = [2, 128], strides = [1, 1]} : vector<2x512xf32> to vector<2x128xf32>
    %194 = arith.negf %193 : vector<2x128xf32>
    %195 = math.exp %194 : vector<2x128xf32>
    %cst_38 = arith.constant 1.000000e+00 : f32
    %196 = vector.broadcast %cst_38 : f32 to vector<2x128xf32>
    %197 = arith.addf %196, %195 : vector<2x128xf32>
    %198 = arith.divf %196, %197 : vector<2x128xf32>
    %199 = arith.mulf %190, %135 : vector<2x128xf32>
    %200 = arith.mulf %184, %192 : vector<2x128xf32>
    %201 = arith.addf %199, %200 : vector<2x128xf32>
    %202 = math.tanh %201 : vector<2x128xf32>
    %203 = arith.mulf %198, %202 : vector<2x128xf32>
    %c3_i32 = arith.constant 3 : i32
    %204 = arith.index_cast %c3_i32 : i32 to index
    %c0_39 = arith.constant 0 : index
    %c0_40 = arith.constant 0 : index
    %205 = vector.load %arg0[%204, %c0_39, %c0_40] : memref<8x2x1xf32, #tpu.memory_space<vmem>>, vector<1x2x1xf32>
    %206 = vector.shape_cast %205 : vector<1x2x1xf32> to vector<2x1xf32>
    %207 = vector.broadcast %206 : vector<2x1xf32> to vector<2x512xf32>
    %208 = vector.broadcast %0 : vector<1x512xf32> to vector<2x512xf32>
    %209 = arith.mulf %207, %208 : vector<2x512xf32>
    %210 = vector.broadcast %2 : vector<1x512xf32> to vector<2x512xf32>
    %211 = arith.addf %209, %210 : vector<2x512xf32>
    %212 = arith.truncf %173 : vector<2x128xf32> to vector<2x128xbf16>
    %cst_41 = arith.constant dense<0.000000e+00> : vector<2x512xf32>
    %213 = tpu.matmul %212, %1, %cst_41 {dimension_numbers = #tpu.dot_dimension_numbers<[1], [0], [0], [1], [0, 0, 1, 1], [], []>} : vector<2x128xbf16>, vector<128x512xbf16>, vector<2x512xf32> -> vector<2x512xf32>
    %214 = arith.addf %211, %213 : vector<2x512xf32>
    %215 = vector.extract_strided_slice %214 {offsets = [0, 0], sizes = [2, 128], strides = [1, 1]} : vector<2x512xf32> to vector<2x128xf32>
    %216 = arith.negf %215 : vector<2x128xf32>
    %217 = math.exp %216 : vector<2x128xf32>
    %cst_42 = arith.constant 1.000000e+00 : f32
    %218 = vector.broadcast %cst_42 : f32 to vector<2x128xf32>
    %219 = arith.addf %218, %217 : vector<2x128xf32>
    %220 = arith.divf %218, %219 : vector<2x128xf32>
    %221 = vector.extract_strided_slice %214 {offsets = [0, 128], sizes = [2, 128], strides = [1, 1]} : vector<2x512xf32> to vector<2x128xf32>
    %222 = arith.negf %221 : vector<2x128xf32>
    %223 = math.exp %222 : vector<2x128xf32>
    %cst_43 = arith.constant 1.000000e+00 : f32
    %224 = vector.broadcast %cst_43 : f32 to vector<2x128xf32>
    %225 = arith.addf %224, %223 : vector<2x128xf32>
    %226 = arith.divf %224, %225 : vector<2x128xf32>
    %227 = vector.extract_strided_slice %214 {offsets = [0, 256], sizes = [2, 128], strides = [1, 1]} : vector<2x512xf32> to vector<2x128xf32>
    %228 = math.tanh %227 : vector<2x128xf32>
    %229 = vector.extract_strided_slice %214 {offsets = [0, 384], sizes = [2, 128], strides = [1, 1]} : vector<2x512xf32> to vector<2x128xf32>
    %230 = arith.negf %229 : vector<2x128xf32>
    %231 = math.exp %230 : vector<2x128xf32>
    %cst_44 = arith.constant 1.000000e+00 : f32
    %232 = vector.broadcast %cst_44 : f32 to vector<2x128xf32>
    %233 = arith.addf %232, %231 : vector<2x128xf32>
    %234 = arith.divf %232, %233 : vector<2x128xf32>
    %235 = arith.mulf %226, %171 : vector<2x128xf32>
    %236 = arith.mulf %220, %228 : vector<2x128xf32>
    %237 = arith.addf %235, %236 : vector<2x128xf32>
    %238 = math.tanh %237 : vector<2x128xf32>
    %239 = arith.mulf %234, %238 : vector<2x128xf32>
    %240 = tpu.concatenate %239, %203 in 1 : vector<2x128xf32>, vector<2x128xf32> -> vector<2x256xf32>
    %241 = arith.truncf %240 : vector<2x256xf32> to vector<2x256xbf16>
    %cst_45 = arith.constant dense<0.000000e+00> : vector<2x512xf32>
    %242 = tpu.matmul %241, %3, %cst_45 {dimension_numbers = #tpu.dot_dimension_numbers<[1], [0], [0], [1], [0, 0, 1, 1], [], []>} : vector<2x256xbf16>, vector<256x512xbf16>, vector<2x512xf32> -> vector<2x512xf32>
    %243 = vector.broadcast %4 : vector<1x512xf32> to vector<2x512xf32>
    %244 = arith.addf %242, %243 : vector<2x512xf32>
    %245 = vector.extract_strided_slice %244 {offsets = [0, 0], sizes = [2, 128], strides = [1, 1]} : vector<2x512xf32> to vector<2x128xf32>
    %246 = arith.negf %245 : vector<2x128xf32>
    %247 = math.exp %246 : vector<2x128xf32>
    %cst_46 = arith.constant 1.000000e+00 : f32
    %248 = vector.broadcast %cst_46 : f32 to vector<2x128xf32>
    %249 = arith.addf %248, %247 : vector<2x128xf32>
    %250 = arith.divf %248, %249 : vector<2x128xf32>
    %251 = vector.extract_strided_slice %244 {offsets = [0, 128], sizes = [2, 128], strides = [1, 1]} : vector<2x512xf32> to vector<2x128xf32>
    %252 = arith.negf %251 : vector<2x128xf32>
    %253 = math.exp %252 : vector<2x128xf32>
    %cst_47 = arith.constant 1.000000e+00 : f32
    %254 = vector.broadcast %cst_47 : f32 to vector<2x128xf32>
    %255 = arith.addf %254, %253 : vector<2x128xf32>
    %256 = arith.divf %254, %255 : vector<2x128xf32>
    %257 = vector.extract_strided_slice %244 {offsets = [0, 256], sizes = [2, 128], strides = [1, 1]} : vector<2x512xf32> to vector<2x128xf32>
    %258 = math.tanh %257 : vector<2x128xf32>
    %259 = vector.extract_strided_slice %244 {offsets = [0, 384], sizes = [2, 128], strides = [1, 1]} : vector<2x512xf32> to vector<2x128xf32>
    %260 = arith.negf %259 : vector<2x128xf32>
    %261 = math.exp %260 : vector<2x128xf32>
    %cst_48 = arith.constant 1.000000e+00 : f32
    %262 = vector.broadcast %cst_48 : f32 to vector<2x128xf32>
    %263 = arith.addf %262, %261 : vector<2x128xf32>
    %264 = arith.divf %262, %263 : vector<2x128xf32>
    %265 = arith.mulf %256, %201 : vector<2x128xf32>
    %266 = arith.mulf %250, %258 : vector<2x128xf32>
    %267 = arith.addf %265, %266 : vector<2x128xf32>
    %268 = math.tanh %267 : vector<2x128xf32>
    %269 = arith.mulf %264, %268 : vector<2x128xf32>
    %c4_i32 = arith.constant 4 : i32
    %270 = arith.index_cast %c4_i32 : i32 to index
    %c0_49 = arith.constant 0 : index
    %c0_50 = arith.constant 0 : index
    %271 = vector.load %arg0[%270, %c0_49, %c0_50] : memref<8x2x1xf32, #tpu.memory_space<vmem>>, vector<1x2x1xf32>
    %272 = vector.shape_cast %271 : vector<1x2x1xf32> to vector<2x1xf32>
    %273 = vector.broadcast %272 : vector<2x1xf32> to vector<2x512xf32>
    %274 = vector.broadcast %0 : vector<1x512xf32> to vector<2x512xf32>
    %275 = arith.mulf %273, %274 : vector<2x512xf32>
    %276 = vector.broadcast %2 : vector<1x512xf32> to vector<2x512xf32>
    %277 = arith.addf %275, %276 : vector<2x512xf32>
    %278 = arith.truncf %239 : vector<2x128xf32> to vector<2x128xbf16>
    %cst_51 = arith.constant dense<0.000000e+00> : vector<2x512xf32>
    %279 = tpu.matmul %278, %1, %cst_51 {dimension_numbers = #tpu.dot_dimension_numbers<[1], [0], [0], [1], [0, 0, 1, 1], [], []>} : vector<2x128xbf16>, vector<128x512xbf16>, vector<2x512xf32> -> vector<2x512xf32>
    %280 = arith.addf %277, %279 : vector<2x512xf32>
    %281 = vector.extract_strided_slice %280 {offsets = [0, 0], sizes = [2, 128], strides = [1, 1]} : vector<2x512xf32> to vector<2x128xf32>
    %282 = arith.negf %281 : vector<2x128xf32>
    %283 = math.exp %282 : vector<2x128xf32>
    %cst_52 = arith.constant 1.000000e+00 : f32
    %284 = vector.broadcast %cst_52 : f32 to vector<2x128xf32>
    %285 = arith.addf %284, %283 : vector<2x128xf32>
    %286 = arith.divf %284, %285 : vector<2x128xf32>
    %287 = vector.extract_strided_slice %280 {offsets = [0, 128], sizes = [2, 128], strides = [1, 1]} : vector<2x512xf32> to vector<2x128xf32>
    %288 = arith.negf %287 : vector<2x128xf32>
    %289 = math.exp %288 : vector<2x128xf32>
    %cst_53 = arith.constant 1.000000e+00 : f32
    %290 = vector.broadcast %cst_53 : f32 to vector<2x128xf32>
    %291 = arith.addf %290, %289 : vector<2x128xf32>
    %292 = arith.divf %290, %291 : vector<2x128xf32>
    %293 = vector.extract_strided_slice %280 {offsets = [0, 256], sizes = [2, 128], strides = [1, 1]} : vector<2x512xf32> to vector<2x128xf32>
    %294 = math.tanh %293 : vector<2x128xf32>
    %295 = vector.extract_strided_slice %280 {offsets = [0, 384], sizes = [2, 128], strides = [1, 1]} : vector<2x512xf32> to vector<2x128xf32>
    %296 = arith.negf %295 : vector<2x128xf32>
    %297 = math.exp %296 : vector<2x128xf32>
    %cst_54 = arith.constant 1.000000e+00 : f32
    %298 = vector.broadcast %cst_54 : f32 to vector<2x128xf32>
    %299 = arith.addf %298, %297 : vector<2x128xf32>
    %300 = arith.divf %298, %299 : vector<2x128xf32>
    %301 = arith.mulf %292, %237 : vector<2x128xf32>
    %302 = arith.mulf %286, %294 : vector<2x128xf32>
    %303 = arith.addf %301, %302 : vector<2x128xf32>
    %304 = math.tanh %303 : vector<2x128xf32>
    %305 = arith.mulf %300, %304 : vector<2x128xf32>
    %306 = tpu.concatenate %305, %269 in 1 : vector<2x128xf32>, vector<2x128xf32> -> vector<2x256xf32>
    %307 = arith.truncf %306 : vector<2x256xf32> to vector<2x256xbf16>
    %cst_55 = arith.constant dense<0.000000e+00> : vector<2x512xf32>
    %308 = tpu.matmul %307, %3, %cst_55 {dimension_numbers = #tpu.dot_dimension_numbers<[1], [0], [0], [1], [0, 0, 1, 1], [], []>} : vector<2x256xbf16>, vector<256x512xbf16>, vector<2x512xf32> -> vector<2x512xf32>
    %309 = vector.broadcast %4 : vector<1x512xf32> to vector<2x512xf32>
    %310 = arith.addf %308, %309 : vector<2x512xf32>
    %311 = vector.extract_strided_slice %310 {offsets = [0, 0], sizes = [2, 128], strides = [1, 1]} : vector<2x512xf32> to vector<2x128xf32>
    %312 = arith.negf %311 : vector<2x128xf32>
    %313 = math.exp %312 : vector<2x128xf32>
    %cst_56 = arith.constant 1.000000e+00 : f32
    %314 = vector.broadcast %cst_56 : f32 to vector<2x128xf32>
    %315 = arith.addf %314, %313 : vector<2x128xf32>
    %316 = arith.divf %314, %315 : vector<2x128xf32>
    %317 = vector.extract_strided_slice %310 {offsets = [0, 128], sizes = [2, 128], strides = [1, 1]} : vector<2x512xf32> to vector<2x128xf32>
    %318 = arith.negf %317 : vector<2x128xf32>
    %319 = math.exp %318 : vector<2x128xf32>
    %cst_57 = arith.constant 1.000000e+00 : f32
    %320 = vector.broadcast %cst_57 : f32 to vector<2x128xf32>
    %321 = arith.addf %320, %319 : vector<2x128xf32>
    %322 = arith.divf %320, %321 : vector<2x128xf32>
    %323 = vector.extract_strided_slice %310 {offsets = [0, 256], sizes = [2, 128], strides = [1, 1]} : vector<2x512xf32> to vector<2x128xf32>
    %324 = math.tanh %323 : vector<2x128xf32>
    %325 = vector.extract_strided_slice %310 {offsets = [0, 384], sizes = [2, 128], strides = [1, 1]} : vector<2x512xf32> to vector<2x128xf32>
    %326 = arith.negf %325 : vector<2x128xf32>
    %327 = math.exp %326 : vector<2x128xf32>
    %cst_58 = arith.constant 1.000000e+00 : f32
    %328 = vector.broadcast %cst_58 : f32 to vector<2x128xf32>
    %329 = arith.addf %328, %327 : vector<2x128xf32>
    %330 = arith.divf %328, %329 : vector<2x128xf32>
    %331 = arith.mulf %322, %267 : vector<2x128xf32>
    %332 = arith.mulf %316, %324 : vector<2x128xf32>
    %333 = arith.addf %331, %332 : vector<2x128xf32>
    %334 = math.tanh %333 : vector<2x128xf32>
    %335 = arith.mulf %330, %334 : vector<2x128xf32>
    %c5_i32 = arith.constant 5 : i32
    %336 = arith.index_cast %c5_i32 : i32 to index
    %c0_59 = arith.constant 0 : index
    %c0_60 = arith.constant 0 : index
    %337 = vector.load %arg0[%336, %c0_59, %c0_60] : memref<8x2x1xf32, #tpu.memory_space<vmem>>, vector<1x2x1xf32>
    %338 = vector.shape_cast %337 : vector<1x2x1xf32> to vector<2x1xf32>
    %339 = vector.broadcast %338 : vector<2x1xf32> to vector<2x512xf32>
    %340 = vector.broadcast %0 : vector<1x512xf32> to vector<2x512xf32>
    %341 = arith.mulf %339, %340 : vector<2x512xf32>
    %342 = vector.broadcast %2 : vector<1x512xf32> to vector<2x512xf32>
    %343 = arith.addf %341, %342 : vector<2x512xf32>
    %344 = arith.truncf %305 : vector<2x128xf32> to vector<2x128xbf16>
    %cst_61 = arith.constant dense<0.000000e+00> : vector<2x512xf32>
    %345 = tpu.matmul %344, %1, %cst_61 {dimension_numbers = #tpu.dot_dimension_numbers<[1], [0], [0], [1], [0, 0, 1, 1], [], []>} : vector<2x128xbf16>, vector<128x512xbf16>, vector<2x512xf32> -> vector<2x512xf32>
    %346 = arith.addf %343, %345 : vector<2x512xf32>
    %347 = vector.extract_strided_slice %346 {offsets = [0, 0], sizes = [2, 128], strides = [1, 1]} : vector<2x512xf32> to vector<2x128xf32>
    %348 = arith.negf %347 : vector<2x128xf32>
    %349 = math.exp %348 : vector<2x128xf32>
    %cst_62 = arith.constant 1.000000e+00 : f32
    %350 = vector.broadcast %cst_62 : f32 to vector<2x128xf32>
    %351 = arith.addf %350, %349 : vector<2x128xf32>
    %352 = arith.divf %350, %351 : vector<2x128xf32>
    %353 = vector.extract_strided_slice %346 {offsets = [0, 128], sizes = [2, 128], strides = [1, 1]} : vector<2x512xf32> to vector<2x128xf32>
    %354 = arith.negf %353 : vector<2x128xf32>
    %355 = math.exp %354 : vector<2x128xf32>
    %cst_63 = arith.constant 1.000000e+00 : f32
    %356 = vector.broadcast %cst_63 : f32 to vector<2x128xf32>
    %357 = arith.addf %356, %355 : vector<2x128xf32>
    %358 = arith.divf %356, %357 : vector<2x128xf32>
    %359 = vector.extract_strided_slice %346 {offsets = [0, 256], sizes = [2, 128], strides = [1, 1]} : vector<2x512xf32> to vector<2x128xf32>
    %360 = math.tanh %359 : vector<2x128xf32>
    %361 = vector.extract_strided_slice %346 {offsets = [0, 384], sizes = [2, 128], strides = [1, 1]} : vector<2x512xf32> to vector<2x128xf32>
    %362 = arith.negf %361 : vector<2x128xf32>
    %363 = math.exp %362 : vector<2x128xf32>
    %cst_64 = arith.constant 1.000000e+00 : f32
    %364 = vector.broadcast %cst_64 : f32 to vector<2x128xf32>
    %365 = arith.addf %364, %363 : vector<2x128xf32>
    %366 = arith.divf %364, %365 : vector<2x128xf32>
    %367 = arith.mulf %358, %303 : vector<2x128xf32>
    %368 = arith.mulf %352, %360 : vector<2x128xf32>
    %369 = arith.addf %367, %368 : vector<2x128xf32>
    %370 = math.tanh %369 : vector<2x128xf32>
    %371 = arith.mulf %366, %370 : vector<2x128xf32>
    %372 = tpu.concatenate %371, %335 in 1 : vector<2x128xf32>, vector<2x128xf32> -> vector<2x256xf32>
    %373 = arith.truncf %372 : vector<2x256xf32> to vector<2x256xbf16>
    %cst_65 = arith.constant dense<0.000000e+00> : vector<2x512xf32>
    %374 = tpu.matmul %373, %3, %cst_65 {dimension_numbers = #tpu.dot_dimension_numbers<[1], [0], [0], [1], [0, 0, 1, 1], [], []>} : vector<2x256xbf16>, vector<256x512xbf16>, vector<2x512xf32> -> vector<2x512xf32>
    %375 = vector.broadcast %4 : vector<1x512xf32> to vector<2x512xf32>
    %376 = arith.addf %374, %375 : vector<2x512xf32>
    %377 = vector.extract_strided_slice %376 {offsets = [0, 0], sizes = [2, 128], strides = [1, 1]} : vector<2x512xf32> to vector<2x128xf32>
    %378 = arith.negf %377 : vector<2x128xf32>
    %379 = math.exp %378 : vector<2x128xf32>
    %cst_66 = arith.constant 1.000000e+00 : f32
    %380 = vector.broadcast %cst_66 : f32 to vector<2x128xf32>
    %381 = arith.addf %380, %379 : vector<2x128xf32>
    %382 = arith.divf %380, %381 : vector<2x128xf32>
    %383 = vector.extract_strided_slice %376 {offsets = [0, 128], sizes = [2, 128], strides = [1, 1]} : vector<2x512xf32> to vector<2x128xf32>
    %384 = arith.negf %383 : vector<2x128xf32>
    %385 = math.exp %384 : vector<2x128xf32>
    %cst_67 = arith.constant 1.000000e+00 : f32
    %386 = vector.broadcast %cst_67 : f32 to vector<2x128xf32>
    %387 = arith.addf %386, %385 : vector<2x128xf32>
    %388 = arith.divf %386, %387 : vector<2x128xf32>
    %389 = vector.extract_strided_slice %376 {offsets = [0, 256], sizes = [2, 128], strides = [1, 1]} : vector<2x512xf32> to vector<2x128xf32>
    %390 = math.tanh %389 : vector<2x128xf32>
    %391 = vector.extract_strided_slice %376 {offsets = [0, 384], sizes = [2, 128], strides = [1, 1]} : vector<2x512xf32> to vector<2x128xf32>
    %392 = arith.negf %391 : vector<2x128xf32>
    %393 = math.exp %392 : vector<2x128xf32>
    %cst_68 = arith.constant 1.000000e+00 : f32
    %394 = vector.broadcast %cst_68 : f32 to vector<2x128xf32>
    %395 = arith.addf %394, %393 : vector<2x128xf32>
    %396 = arith.divf %394, %395 : vector<2x128xf32>
    %397 = arith.mulf %388, %333 : vector<2x128xf32>
    %398 = arith.mulf %382, %390 : vector<2x128xf32>
    %399 = arith.addf %397, %398 : vector<2x128xf32>
    %400 = math.tanh %399 : vector<2x128xf32>
    %401 = arith.mulf %396, %400 : vector<2x128xf32>
    %c6_i32 = arith.constant 6 : i32
    %402 = arith.index_cast %c6_i32 : i32 to index
    %c0_69 = arith.constant 0 : index
    %c0_70 = arith.constant 0 : index
    %403 = vector.load %arg0[%402, %c0_69, %c0_70] : memref<8x2x1xf32, #tpu.memory_space<vmem>>, vector<1x2x1xf32>
    %404 = vector.shape_cast %403 : vector<1x2x1xf32> to vector<2x1xf32>
    %405 = vector.broadcast %404 : vector<2x1xf32> to vector<2x512xf32>
    %406 = vector.broadcast %0 : vector<1x512xf32> to vector<2x512xf32>
    %407 = arith.mulf %405, %406 : vector<2x512xf32>
    %408 = vector.broadcast %2 : vector<1x512xf32> to vector<2x512xf32>
    %409 = arith.addf %407, %408 : vector<2x512xf32>
    %410 = arith.truncf %371 : vector<2x128xf32> to vector<2x128xbf16>
    %cst_71 = arith.constant dense<0.000000e+00> : vector<2x512xf32>
    %411 = tpu.matmul %410, %1, %cst_71 {dimension_numbers = #tpu.dot_dimension_numbers<[1], [0], [0], [1], [0, 0, 1, 1], [], []>} : vector<2x128xbf16>, vector<128x512xbf16>, vector<2x512xf32> -> vector<2x512xf32>
    %412 = arith.addf %409, %411 : vector<2x512xf32>
    %413 = vector.extract_strided_slice %412 {offsets = [0, 0], sizes = [2, 128], strides = [1, 1]} : vector<2x512xf32> to vector<2x128xf32>
    %414 = arith.negf %413 : vector<2x128xf32>
    %415 = math.exp %414 : vector<2x128xf32>
    %cst_72 = arith.constant 1.000000e+00 : f32
    %416 = vector.broadcast %cst_72 : f32 to vector<2x128xf32>
    %417 = arith.addf %416, %415 : vector<2x128xf32>
    %418 = arith.divf %416, %417 : vector<2x128xf32>
    %419 = vector.extract_strided_slice %412 {offsets = [0, 128], sizes = [2, 128], strides = [1, 1]} : vector<2x512xf32> to vector<2x128xf32>
    %420 = arith.negf %419 : vector<2x128xf32>
    %421 = math.exp %420 : vector<2x128xf32>
    %cst_73 = arith.constant 1.000000e+00 : f32
    %422 = vector.broadcast %cst_73 : f32 to vector<2x128xf32>
    %423 = arith.addf %422, %421 : vector<2x128xf32>
    %424 = arith.divf %422, %423 : vector<2x128xf32>
    %425 = vector.extract_strided_slice %412 {offsets = [0, 256], sizes = [2, 128], strides = [1, 1]} : vector<2x512xf32> to vector<2x128xf32>
    %426 = math.tanh %425 : vector<2x128xf32>
    %427 = vector.extract_strided_slice %412 {offsets = [0, 384], sizes = [2, 128], strides = [1, 1]} : vector<2x512xf32> to vector<2x128xf32>
    %428 = arith.negf %427 : vector<2x128xf32>
    %429 = math.exp %428 : vector<2x128xf32>
    %cst_74 = arith.constant 1.000000e+00 : f32
    %430 = vector.broadcast %cst_74 : f32 to vector<2x128xf32>
    %431 = arith.addf %430, %429 : vector<2x128xf32>
    %432 = arith.divf %430, %431 : vector<2x128xf32>
    %433 = arith.mulf %424, %369 : vector<2x128xf32>
    %434 = arith.mulf %418, %426 : vector<2x128xf32>
    %435 = arith.addf %433, %434 : vector<2x128xf32>
    %436 = math.tanh %435 : vector<2x128xf32>
    %437 = arith.mulf %432, %436 : vector<2x128xf32>
    %438 = tpu.concatenate %437, %401 in 1 : vector<2x128xf32>, vector<2x128xf32> -> vector<2x256xf32>
    %439 = arith.truncf %438 : vector<2x256xf32> to vector<2x256xbf16>
    %cst_75 = arith.constant dense<0.000000e+00> : vector<2x512xf32>
    %440 = tpu.matmul %439, %3, %cst_75 {dimension_numbers = #tpu.dot_dimension_numbers<[1], [0], [0], [1], [0, 0, 1, 1], [], []>} : vector<2x256xbf16>, vector<256x512xbf16>, vector<2x512xf32> -> vector<2x512xf32>
    %441 = vector.broadcast %4 : vector<1x512xf32> to vector<2x512xf32>
    %442 = arith.addf %440, %441 : vector<2x512xf32>
    %443 = vector.extract_strided_slice %442 {offsets = [0, 0], sizes = [2, 128], strides = [1, 1]} : vector<2x512xf32> to vector<2x128xf32>
    %444 = arith.negf %443 : vector<2x128xf32>
    %445 = math.exp %444 : vector<2x128xf32>
    %cst_76 = arith.constant 1.000000e+00 : f32
    %446 = vector.broadcast %cst_76 : f32 to vector<2x128xf32>
    %447 = arith.addf %446, %445 : vector<2x128xf32>
    %448 = arith.divf %446, %447 : vector<2x128xf32>
    %449 = vector.extract_strided_slice %442 {offsets = [0, 128], sizes = [2, 128], strides = [1, 1]} : vector<2x512xf32> to vector<2x128xf32>
    %450 = arith.negf %449 : vector<2x128xf32>
    %451 = math.exp %450 : vector<2x128xf32>
    %cst_77 = arith.constant 1.000000e+00 : f32
    %452 = vector.broadcast %cst_77 : f32 to vector<2x128xf32>
    %453 = arith.addf %452, %451 : vector<2x128xf32>
    %454 = arith.divf %452, %453 : vector<2x128xf32>
    %455 = vector.extract_strided_slice %442 {offsets = [0, 256], sizes = [2, 128], strides = [1, 1]} : vector<2x512xf32> to vector<2x128xf32>
    %456 = math.tanh %455 : vector<2x128xf32>
    %457 = vector.extract_strided_slice %442 {offsets = [0, 384], sizes = [2, 128], strides = [1, 1]} : vector<2x512xf32> to vector<2x128xf32>
    %458 = arith.negf %457 : vector<2x128xf32>
    %459 = math.exp %458 : vector<2x128xf32>
    %cst_78 = arith.constant 1.000000e+00 : f32
    %460 = vector.broadcast %cst_78 : f32 to vector<2x128xf32>
    %461 = arith.addf %460, %459 : vector<2x128xf32>
    %462 = arith.divf %460, %461 : vector<2x128xf32>
    %463 = arith.mulf %454, %399 : vector<2x128xf32>
    %464 = arith.mulf %448, %456 : vector<2x128xf32>
    %465 = arith.addf %463, %464 : vector<2x128xf32>
    %466 = math.tanh %465 : vector<2x128xf32>
    %467 = arith.mulf %462, %466 : vector<2x128xf32>
    %c7_i32 = arith.constant 7 : i32
    %468 = arith.index_cast %c7_i32 : i32 to index
    %c0_79 = arith.constant 0 : index
    %c0_80 = arith.constant 0 : index
    %469 = vector.load %arg0[%468, %c0_79, %c0_80] : memref<8x2x1xf32, #tpu.memory_space<vmem>>, vector<1x2x1xf32>
    %470 = vector.shape_cast %469 : vector<1x2x1xf32> to vector<2x1xf32>
    %471 = vector.broadcast %470 : vector<2x1xf32> to vector<2x512xf32>
    %472 = vector.broadcast %0 : vector<1x512xf32> to vector<2x512xf32>
    %473 = arith.mulf %471, %472 : vector<2x512xf32>
    %474 = vector.broadcast %2 : vector<1x512xf32> to vector<2x512xf32>
    %475 = arith.addf %473, %474 : vector<2x512xf32>
    %476 = arith.truncf %437 : vector<2x128xf32> to vector<2x128xbf16>
    %cst_81 = arith.constant dense<0.000000e+00> : vector<2x512xf32>
    %477 = tpu.matmul %476, %1, %cst_81 {dimension_numbers = #tpu.dot_dimension_numbers<[1], [0], [0], [1], [0, 0, 1, 1], [], []>} : vector<2x128xbf16>, vector<128x512xbf16>, vector<2x512xf32> -> vector<2x512xf32>
    %478 = arith.addf %475, %477 : vector<2x512xf32>
    %479 = vector.extract_strided_slice %478 {offsets = [0, 0], sizes = [2, 128], strides = [1, 1]} : vector<2x512xf32> to vector<2x128xf32>
    %480 = arith.negf %479 : vector<2x128xf32>
    %481 = math.exp %480 : vector<2x128xf32>
    %cst_82 = arith.constant 1.000000e+00 : f32
    %482 = vector.broadcast %cst_82 : f32 to vector<2x128xf32>
    %483 = arith.addf %482, %481 : vector<2x128xf32>
    %484 = arith.divf %482, %483 : vector<2x128xf32>
    %485 = vector.extract_strided_slice %478 {offsets = [0, 128], sizes = [2, 128], strides = [1, 1]} : vector<2x512xf32> to vector<2x128xf32>
    %486 = arith.negf %485 : vector<2x128xf32>
    %487 = math.exp %486 : vector<2x128xf32>
    %cst_83 = arith.constant 1.000000e+00 : f32
    %488 = vector.broadcast %cst_83 : f32 to vector<2x128xf32>
    %489 = arith.addf %488, %487 : vector<2x128xf32>
    %490 = arith.divf %488, %489 : vector<2x128xf32>
    %491 = vector.extract_strided_slice %478 {offsets = [0, 256], sizes = [2, 128], strides = [1, 1]} : vector<2x512xf32> to vector<2x128xf32>
    %492 = math.tanh %491 : vector<2x128xf32>
    %493 = vector.extract_strided_slice %478 {offsets = [0, 384], sizes = [2, 128], strides = [1, 1]} : vector<2x512xf32> to vector<2x128xf32>
    %494 = arith.negf %493 : vector<2x128xf32>
    %495 = math.exp %494 : vector<2x128xf32>
    %cst_84 = arith.constant 1.000000e+00 : f32
    %496 = vector.broadcast %cst_84 : f32 to vector<2x128xf32>
    %497 = arith.addf %496, %495 : vector<2x128xf32>
    %498 = arith.divf %496, %497 : vector<2x128xf32>
    %499 = arith.mulf %490, %435 : vector<2x128xf32>
    %500 = arith.mulf %484, %492 : vector<2x128xf32>
    %501 = arith.addf %499, %500 : vector<2x128xf32>
    %502 = math.tanh %501 : vector<2x128xf32>
    %503 = arith.mulf %498, %502 : vector<2x128xf32>
    %504 = tpu.concatenate %503, %467 in 1 : vector<2x128xf32>, vector<2x128xf32> -> vector<2x256xf32>
    %505 = arith.truncf %504 : vector<2x256xf32> to vector<2x256xbf16>
    %cst_85 = arith.constant dense<0.000000e+00> : vector<2x512xf32>
    %506 = tpu.matmul %505, %3, %cst_85 {dimension_numbers = #tpu.dot_dimension_numbers<[1], [0], [0], [1], [0, 0, 1, 1], [], []>} : vector<2x256xbf16>, vector<256x512xbf16>, vector<2x512xf32> -> vector<2x512xf32>
    %507 = vector.broadcast %4 : vector<1x512xf32> to vector<2x512xf32>
    %508 = arith.addf %506, %507 : vector<2x512xf32>
    %509 = vector.extract_strided_slice %508 {offsets = [0, 0], sizes = [2, 128], strides = [1, 1]} : vector<2x512xf32> to vector<2x128xf32>
    %510 = arith.negf %509 : vector<2x128xf32>
    %511 = math.exp %510 : vector<2x128xf32>
    %cst_86 = arith.constant 1.000000e+00 : f32
    %512 = vector.broadcast %cst_86 : f32 to vector<2x128xf32>
    %513 = arith.addf %512, %511 : vector<2x128xf32>
    %514 = arith.divf %512, %513 : vector<2x128xf32>
    %515 = vector.extract_strided_slice %508 {offsets = [0, 128], sizes = [2, 128], strides = [1, 1]} : vector<2x512xf32> to vector<2x128xf32>
    %516 = arith.negf %515 : vector<2x128xf32>
    %517 = math.exp %516 : vector<2x128xf32>
    %cst_87 = arith.constant 1.000000e+00 : f32
    %518 = vector.broadcast %cst_87 : f32 to vector<2x128xf32>
    %519 = arith.addf %518, %517 : vector<2x128xf32>
    %520 = arith.divf %518, %519 : vector<2x128xf32>
    %521 = vector.extract_strided_slice %508 {offsets = [0, 256], sizes = [2, 128], strides = [1, 1]} : vector<2x512xf32> to vector<2x128xf32>
    %522 = math.tanh %521 : vector<2x128xf32>
    %523 = vector.extract_strided_slice %508 {offsets = [0, 384], sizes = [2, 128], strides = [1, 1]} : vector<2x512xf32> to vector<2x128xf32>
    %524 = arith.negf %523 : vector<2x128xf32>
    %525 = math.exp %524 : vector<2x128xf32>
    %cst_88 = arith.constant 1.000000e+00 : f32
    %526 = vector.broadcast %cst_88 : f32 to vector<2x128xf32>
    %527 = arith.addf %526, %525 : vector<2x128xf32>
    %528 = arith.divf %526, %527 : vector<2x128xf32>
    %529 = arith.mulf %520, %465 : vector<2x128xf32>
    %530 = arith.mulf %514, %522 : vector<2x128xf32>
    %531 = arith.addf %529, %530 : vector<2x128xf32>
    %532 = math.tanh %531 : vector<2x128xf32>
    %533 = arith.mulf %528, %532 : vector<2x128xf32>
    %c8_i32 = arith.constant 8 : i32
    %c0_89 = arith.constant 0 : index
    %c0_90 = arith.constant 0 : index
    %534 = vector.load %arg6[%c0_89, %c0_90] : memref<128x1xf32, #tpu.memory_space<vmem>>, vector<128x1xf32>
    %cst_91 = arith.constant dense<0.000000e+00> : vector<2x1xf32>
    %535 = tpu.matmul %533, %534, %cst_91 {dimension_numbers = #tpu.dot_dimension_numbers<[1], [0], [0], [1], [0, 0, 1, 1], [], []>} : vector<2x128xf32>, vector<128x1xf32>, vector<2x1xf32> -> vector<2x1xf32>
    %c0_92 = arith.constant 0 : index
    %c0_93 = arith.constant 0 : index
    %536 = vector.load %arg7[%c0_92, %c0_93] : memref<1x1xf32, #tpu.memory_space<vmem>>, vector<1x1xf32>
    %537 = vector.broadcast %536 : vector<1x1xf32> to vector<2x1xf32>
    %538 = arith.addf %535, %537 : vector<2x1xf32>
    %c0_94 = arith.constant 0 : index
    %c0_95 = arith.constant 0 : index
    %539 = vector.load %arg8[%c0_94, %c0_95] : memref<2x1xf32, #tpu.memory_space<vmem>>, vector<2x1xf32>
    tpu.vector_store %arg8[%c0_94, %c0_95], %538 {strides = array<i32>} : memref<2x1xf32, #tpu.memory_space<vmem>>, vector<2x1xf32>,
    return
  }
}

</mosaic_0001>

<bundles_post_ra>
// kernel: tpu_custom_call.1
= control target key start
LH: loop header
LB: loop body
LE: loop exit
PB: predicated region body
PF: predicated region fallthrough
CT: control target
= control target key end

     0   :  { %s5278_s0 = inlined_call_operand.vmem [shape: f32[8,2,1], index: 0, kind: input, shape index: {}]   ;;  %s5279_s1 = inlined_call_operand.vmem [shape: f32[1,512], index: 1, kind: input, shape index: {}]   ;;  %s5280_s2 = inlined_call_operand.hbm [shape: bf16[128,512], index: 2, kind: input, shape index: {}]   ;;  %s5281_s3 = inlined_call_operand.vmem [shape: f32[1,512], index: 3, kind: input, shape index: {}]   ;;  %s5282_s4 = inlined_call_operand.hbm [shape: bf16[256,512], index: 4, kind: input, shape index: {}]   ;;  %s5283_s5 = inlined_call_operand.vmem [shape: f32[1,512], index: 5, kind: input, shape index: {}]   ;;  %s5284_s6 = inlined_call_operand.vmem [shape: f32[128,1], index: 6, kind: input, shape index: {}]   ;;  %s5285_s7 = inlined_call_operand.<no memory space> [shape: f32[1,1], index: 7, kind: input, shape index: {}]   ;;  %s5286_s8 = inlined_call_operand.vmem [shape: f32[2,1], index: 8, kind: output, shape index: {}]  }
   0x1   :  { %v13_v0 = vstv %s5285_s7 }
   0x2   :  { %14 = vst [vmem:[#allocation2] sm:$0x1] %v13_v0 }
   0x3   :  { %15 = vsyncpa [#allocation4], 0 }
   0x4   :  { %16 = vsyncpa [#allocation6], 0  ;;  %s3544_s29 = smov [#allocation3]   ;;  %s3496_s11 = scalar_lea.hbm %s5280_s2, 4096 }
   0x5   :  { %s26_s30 = sshll.u32 %s3544_s29, 4  ;;  %p3497_p0 = scmp.ne.s32.totalorder %s5280_s2, %s3496_s11  ;;  %s27_s30 = int_to_ptr.vmem [resolvable:$true] %s26_s30 }
   0x6   :  { %p3500_p1 = scmp.lt.u32.totalorder %s3496_s11, %s5280_s2 }
   0x8   :  { %p3502_p2 = pnand %p3500_p1, %p3497_p0 }
   0xa   :  { %3505 = shalt.err (!%p3502_p2)
}
   0xb   :  { %s3506_s7 = scalar_lea.vmem %s27_s30, 4096  ;;  %p3511_p4 = scmp.lt.s32.totalorder %s27_s30, %s27_s30 }
   0xc   :  { %p3507_p3 = scmp.ne.s32.totalorder %s27_s30, %s3506_s7  ;;  %p3512_p5 = scmp.lt.s32.totalorder %s3506_s7, %s3506_s7 }
   0xe   :  { %p3513_p6 = por %p3512_p5, %p3511_p4 }
  0x10   :  { %p3514_p7 = pnand %p3513_p6, %p3507_p3 }
  0x12   :  { %3517 = shalt.err (!%p3514_p7)
}
  0x13   :  { %s3545_s16 = smov 256   ;;  %s3546_s17 = smov 16  }
  0x14   :  { %32 = dma.hbm_to_vmem [thread:$0]  %s5280_s2, 4096, %s27_s30, [#allocation4], %s3545_s16, %s3545_s16, %s3546_s17  }
  0x15   :  { %s3547_s20 = smov [#allocation5]   ;;  %s3518_s24 = scalar_lea.hbm %s5282_s4, 8192 }
  0x16   :  { %s40_s21 = sshll.u32 %s3547_s20, 4  ;;  %p3519_p8 = scmp.ne.s32.totalorder %s5282_s4, %s3518_s24  ;;  %s41_s21 = int_to_ptr.vmem [resolvable:$true] %s40_s21 }
  0x17   :  { %p3522_p9 = scmp.lt.u32.totalorder %s3518_s24, %s5282_s4 }
  0x19   :  { %p3524_p10 = pnand %p3522_p9, %p3519_p8 }
  0x1b   :  { %3527 = shalt.err (!%p3524_p10)
}
  0x1c   :  { %s3528_s29 = scalar_lea.vmem %s41_s21, 8192  ;;  %p3533_p12 = scmp.lt.s32.totalorder %s41_s21, %s41_s21 }
  0x1d   :  { %p3529_p11 = scmp.ne.s32.totalorder %s41_s21, %s3528_s29  ;;  %p3534_p13 = scmp.lt.s32.totalorder %s3528_s29, %s3528_s29 }
  0x1f   :  { %p3535_p0 = por %p3534_p13, %p3533_p12 }
  0x21   :  { %p3536_p1 = pnand %p3535_p0, %p3529_p11 }
  0x23   :  { %3539 = shalt.err (!%p3536_p1)
}
  0x24   :  { %46 = dma.hbm_to_vmem [thread:$0]  %s5282_s4, 8192, %s41_s21, [#allocation6], %s3545_s16, %s3545_s16, %s3546_s17  }
  0x25   :  { %3540 = dma.done.wait [#allocation4], 4096  }
  0x26   :  { %3541 = vsyncadd [#allocation4], 4294963200 }
  0x27   :  { %3542 = dma.done.wait [#allocation6], 8192  }
  0x28   :  { %3543 = vsyncadd [#allocation6], 4294959104  ;;  %v5287_v1 = vmov 0   ;;  %v3628_v2 = vld [vmem:[#allocation3 + $0x4] ss:$16 sps:$4 sm:$0xff]   ;;  %vm3550_vm0 = vmmov 0  }
  0x29   :  { %407 = vmatprep.mubr.bf16.mxu0 %v5287_v1  ;;  %448 = vmatprep.mubr.bf16.mxu1 %v5287_v1  ;;  %5640 = vst [vmem:[#allocation9_spill] sm:$0xff] %v3628_v2  ;;  %v3630_v3 = vld [vmem:[#allocation3 + $0xc] ss:$16 sps:$4 sm:$0xff]   ;;  %v3633_v4 = vld [vmem:[#allocation3] ss:$16 sps:$4 sm:$0xff]   ;;  %vm2658_vm1 = vcmask 1024  }
  0x2a   :  { %2902 = vset.pattern.permute.xlu0 %v5287_v1  ;;  %2903 = vset.pattern.permute.xlu1 %v5287_v1  ;;  %5641 = vst [vmem:[#allocation10_spill] sm:$0xff] %v3630_v3  ;;  %v3635_v5 = vld [vmem:[#allocation3 + $0x8] ss:$16 sps:$4 sm:$0xff]   ;;  %v3638_v6 = vld [vmem:[#allocation3 + $0x24] ss:$16 sps:$4 sm:$0xff]  }
  0x2b   :  { %375 = vmatprep.subr.bf16.mxu0 %v3628_v2  ;;  %416 = vmatprep.subr.bf16.mxu1 %v3630_v3  ;;  %v3642_v7 = vld [vmem:[#allocation3 + $0x2c] ss:$16 sps:$4 sm:$0xff]   ;;  %v3644_v8 = vld [vmem:[#allocation3 + $0x20] ss:$16 sps:$4 sm:$0xff]   ;;  %v3647_v9 = vld [vmem:[#allocation3 + $0x28] ss:$16 sps:$4 sm:$0xff]  }
  0x2c   :  { %376 = vmatpush1.bf16.msra.mxu0 %v3633_v4  ;;  %417 = vmatpush1.bf16.msra.mxu1 %v3635_v5  ;;  %v3650_v10 = vld [vmem:[#allocation3 + $0x44] ss:$16 sps:$4 sm:$0xff]   ;;  %v3652_v11 = vld [vmem:[#allocation3 + $0x4c] ss:$16 sps:$4 sm:$0xff]   ;;  %v3654_v12 = vld [vmem:[#allocation3 + $0x40] ss:$16 sps:$4 sm:$0xff]  }
  0x2d   :  { %377 = vmatprep.subr.bf16.mxu0 %v3638_v6  ;;  %418 = vmatprep.subr.bf16.mxu1 %v3642_v7  ;;  %v3656_v13 = vld [vmem:[#allocation3 + $0x48] ss:$16 sps:$4 sm:$0xff]   ;;  %v3660_v14 = vld [vmem:[#allocation3 + $0x64] ss:$16 sps:$4 sm:$0xff]   ;;  %v3664_v15 = vld [vmem:[#allocation3 + $0x6c] ss:$16 sps:$4 sm:$0xff]  }
  0x2e   :  { %v3666_v16 = vld [vmem:[#allocation3 + $0x60] ss:$16 sps:$4 sm:$0xff]   ;;  %v3670_v17 = vld [vmem:[#allocation3 + $0x68] ss:$16 sps:$4 sm:$0xff]   ;;  %v3672_v18 = vld [vmem:[#allocation3 + $0x84] ss:$16 sps:$4 sm:$0xff]  }
  0x2f   :  { %v3676_v19 = vld [vmem:[#allocation3 + $0x8c] ss:$16 sps:$4 sm:$0xff]   ;;  %v3678_v20 = vld [vmem:[#allocation3 + $0x80] ss:$16 sps:$4 sm:$0xff]   ;;  %v3680_v21 = vld [vmem:[#allocation3 + $0x88] ss:$16 sps:$4 sm:$0xff]  }
  0x30   :  { %378 = vmatpush1.bf16.msra.mxu0 %v3644_v8  ;;  %419 = vmatpush1.bf16.msra.mxu1 %v3647_v9  ;;  %v3684_v22 = vld [vmem:[#allocation3 + $0xa4] ss:$16 sps:$4 sm:$0xff]   ;;  %v3688_v23 = vld [vmem:[#allocation3 + $0xac] ss:$16 sps:$4 sm:$0xff]   ;;  %v3692_v24 = vld [vmem:[#allocation3 + $0xa0] ss:$16 sps:$4 sm:$0xff]  }
  0x31   :  { %379 = vmatprep.subr.bf16.mxu0 %v3650_v10  ;;  %420 = vmatprep.subr.bf16.mxu1 %v3652_v11  ;;  %v3694_v25 = vld [vmem:[#allocation3 + $0xa8] ss:$16 sps:$4 sm:$0xff]   ;;  %v3698_v26 = vld [vmem:[#allocation3 + $0xc4] ss:$16 sps:$4 sm:$0xff]   ;;  %v3700_v27 = vld [vmem:[#allocation3 + $0xcc] ss:$16 sps:$4 sm:$0xff]  }
  0x32   :  { %v159_v28 = vld [vmem:[%s5278_s0] sm:$0x3]  ;;  %v2768_v30 = vld [vmem:[%s5278_s0 + $0x2] sm:$0x3]  ;;  %v3712_v31 = vld [vmem:[#allocation3 + $0xc8] ss:$16 sps:$4 sm:$0xff]  }
  0x33   :  { %v3705_v29 = vld [vmem:[#allocation3 + $0xc0] ss:$16 sps:$4 sm:$0xff]   ;;  %162 = vperm.xlu0 %2902, %v159_v28   ;;  %v3714_v32 = vld [vmem:[#allocation3 + $0xe4] ss:$16 sps:$4 sm:$0xff]   ;;  %v3718_v33 = vld [vmem:[#allocation3 + $0xec] ss:$16 sps:$4 sm:$0xff]  }
  0x34   :  { %380 = vmatpush1.bf16.msra.mxu0 %v3654_v12  ;;  %421 = vmatpush1.bf16.msra.mxu1 %v3656_v13  ;;  %v3720_v34 = vld [vmem:[#allocation3 + $0xe0] ss:$16 sps:$4 sm:$0xff]   ;;  %v3722_v35 = vld [vmem:[#allocation3 + $0xe8] ss:$16 sps:$4 sm:$0xff]   ;;  %v3729_v37 = vld [vmem:[#allocation5 + $0x4] ss:$16 sps:$4 sm:$0xff]  }
  0x35   :  { %381 = vmatprep.subr.bf16.mxu0 %v3660_v14  ;;  %422 = vmatprep.subr.bf16.mxu1 %v3664_v15  ;;  %v2789_v36 = vld [vmem:[%s5278_s0 + $0x8] sm:$0x3]  ;;  %v3733_v38 = vld [vmem:[#allocation5 + $0xc] ss:$16 sps:$4 sm:$0xff]   ;;  %v3738_v40 = vld [vmem:[#allocation5] ss:$16 sps:$4 sm:$0xff]  }
  0x36   :  { %v2803_v39 = vld [vmem:[%s5278_s0 + $0xc] sm:$0x3]  ;;  %v3746_v42 = vld [vmem:[#allocation5 + $0x24] ss:$16 sps:$4 sm:$0xff]   ;;  %v3750_v44 = vld [vmem:[#allocation5 + $0x20] ss:$16 sps:$4 sm:$0xff]  }
  0x37   :  { %938 = vperm.xlu0 %2902, %v2768_v30   ;;  %v3742_v41 = vld [vmem:[#allocation5 + $0x8] ss:$16 sps:$4 sm:$0xff]   ;;  %v3748_v43 = vld [vmem:[#allocation5 + $0x2c] ss:$16 sps:$4 sm:$0xff]   ;;  %v3756_v46 = vld [vmem:[#allocation5 + $0x44] ss:$16 sps:$4 sm:$0xff]  }
  0x38   :  { %382 = vmatpush1.bf16.msra.mxu0 %v3666_v16  ;;  %423 = vmatpush1.bf16.msra.mxu1 %v3670_v17  ;;  %v3752_v45 = vld [vmem:[#allocation5 + $0x28] ss:$16 sps:$4 sm:$0xff]   ;;  %v3758_v47 = vld [vmem:[#allocation5 + $0x4c] ss:$16 sps:$4 sm:$0xff]   ;;  %v3764_v48 = vld [vmem:[#allocation5 + $0x40] ss:$16 sps:$4 sm:$0xff]  }
  0x39   :  { %383 = vmatprep.subr.bf16.mxu0 %v3672_v18  ;;  %424 = vmatprep.subr.bf16.mxu1 %v3676_v19  ;;  %5642 = vst [vmem:[#allocation11_spill] sm:$0xff] %v3764_v48  ;;  %v3766_v49 = vld [vmem:[#allocation5 + $0x48] ss:$16 sps:$4 sm:$0xff]   ;;  %v3768_v50 = vld [vmem:[#allocation5 + $0x64] ss:$16 sps:$4 sm:$0xff]  }
  0x3a   :  { %5643 = vst [vmem:[#allocation12_spill] sm:$0xff] %v3766_v49  ;;  %5644 = vst [vmem:[#allocation13_spill] sm:$0xff] %v3768_v50  ;;  %v3770_v51 = vld [vmem:[#allocation5 + $0x6c] ss:$16 sps:$4 sm:$0xff]   ;;  %v3776_v52 = vld [vmem:[#allocation5 + $0x60] ss:$16 sps:$4 sm:$0xff]  }
  0x3b   :  { %1637 = vperm.xlu0 %2902, %v2789_v36   ;;  %5645 = vst [vmem:[#allocation14_spill] sm:$0xff] %v3770_v51  ;;  %5646 = vst [vmem:[#allocation15_spill] sm:$0xff] %v3776_v52  ;;  %v3778_v53 = vld [vmem:[#allocation5 + $0x68] ss:$16 sps:$4 sm:$0xff]   ;;  %v3786_v54 = vld [vmem:[#allocation5 + $0x84] ss:$16 sps:$4 sm:$0xff]  }
  0x3c   :  { %384 = vmatpush1.bf16.msra.mxu0 %v3678_v20  ;;  %425 = vmatpush1.bf16.msra.mxu1 %v3680_v21  ;;  %5647 = vst [vmem:[#allocation16_spill] sm:$0xff] %v3778_v53  ;;  %5648 = vst [vmem:[#allocation17_spill] sm:$0xff] %v3786_v54  ;;  %v3788_v55 = vld [vmem:[#allocation5 + $0x8c] ss:$16 sps:$4 sm:$0xff]   ;;  %v3792_v56 = vld [vmem:[#allocation5 + $0x80] ss:$16 sps:$4 sm:$0xff]  }
  0x3d   :  { %385 = vmatprep.subr.bf16.mxu0 %v3684_v22  ;;  %426 = vmatprep.subr.bf16.mxu1 %v3688_v23  ;;  %5649 = vst [vmem:[#allocation18_spill] sm:$0xff] %v3788_v55  ;;  %5650 = vst [vmem:[#allocation19_spill] sm:$0xff] %v3792_v56  ;;  %v3794_v57 = vld [vmem:[#allocation5 + $0x88] ss:$16 sps:$4 sm:$0xff]   ;;  %v3798_v58 = vld [vmem:[#allocation5 + $0xa4] ss:$16 sps:$4 sm:$0xff]  }
  0x3e   :  { %5651 = vst [vmem:[#allocation20_spill] sm:$0xff] %v3794_v57  ;;  %5652 = vst [vmem:[#allocation21_spill] sm:$0xff] %v3798_v58  ;;  %v3800_v59 = vld [vmem:[#allocation5 + $0xac] ss:$16 sps:$4 sm:$0xff]   ;;  %v3802_v60 = vld [vmem:[#allocation5 + $0xa0] ss:$16 sps:$4 sm:$0xff]  }
  0x3f   :  { %2103 = vperm.xlu0 %2902, %v2803_v39   ;;  %5653 = vst [vmem:[#allocation22_spill] sm:$0xff] %v3800_v59  ;;  %5654 = vst [vmem:[#allocation23_spill] sm:$0xff] %v3802_v60  ;;  %v3804_v61 = vld [vmem:[#allocation5 + $0xa8] ss:$16 sps:$4 sm:$0xff]   ;;  %v3810_v62 = vld [vmem:[#allocation5 + $0xc4] ss:$16 sps:$4 sm:$0xff]  }
  0x40   :  { %386 = vmatpush1.bf16.msra.mxu0 %v3692_v24  ;;  %427 = vmatpush1.bf16.msra.mxu1 %v3694_v25  ;;  %5655 = vst [vmem:[#allocation24_spill] sm:$0xff] %v3804_v61  ;;  %5656 = vst [vmem:[#allocation25_spill] sm:$0xff] %v3810_v62  ;;  %v3812_v63 = vld [vmem:[#allocation5 + $0xcc] ss:$16 sps:$4 sm:$0xff]   ;;  %v3814_v0 = vld [vmem:[#allocation5 + $0xc0] ss:$16 sps:$4 sm:$0xff]  }
  0x41   :  { %387 = vmatprep.subr.bf16.mxu0 %v3698_v26  ;;  %428 = vmatprep.subr.bf16.mxu1 %v3700_v27  ;;  %5657 = vst [vmem:[#allocation26_spill] sm:$0xff] %v3812_v63  ;;  %5658 = vst [vmem:[#allocation27_spill] sm:$0xff] %v3814_v0  ;;  %v3816_v28 = vld [vmem:[#allocation5 + $0xc8] ss:$16 sps:$4 sm:$0xff]   ;;  %v3822_v30 = vld [vmem:[#allocation5 + $0xe4] ss:$16 sps:$4 sm:$0xff]  }
  0x42   :  { %5659 = vst [vmem:[#allocation28_spill] sm:$0xff] %v3816_v28  ;;  %5660 = vst [vmem:[#allocation29_spill] sm:$0xff] %v3822_v30  ;;  %v3824_v36 = vld [vmem:[#allocation5 + $0xec] ss:$16 sps:$4 sm:$0xff]   ;;  %v3826_v39 = vld [vmem:[#allocation5 + $0xe0] ss:$16 sps:$4 sm:$0xff]  }
  0x43   :  { %5661 = vst [vmem:[#allocation30_spill] sm:$0xff] %v3824_v36  ;;  %5662 = vst [vmem:[#allocation31_spill] sm:$0xff] %v3826_v39 }
  0x44   :  { %388 = vmatpush1.bf16.msra.mxu0 %v3705_v29  ;;  %429 = vmatpush1.bf16.msra.mxu1 %v3712_v31 }
  0x45   :  { %389 = vmatprep.subr.bf16.mxu0 %v3714_v32  ;;  %430 = vmatprep.subr.bf16.mxu1 %v3718_v33 }
  0x48   :  { %390 = vmatpush1.bf16.msra.mxu0 %v3720_v34  ;;  %431 = vmatpush1.bf16.msra.mxu1 %v3722_v35 }
  0x49   :  { %828 = vmatprep.subr.bf16.mxu0 %v3729_v37  ;;  %869 = vmatprep.subr.bf16.mxu1 %v3733_v38 }
  0x4b   :  { %408 = vmatmul.mubr.bf16.vlgmr.msra.gmra.mrb[0].mxu0 %v5287_v1  ;;  %449 = vmatmul.mubr.bf16.vlgmr.msra.gmra.mrb[0].mxu1 %v5287_v1  ;;  %v3828_v1 = vld [vmem:[#allocation5 + $0xe8] ss:$16 sps:$4 sm:$0xff]  }
  0x4c   :  { %829 = vmatpush1.bf16.msra.mxu0 %v3738_v40  ;;  %870 = vmatpush1.bf16.msra.mxu1 %v3742_v41  ;;  %5663 = vst [vmem:[#allocation32_spill] sm:$0xff] %v3828_v1 }
  0x4d   :  { %830 = vmatprep.subr.bf16.mxu0 %v3746_v42  ;;  %871 = vmatprep.subr.bf16.mxu1 %v3748_v43 }
  0x50   :  { %831 = vmatpush1.bf16.msra.mxu0 %v3750_v44  ;;  %872 = vmatpush1.bf16.msra.mxu1 %v3752_v45 }
  0x51   :  { %832 = vmatprep.subr.bf16.mxu0 %v3756_v46  ;;  %873 = vmatprep.subr.bf16.mxu1 %v3758_v47 }
  0x54   :  { %833 = vmatpush1.bf16.msra.mxu0 %v3764_v48  ;;  %874 = vmatpush1.bf16.msra.mxu1 %v3766_v49 }
  0x55   :  { %834 = vmatprep.subr.bf16.mxu0 %v3768_v50  ;;  %875 = vmatprep.subr.bf16.mxu1 %v3770_v51 }
  0x58   :  { %835 = vmatpush1.bf16.msra.mxu0 %v3776_v52  ;;  %876 = vmatpush1.bf16.msra.mxu1 %v3778_v53 }
  0x59   :  { %836 = vmatprep.subr.bf16.mxu0 %v3786_v54  ;;  %877 = vmatprep.subr.bf16.mxu1 %v3788_v55 }
  0x5c   :  { %837 = vmatpush1.bf16.msra.mxu0 %v3792_v56  ;;  %878 = vmatpush1.bf16.msra.mxu1 %v3794_v57 }
  0x5d   :  { %838 = vmatprep.subr.bf16.mxu0 %v3798_v58  ;;  %879 = vmatprep.subr.bf16.mxu1 %v3800_v59 }
  0x60   :  { %839 = vmatpush1.bf16.msra.mxu0 %v3802_v60  ;;  %880 = vmatpush1.bf16.msra.mxu1 %v3804_v61  ;;  %v3902_v61 = vld [vmem:[#allocation5 + $0x1c4] ss:$16 sps:$4 sm:$0xff]   ;;  %v3918_v60 = vld [vmem:[#allocation5 + $0x1ec] ss:$16 sps:$4 sm:$0xff]  }
  0x61   :  { %840 = vmatprep.subr.bf16.mxu0 %v3810_v62  ;;  %881 = vmatprep.subr.bf16.mxu1 %v3812_v63  ;;  %v3834_v63 = vld [vmem:[#allocation5 + $0x104] ss:$16 sps:$4 sm:$0xff]   ;;  %v3840_v62 = vld [vmem:[#allocation5 + $0x108] ss:$16 sps:$4 sm:$0xff]   ;;  %5688 = vst [vmem:[#allocation57_spill] sm:$0xff] %v3902_v61  ;;  %5693 = vst [vmem:[#allocation62_spill] sm:$0xff] %v3918_v60 }
  0x62   :  { %5664 = vst [vmem:[#allocation33_spill] sm:$0xff] %v3834_v63  ;;  %5667 = vst [vmem:[#allocation36_spill] sm:$0xff] %v3840_v62 }
  0x64   :  { %841 = vmatpush1.bf16.msra.mxu0 %v3814_v0  ;;  %882 = vmatpush1.bf16.msra.mxu1 %v3816_v28  ;;  %v3836_v0 = vld [vmem:[#allocation5 + $0x10c] ss:$16 sps:$4 sm:$0xff]   ;;  %v3838_v28 = vld [vmem:[#allocation5 + $0x100] ss:$16 sps:$4 sm:$0xff]  }
  0x65   :  { %842 = vmatprep.subr.bf16.mxu0 %v3822_v30  ;;  %883 = vmatprep.subr.bf16.mxu1 %v3824_v36  ;;  %5665 = vst [vmem:[#allocation34_spill] sm:$0xff] %v3836_v0  ;;  %5666 = vst [vmem:[#allocation35_spill] sm:$0xff] %v3838_v28  ;;  %v3846_v36 = vld [vmem:[#allocation5 + $0x124] ss:$16 sps:$4 sm:$0xff]   ;;  %v3852_v30 = vld [vmem:[#allocation5 + $0x128] ss:$16 sps:$4 sm:$0xff]  }
  0x66   :  { %5668 = vst [vmem:[#allocation37_spill] sm:$0xff] %v3846_v36  ;;  %5671 = vst [vmem:[#allocation40_spill] sm:$0xff] %v3852_v30 }
  0x68   :  { %843 = vmatpush1.bf16.msra.mxu0 %v3826_v39  ;;  %884 = vmatpush1.bf16.msra.mxu1 %v3828_v1  ;;  %v3848_v39 = vld [vmem:[#allocation5 + $0x12c] ss:$16 sps:$4 sm:$0xff]   ;;  %v3850_v1 = vld [vmem:[#allocation5 + $0x120] ss:$16 sps:$4 sm:$0xff]  }
  0x69   :  { %844 = vmatprep.subr.bf16.mxu0 %v3834_v63  ;;  %885 = vmatprep.subr.bf16.mxu1 %v3836_v0  ;;  %5669 = vst [vmem:[#allocation38_spill] sm:$0xff] %v3848_v39  ;;  %5670 = vst [vmem:[#allocation39_spill] sm:$0xff] %v3850_v1  ;;  %v3858_v0 = vld [vmem:[#allocation5 + $0x144] ss:$16 sps:$4 sm:$0xff]   ;;  %v3864_v63 = vld [vmem:[#allocation5 + $0x148] ss:$16 sps:$4 sm:$0xff]  }
  0x6a   :  { %5672 = vst [vmem:[#allocation41_spill] sm:$0xff] %v3858_v0  ;;  %5675 = vst [vmem:[#allocation44_spill] sm:$0xff] %v3864_v63 }
  0x6c   :  { %845 = vmatpush1.bf16.msra.mxu0 %v3838_v28  ;;  %886 = vmatpush1.bf16.msra.mxu1 %v3840_v62  ;;  %v3860_v28 = vld [vmem:[#allocation5 + $0x14c] ss:$16 sps:$4 sm:$0xff]   ;;  %v3862_v62 = vld [vmem:[#allocation5 + $0x140] ss:$16 sps:$4 sm:$0xff]  }
  0x6d   :  { %846 = vmatprep.subr.bf16.mxu0 %v3846_v36  ;;  %887 = vmatprep.subr.bf16.mxu1 %v3848_v39  ;;  %5673 = vst [vmem:[#allocation42_spill] sm:$0xff] %v3860_v28  ;;  %5674 = vst [vmem:[#allocation43_spill] sm:$0xff] %v3862_v62  ;;  %v3870_v39 = vld [vmem:[#allocation5 + $0x164] ss:$16 sps:$4 sm:$0xff]   ;;  %v3876_v36 = vld [vmem:[#allocation5 + $0x168] ss:$16 sps:$4 sm:$0xff]  }
  0x6e   :  { %5676 = vst [vmem:[#allocation45_spill] sm:$0xff] %v3870_v39  ;;  %5679 = vst [vmem:[#allocation48_spill] sm:$0xff] %v3876_v36 }
  0x70   :  { %847 = vmatpush1.bf16.msra.mxu0 %v3850_v1  ;;  %888 = vmatpush1.bf16.msra.mxu1 %v3852_v30  ;;  %v3872_v1 = vld [vmem:[#allocation5 + $0x16c] ss:$16 sps:$4 sm:$0xff]   ;;  %v3874_v30 = vld [vmem:[#allocation5 + $0x160] ss:$16 sps:$4 sm:$0xff]  }
  0x71   :  { %848 = vmatprep.subr.bf16.mxu0 %v3858_v0  ;;  %889 = vmatprep.subr.bf16.mxu1 %v3860_v28  ;;  %5677 = vst [vmem:[#allocation46_spill] sm:$0xff] %v3872_v1  ;;  %5678 = vst [vmem:[#allocation47_spill] sm:$0xff] %v3874_v30  ;;  %v3882_v28 = vld [vmem:[#allocation5 + $0x184] ss:$16 sps:$4 sm:$0xff]   ;;  %v3888_v0 = vld [vmem:[#allocation5 + $0x188] ss:$16 sps:$4 sm:$0xff]  }
  0x72   :  { %5680 = vst [vmem:[#allocation49_spill] sm:$0xff] %v3882_v28  ;;  %5683 = vst [vmem:[#allocation52_spill] sm:$0xff] %v3888_v0 }
  0x74   :  { %849 = vmatpush1.bf16.msra.mxu0 %v3862_v62  ;;  %890 = vmatpush1.bf16.msra.mxu1 %v3864_v63  ;;  %v3884_v62 = vld [vmem:[#allocation5 + $0x18c] ss:$16 sps:$4 sm:$0xff]   ;;  %v3886_v63 = vld [vmem:[#allocation5 + $0x180] ss:$16 sps:$4 sm:$0xff]  }
  0x75   :  { %850 = vmatprep.subr.bf16.mxu0 %v3870_v39  ;;  %891 = vmatprep.subr.bf16.mxu1 %v3872_v1  ;;  %5681 = vst [vmem:[#allocation50_spill] sm:$0xff] %v3884_v62  ;;  %5682 = vst [vmem:[#allocation51_spill] sm:$0xff] %v3886_v63  ;;  %v3893_v39 = vld [vmem:[#allocation5 + $0x1a4] ss:$16 sps:$4 sm:$0xff]   ;;  %v3895_v1 = vld [vmem:[#allocation5 + $0x1ac] ss:$16 sps:$4 sm:$0xff]  }
  0x76   :  { %5684 = vst [vmem:[#allocation53_spill] sm:$0xff] %v3893_v39  ;;  %5685 = vst [vmem:[#allocation54_spill] sm:$0xff] %v3895_v1 }
  0x78   :  { %851 = vmatpush1.bf16.msra.mxu0 %v3874_v30  ;;  %892 = vmatpush1.bf16.msra.mxu1 %v3876_v36  ;;  %v3897_v30 = vld [vmem:[#allocation5 + $0x1a0] ss:$16 sps:$4 sm:$0xff]   ;;  %v3900_v36 = vld [vmem:[#allocation5 + $0x1a8] ss:$16 sps:$4 sm:$0xff]  }
  0x79   :  { %852 = vmatprep.subr.bf16.mxu0 %v3882_v28  ;;  %893 = vmatprep.subr.bf16.mxu1 %v3884_v62  ;;  %5686 = vst [vmem:[#allocation55_spill] sm:$0xff] %v3897_v30  ;;  %5687 = vst [vmem:[#allocation56_spill] sm:$0xff] %v3900_v36  ;;  %v3906_v28 = vld [vmem:[#allocation5 + $0x1cc] ss:$16 sps:$4 sm:$0xff]   ;;  %v3913_v62 = vld [vmem:[#allocation5 + $0x1c8] ss:$16 sps:$4 sm:$0xff]  }
  0x7a   :  { %5689 = vst [vmem:[#allocation58_spill] sm:$0xff] %v3906_v28  ;;  %5691 = vst [vmem:[#allocation60_spill] sm:$0xff] %v3913_v62 }
  0x7c   :  { %853 = vmatpush1.bf16.msra.mxu0 %v3886_v63  ;;  %894 = vmatpush1.bf16.msra.mxu1 %v3888_v0  ;;  %v3909_v63 = vld [vmem:[#allocation5 + $0x1c0] ss:$16 sps:$4 sm:$0xff]   ;;  %v3915_v0 = vld [vmem:[#allocation5 + $0x1e4] ss:$16 sps:$4 sm:$0xff]  }
  0x7d   :  { %854 = vmatprep.subr.bf16.mxu0 %v3893_v39  ;;  %895 = vmatprep.subr.bf16.mxu1 %v3895_v1  ;;  %5690 = vst [vmem:[#allocation59_spill] sm:$0xff] %v3909_v63  ;;  %5692 = vst [vmem:[#allocation61_spill] sm:$0xff] %v3915_v0  ;;  %v5355_v39 = vmov 0.0|0.0  }
  0x7e   :  { %860 = vmatprep.mubr.bf16.mxu0 %v5355_v39  ;;  %901 = vmatprep.mubr.bf16.mxu1 %v5355_v39  ;;  %v166_v39 = vlaneseq }
  0x80   :  { %855 = vmatpush1.bf16.msra.mxu0 %v3897_v30  ;;  %896 = vmatpush1.bf16.msra.mxu1 %v3900_v36  ;;  %v3923_v30 = vld [vmem:[#allocation5 + $0x1e0] ss:$16 sps:$4 sm:$0xff]  }
  0x81   :  { %856 = vmatprep.subr.bf16.mxu0 %v3902_v61  ;;  %897 = vmatprep.subr.bf16.mxu1 %v3906_v28  ;;  %5694 = vst [vmem:[#allocation63_spill] sm:$0xff] %v3923_v30  ;;  %v3927_v61 = vld [vmem:[#allocation5 + $0x1e8] ss:$16 sps:$4 sm:$0xff]  }
  0x82   :  { %5695 = vst [vmem:[#allocation64_spill] sm:$0xff] %v3927_v61 }
  0x84   :  { %857 = vmatpush1.bf16.msra.mxu0 %v3909_v63  ;;  %898 = vmatpush1.bf16.msra.mxu1 %v3913_v62  ;;  %v167_v63 = vshrl.u32 %v166_v39, 7 }
  0x85   :  { %858 = vmatprep.subr.bf16.mxu0 %v3915_v0  ;;  %899 = vmatprep.subr.bf16.mxu1 %v3918_v60  ;;  %v60_v0 = vld [vmem:[%s5279_s1] sm:$0xf] }
  0x86   :  { %v3934_v28 = vsub.s32 0, %v167_v63  ;;  %v3936_v36 = vsub.s32 1, %v167_v63  ;;  %v3950_v39 = vsub.s32 3, %v167_v63  ;;  %v3963_v57 = vsub.s32 2, %v167_v63 }
  0x88   :  { %859 = vmatpush1.bf16.msra.mxu0 %v3923_v30  ;;  %900 = vmatpush1.bf16.msra.mxu1 %v3927_v61  ;;  %5696 = vst [vmem:[#allocation65_spill] sm:$0xff] %v3934_v28  ;;  %5697 = vst [vmem:[#allocation66_spill] sm:$0xff] %v3936_v36  ;;  %v3942_v60 = vrot.slane %v60_v0, %v3934_v28  ;;  %v3945_v30 = vrot.slane %v60_v0, %v3936_v36 }
  0x89   :  { %949 = vmatprep.subr.bf16.mxu0 %v3628_v2  ;;  %990 = vmatprep.subr.bf16.mxu1 %v3630_v3  ;;  %v93_v3 = vld [vmem:[%s5281_s3] sm:$0xf]  ;;  %5700 = vst [vmem:[#allocation69_spill] sm:$0xff] %v3950_v39  ;;  %v3961_v58 = vrot.slane %v60_v0, %v3950_v39 }
  0x8a   :  { %5698 = vst [vmem:[#allocation67_spill] sm:$0xff] %v3942_v60  ;;  %5699 = vst [vmem:[#allocation68_spill] sm:$0xff] %v3945_v30  ;;  %v3954_v62 = vrot.slane %v93_v3, %v3934_v28  ;;  %v3958_v59 = vrot.slane %v93_v3, %v3936_v36  ;;  %v3969_v28 = vrot.slane %v93_v3, %v3950_v39 }
  0x8b   :  { %5703 = vst [vmem:[#allocation72_spill] sm:$0xff] %v3961_v58  ;;  %v3977_v39 = vrot.slane %v93_v3, %v3963_v57 }
  0x8c   :  { %5701 = vst [vmem:[#allocation70_spill] sm:$0xff] %v3954_v62  ;;  %5702 = vst [vmem:[#allocation71_spill] sm:$0xff] %v3958_v59 }
  0xb2   :  { %v163_v2 = vpop.permute.xlu0 %162 }
  0xb3   :  { %v186_v61 = vmul.f32 %v3942_v60, %v163_v2  ;;  %v187_v1 = vmul.f32 %v3945_v30, %v163_v2  ;;  %v189_v60 = vmul.f32 %v3961_v58, %v163_v2  ;;  %v3972_v30 = vrot.slane %v60_v0, %v3963_v57 }
  0xb5   :  { %v211_v56 = vadd.f32 %v3954_v62, %v186_v61  ;;  %v212_v55 = vadd.f32 %v3958_v59, %v187_v1  ;;  %v214_v59 = vadd.f32 %v3969_v28, %v189_v60  ;;  %v188_v58 = vmul.f32 %v3972_v30, %v163_v2 }
 0x11e   :  { %v409_v54 = vpop.f32.mrb[0].mxu0  ;;  %v450_v53 = vpop.f32.mrb[0].mxu1 }
 0x11f   :  { %v457_v36 = vadd.f32 %v409_v54, %v211_v56  ;;  %v411_v52 = vpop.f32.mrb[1].mxu0  ;;  %v452_v51 = vpop.f32.mrb[1].mxu1  ;;  %v213_v54 = vadd.f32 %v3977_v39, %v188_v58 }
 0x120   :  { %v458_v50 = vadd.f32 %v411_v52, %v212_v55  ;;  %v413_v63 = vpop.f32.mrb[2].mxu0  ;;  %v454_v49 = vpop.f32.mrb[2].mxu1  ;;  %v460_v0 = vadd.f32 %v452_v51, %v214_v59 }
 0x121   :  { %v2698_v48 = vmul.f32 -1.442695, %v457_v36  ;;  %v414_v61 = vpop.f32.mrb[3].mxu0  ;;  %v455_v62 = vpop.f32.mrb[3].mxu1  ;;  %v459_v52 = vadd.f32 %v450_v53, %v213_v54  ;;  %v5730_v54 = vld [vmem:[#allocation36_spill] sm:$0xff] }
 0x122   :  { %v2699_v1 = vmul.f32 -1.442695, %v458_v50  ;;  %v2700_v56 = vmul.f32 -1.442695, %v460_v0  ;;  %v5704_v0 = vmov 0  }
 0x123   :  { %3048 = vpow2.f32 %v2698_v48 }
 0x124   :  { %3050 = vpow2.f32 %v2699_v1 }
 0x125   :  { %3052 = vpow2.f32 %v2700_v56  ;;  %v5731_v56 = vld [vmem:[#allocation37_spill] sm:$0xff] }
 0x126   :  { %3054 = vtanh.f32 %v459_v52  ;;  %v5732_v52 = vld [vmem:[#allocation38_spill] sm:$0xff] }
 0x12d   :  { %v3049_v55 = vpop.eup %3048 }
 0x12e   :  { %v3051_v49 = vpop.eup %3050  ;;  %v464_v36 = vadd.f32 1.0, %v3049_v55  ;;  %v5733_v55 = vld [vmem:[#allocation39_spill] sm:$0xff] }
 0x12f   :  { %v470_v50 = vadd.f32 1.0, %v3051_v49  ;;  %v3053_v48 = vpop.eup %3052  ;;  %v5734_v49 = vld [vmem:[#allocation40_spill] sm:$0xff] }
 0x130   :  { %3056 = vrcp.f32 %v464_v36  ;;  %v3055_v60 = vpop.eup %3054  ;;  %v477_v63 = vadd.f32 1.0, %v3053_v48  ;;  %v5735_v36 = vld [vmem:[#allocation41_spill] sm:$0xff]  ;;  %v5737_v48 = vld [vmem:[#allocation43_spill] sm:$0xff] }
 0x131   :  { %3058 = vrcp.f32 %v470_v50  ;;  %v5736_v50 = vld [vmem:[#allocation42_spill] sm:$0xff] }
 0x132   :  { %3060 = vrcp.f32 %v477_v63  ;;  %v5742_v63 = vld [vmem:[#allocation48_spill] sm:$0xff] }
 0x13a   :  { %v3057_v2 = vpop.eup %3056 }
 0x13b   :  { %v3059_v62 = vpop.eup %3058  ;;  %v481_v3 = vmul.f32 %v3057_v2, %v3055_v60  ;;  %v5738_v60 = vld [vmem:[#allocation44_spill] sm:$0xff]  ;;  %v5739_v2 = vld [vmem:[#allocation45_spill] sm:$0xff] }
 0x13c   :  { %v480_v61 = vmul.f32 0.0, %v3059_v62  ;;  %v3061_v53 = vpop.eup %3060  ;;  %v5740_v62 = vld [vmem:[#allocation46_spill] sm:$0xff] }
 0x13e   :  { %v3980_v51 = vadd.f32 %v481_v3, %v480_v61  ;;  %v5741_v3 = vld [vmem:[#allocation47_spill] sm:$0xff]  ;;  %v5743_v61 = vld [vmem:[#allocation49_spill] sm:$0xff] }
 0x140   :  { %3062 = vtanh.f32 %v3980_v51 }
 0x14a   :  { %v3063_v58 = vpop.eup %3062 }
 0x14b   :  { %v484_v59 = vmul.f32 %v3063_v58, %v3061_v53  ;;  %v5744_v53 = vld [vmem:[#allocation50_spill] sm:$0xff]  ;;  %v5745_v58 = vld [vmem:[#allocation51_spill] sm:$0xff] }
 0x14d   :  { %v485_v1 = vpack.c.bf16 %v484_v59, %v484_v59  ;;  %v5746_v59 = vld [vmem:[#allocation52_spill] sm:$0xff] }
 0x14f   :  { %861 = vmatmul.mubr.bf16.vlgmr.msra.gmra.mrb[4].mxu0 %v485_v1  ;;  %902 = vmatmul.mubr.bf16.vlgmr.msra.gmra.mrb[4].mxu1 %v485_v1 }
 0x150   :  { %950 = vmatpush1.bf16.msra.mxu0 %v3633_v4  ;;  %991 = vmatpush1.bf16.msra.mxu1 %v3635_v5  ;;  %v5705_v4 = vld [vmem:[#allocation11_spill] sm:$0xff]  ;;  %v5706_v5 = vld [vmem:[#allocation12_spill] sm:$0xff] }
 0x151   :  { %951 = vmatprep.subr.bf16.mxu0 %v3638_v6  ;;  %992 = vmatprep.subr.bf16.mxu1 %v3642_v7  ;;  %v5707_v6 = vld [vmem:[#allocation13_spill] sm:$0xff]  ;;  %v5708_v7 = vld [vmem:[#allocation14_spill] sm:$0xff] }
 0x152   :  { %981 = vmatprep.mubr.bf16.mxu0 %v5704_v0  ;;  %1022 = vmatprep.mubr.bf16.mxu1 %v5704_v0 }
 0x154   :  { %952 = vmatpush1.bf16.msra.mxu0 %v3644_v8  ;;  %993 = vmatpush1.bf16.msra.mxu1 %v3647_v9  ;;  %v5709_v8 = vld [vmem:[#allocation15_spill] sm:$0xff]  ;;  %v5710_v9 = vld [vmem:[#allocation16_spill] sm:$0xff] }
 0x155   :  { %953 = vmatprep.subr.bf16.mxu0 %v3650_v10  ;;  %994 = vmatprep.subr.bf16.mxu1 %v3652_v11  ;;  %v5711_v10 = vld [vmem:[#allocation17_spill] sm:$0xff]  ;;  %v5712_v11 = vld [vmem:[#allocation18_spill] sm:$0xff] }
 0x158   :  { %954 = vmatpush1.bf16.msra.mxu0 %v3654_v12  ;;  %995 = vmatpush1.bf16.msra.mxu1 %v3656_v13  ;;  %v5713_v12 = vld [vmem:[#allocation19_spill] sm:$0xff]  ;;  %v5714_v13 = vld [vmem:[#allocation20_spill] sm:$0xff] }
 0x159   :  { %955 = vmatprep.subr.bf16.mxu0 %v3660_v14  ;;  %996 = vmatprep.subr.bf16.mxu1 %v3664_v15  ;;  %v5715_v14 = vld [vmem:[#allocation21_spill] sm:$0xff]  ;;  %v5716_v15 = vld [vmem:[#allocation22_spill] sm:$0xff] }
 0x15c   :  { %956 = vmatpush1.bf16.msra.mxu0 %v3666_v16  ;;  %997 = vmatpush1.bf16.msra.mxu1 %v3670_v17  ;;  %v5717_v16 = vld [vmem:[#allocation23_spill] sm:$0xff]  ;;  %v5718_v17 = vld [vmem:[#allocation24_spill] sm:$0xff] }
 0x15d   :  { %957 = vmatprep.subr.bf16.mxu0 %v3672_v18  ;;  %998 = vmatprep.subr.bf16.mxu1 %v3676_v19  ;;  %v5719_v18 = vld [vmem:[#allocation25_spill] sm:$0xff]  ;;  %v5720_v19 = vld [vmem:[#allocation26_spill] sm:$0xff] }
 0x160   :  { %958 = vmatpush1.bf16.msra.mxu0 %v3678_v20  ;;  %999 = vmatpush1.bf16.msra.mxu1 %v3680_v21  ;;  %v5721_v20 = vld [vmem:[#allocation27_spill] sm:$0xff]  ;;  %v5722_v21 = vld [vmem:[#allocation28_spill] sm:$0xff] }
 0x161   :  { %959 = vmatprep.subr.bf16.mxu0 %v3684_v22  ;;  %1000 = vmatprep.subr.bf16.mxu1 %v3688_v23  ;;  %v5723_v22 = vld [vmem:[#allocation29_spill] sm:$0xff]  ;;  %v5724_v23 = vld [vmem:[#allocation30_spill] sm:$0xff] }
 0x164   :  { %960 = vmatpush1.bf16.msra.mxu0 %v3692_v24  ;;  %1001 = vmatpush1.bf16.msra.mxu1 %v3694_v25  ;;  %v5725_v24 = vld [vmem:[#allocation31_spill] sm:$0xff]  ;;  %v5726_v25 = vld [vmem:[#allocation32_spill] sm:$0xff] }
 0x165   :  { %961 = vmatprep.subr.bf16.mxu0 %v3698_v26  ;;  %1002 = vmatprep.subr.bf16.mxu1 %v3700_v27  ;;  %v5727_v26 = vld [vmem:[#allocation33_spill] sm:$0xff]  ;;  %v5728_v27 = vld [vmem:[#allocation34_spill] sm:$0xff] }
 0x168   :  { %962 = vmatpush1.bf16.msra.mxu0 %v3705_v29  ;;  %1003 = vmatpush1.bf16.msra.mxu1 %v3712_v31  ;;  %v5729_v29 = vld [vmem:[#allocation35_spill] sm:$0xff] }
 0x169   :  { %963 = vmatprep.subr.bf16.mxu0 %v3714_v32  ;;  %1004 = vmatprep.subr.bf16.mxu1 %v3718_v33 }
 0x16c   :  { %964 = vmatpush1.bf16.msra.mxu0 %v3720_v34  ;;  %1005 = vmatpush1.bf16.msra.mxu1 %v3722_v35 }
 0x16d   :  { %1061 = vmatprep.subr.bf16.mxu0 %v3729_v37  ;;  %1102 = vmatprep.subr.bf16.mxu1 %v3733_v38 }
 0x16f   :  { %982 = vmatmul.mubr.bf16.vlgmr.msra.gmra.mrb[8].mxu0 %v485_v1  ;;  %1023 = vmatmul.mubr.bf16.vlgmr.msra.gmra.mrb[8].mxu1 %v485_v1  ;;  %v5747_v1 = vld [vmem:[#allocation53_spill] sm:$0xff] }
 0x170   :  { %1062 = vmatpush1.bf16.msra.mxu0 %v3738_v40  ;;  %1103 = vmatpush1.bf16.msra.mxu1 %v3742_v41 }
 0x171   :  { %1063 = vmatprep.subr.bf16.mxu0 %v3746_v42  ;;  %1104 = vmatprep.subr.bf16.mxu1 %v3748_v43 }
 0x174   :  { %1064 = vmatpush1.bf16.msra.mxu0 %v3750_v44  ;;  %1105 = vmatpush1.bf16.msra.mxu1 %v3752_v45 }
 0x175   :  { %1065 = vmatprep.subr.bf16.mxu0 %v3756_v46  ;;  %1106 = vmatprep.subr.bf16.mxu1 %v3758_v47 }
 0x178   :  { %1066 = vmatpush1.bf16.msra.mxu0 %v5705_v4  ;;  %1107 = vmatpush1.bf16.msra.mxu1 %v5706_v5 }
 0x179   :  { %1067 = vmatprep.subr.bf16.mxu0 %v5707_v6  ;;  %1108 = vmatprep.subr.bf16.mxu1 %v5708_v7 }
 0x17c   :  { %1068 = vmatpush1.bf16.msra.mxu0 %v5709_v8  ;;  %1109 = vmatpush1.bf16.msra.mxu1 %v5710_v9 }
 0x17d   :  { %1069 = vmatprep.subr.bf16.mxu0 %v5711_v10  ;;  %1110 = vmatprep.subr.bf16.mxu1 %v5712_v11 }
 0x180   :  { %1070 = vmatpush1.bf16.msra.mxu0 %v5713_v12  ;;  %1111 = vmatpush1.bf16.msra.mxu1 %v5714_v13 }
 0x181   :  { %1071 = vmatprep.subr.bf16.mxu0 %v5715_v14  ;;  %1112 = vmatprep.subr.bf16.mxu1 %v5716_v15 }
 0x184   :  { %1072 = vmatpush1.bf16.msra.mxu0 %v5717_v16  ;;  %1113 = vmatpush1.bf16.msra.mxu1 %v5718_v17 }
 0x185   :  { %1073 = vmatprep.subr.bf16.mxu0 %v5719_v18  ;;  %1114 = vmatprep.subr.bf16.mxu1 %v5720_v19 }
 0x188   :  { %1074 = vmatpush1.bf16.msra.mxu0 %v5721_v20  ;;  %1115 = vmatpush1.bf16.msra.mxu1 %v5722_v21 }
 0x189   :  { %1075 = vmatprep.subr.bf16.mxu0 %v5723_v22  ;;  %1116 = vmatprep.subr.bf16.mxu1 %v5724_v23 }
 0x18c   :  { %1076 = vmatpush1.bf16.msra.mxu0 %v5725_v24  ;;  %1117 = vmatpush1.bf16.msra.mxu1 %v5726_v25 }
 0x18d   :  { %1077 = vmatprep.subr.bf16.mxu0 %v5727_v26  ;;  %1118 = vmatprep.subr.bf16.mxu1 %v5728_v27 }
 0x190   :  { %1078 = vmatpush1.bf16.msra.mxu0 %v5729_v29  ;;  %1119 = vmatpush1.bf16.msra.mxu1 %v5730_v54 }
 0x191   :  { %1079 = vmatprep.subr.bf16.mxu0 %v5731_v56  ;;  %1120 = vmatprep.subr.bf16.mxu1 %v5732_v52 }
 0x194   :  { %1080 = vmatpush1.bf16.msra.mxu0 %v5733_v55  ;;  %1121 = vmatpush1.bf16.msra.mxu1 %v5734_v49 }
 0x195   :  { %1081 = vmatprep.subr.bf16.mxu0 %v5735_v36  ;;  %1122 = vmatprep.subr.bf16.mxu1 %v5736_v50 }
 0x198   :  { %1082 = vmatpush1.bf16.msra.mxu0 %v5737_v48  ;;  %1123 = vmatpush1.bf16.msra.mxu1 %v5738_v60  ;;  %v5748_v48 = vld [vmem:[#allocation54_spill] sm:$0xff]  ;;  %v5749_v60 = vld [vmem:[#allocation55_spill] sm:$0xff] }
 0x199   :  { %1083 = vmatprep.subr.bf16.mxu0 %v5739_v2  ;;  %1124 = vmatprep.subr.bf16.mxu1 %v5740_v62  ;;  %v5750_v2 = vld [vmem:[#allocation56_spill] sm:$0xff]  ;;  %v5751_v62 = vld [vmem:[#allocation57_spill] sm:$0xff] }
 0x19c   :  { %1084 = vmatpush1.bf16.msra.mxu0 %v5741_v3  ;;  %1125 = vmatpush1.bf16.msra.mxu1 %v5742_v63  ;;  %v5752_v3 = vld [vmem:[#allocation58_spill] sm:$0xff]  ;;  %v5753_v63 = vld [vmem:[#allocation59_spill] sm:$0xff] }
 0x19d   :  { %1085 = vmatprep.subr.bf16.mxu0 %v5743_v61  ;;  %1126 = vmatprep.subr.bf16.mxu1 %v5744_v53  ;;  %v5754_v61 = vld [vmem:[#allocation60_spill] sm:$0xff]  ;;  %v5755_v53 = vld [vmem:[#allocation61_spill] sm:$0xff] }
 0x1a0   :  { %1086 = vmatpush1.bf16.msra.mxu0 %v5745_v58  ;;  %1127 = vmatpush1.bf16.msra.mxu1 %v5746_v59  ;;  %v5756_v58 = vld [vmem:[#allocation62_spill] sm:$0xff]  ;;  %v5757_v59 = vld [vmem:[#allocation63_spill] sm:$0xff] }
 0x1a1   :  { %1087 = vmatprep.subr.bf16.mxu0 %v5747_v1  ;;  %1128 = vmatprep.subr.bf16.mxu1 %v5748_v48  ;;  %v5758_v1 = vld [vmem:[#allocation64_spill] sm:$0xff]  ;;  %v5759_v48 = vld [vmem:[#allocation9_spill] sm:$0xff] }
 0x1a4   :  { %1088 = vmatpush1.bf16.msra.mxu0 %v5749_v60  ;;  %1129 = vmatpush1.bf16.msra.mxu1 %v5750_v2  ;;  %v5760_v60 = vld [vmem:[#allocation10_spill] sm:$0xff] }
 0x1a5   :  { %1089 = vmatprep.subr.bf16.mxu0 %v5751_v62  ;;  %1130 = vmatprep.subr.bf16.mxu1 %v5752_v3  ;;  %v2775_v3 = vld [vmem:[%s5278_s0 + $0x4] sm:$0x3] }
 0x1a6   :  { %1171 = vperm.xlu1 %2903, %v2775_v3  }
 0x1a8   :  { %1090 = vmatpush1.bf16.msra.mxu0 %v5753_v63  ;;  %1131 = vmatpush1.bf16.msra.mxu1 %v5754_v61  ;;  %v2782_v61 = vld [vmem:[%s5278_s0 + $0x6] sm:$0x3] }
 0x1a9   :  { %1091 = vmatprep.subr.bf16.mxu0 %v5755_v53  ;;  %1132 = vmatprep.subr.bf16.mxu1 %v5756_v58  ;;  %v5763_v58 = vld [vmem:[#allocation66_spill] sm:$0xff] }
 0x1aa   :  { %1404 = vperm.xlu1 %2903, %v2782_v61  }
 0x1ac   :  { %1092 = vmatpush1.bf16.msra.mxu0 %v5757_v59  ;;  %1133 = vmatpush1.bf16.msra.mxu1 %v5758_v1  ;;  %v2796_v59 = vld [vmem:[%s5278_s0 + $0xa] sm:$0x3]  ;;  %v5761_v1 = vld [vmem:[#allocation65_spill] sm:$0xff] }
 0x1ad   :  { %1182 = vmatprep.subr.bf16.mxu0 %v5759_v48  ;;  %1223 = vmatprep.subr.bf16.mxu1 %v5760_v60  ;;  %v158_v48 = vld [vmem:[%s5283_s5] sm:$0xf]  ;;  %v2810_v60 = vld [vmem:[%s5278_s0 + $0xe] sm:$0x3] }
 0x1ae   :  { %1870 = vperm.xlu1 %2903, %v2796_v59   ;;  %v4097_v3 = vrot.slane %v158_v48, %v5761_v1  ;;  %v4100_v53 = vrot.slane %v158_v48, %v5763_v58  ;;  %v5765_v1 = vld [vmem:[#allocation69_spill] sm:$0xff] }
 0x1af   :  { %v4105_v29 = vrot.slane %v158_v48, %v5765_v1  ;;  %v5769_v1 = vld [vmem:[#allocation68_spill] sm:$0xff] }
 0x1b0   :  { %5762 = vst [vmem:[#allocation11_spill] sm:$0xff] %v4097_v3  ;;  %5764 = vst [vmem:[#allocation12_spill] sm:$0xff] %v4100_v53 }
 0x1b1   :  { %5766 = vst [vmem:[#allocation13_spill] sm:$0xff] %v4105_v29 }
 0x1b2   :  { %2336 = vperm.xlu1 %2903, %v2810_v60   ;;  %v4109_v60 = vrot.slane %v158_v48, %v3963_v57 }
 0x1b4   :  { %5767 = vst [vmem:[#allocation14_spill] sm:$0xff] %v4109_v60 }
 0x222   :  { %v862_v61 = vpop.f32.mrb[4].mxu0  ;;  %v903_v63 = vpop.f32.mrb[4].mxu1 }
 0x223   :  { %v863_v62 = vadd.f32 %v862_v61, %v4097_v3  ;;  %v864_v2 = vpop.f32.mrb[5].mxu0  ;;  %v905_v50 = vpop.f32.mrb[5].mxu1  ;;  %v904_v3 = vadd.f32 %v903_v63, %v4109_v60  ;;  %v5770_v60 = vld [vmem:[#allocation70_spill] sm:$0xff] }
 0x224   :  { %v865_v36 = vadd.f32 %v864_v2, %v4100_v53  ;;  %v866_v59 = vpop.f32.mrb[6].mxu0  ;;  %v907_v49 = vpop.f32.mrb[6].mxu1  ;;  %v906_v58 = vadd.f32 %v905_v50, %v4105_v29 }
 0x225   :  { %v2765_v55 = vmul.f32 -1.442695, %v863_v62  ;;  %v867_v52 = vpop.f32.mrb[7].mxu0  ;;  %v908_v56 = vpop.f32.mrb[7].mxu1 }
 0x226   :  { %v2766_v54 = vmul.f32 -1.442695, %v865_v36  ;;  %v2767_v61 = vmul.f32 -1.442695, %v906_v58  ;;  %v939_v36 = vpop.permute.xlu0 %938 }
 0x227   :  { %3064 = vpow2.f32 %v2765_v55  ;;  %v942_v57 = vmul.f32 %v939_v36, %v5769_v1  ;;  %v5772_v1 = vld [vmem:[#allocation72_spill] sm:$0xff] }
 0x228   :  { %3066 = vpow2.f32 %v2766_v54  ;;  %v5768_v54 = vld [vmem:[#allocation67_spill] sm:$0xff]  ;;  %v944_v25 = vmul.f32 %v939_v36, %v5772_v1 }
 0x229   :  { %3068 = vpow2.f32 %v2767_v61  ;;  %v941_v62 = vmul.f32 %v939_v36, %v5768_v54 }
 0x22a   :  { %3070 = vtanh.f32 %v904_v3 }
 0x22b   :  { %v945_v53 = vadd.f32 %v941_v62, %v5770_v60 }
 0x231   :  { %v3065_v2 = vpop.eup %3064 }
 0x232   :  { %v3067_v59 = vpop.eup %3066  ;;  %v913_v49 = vadd.f32 1.0, %v3065_v2 }
 0x233   :  { %v919_v56 = vadd.f32 1.0, %v3067_v59  ;;  %v3069_v52 = vpop.eup %3068  ;;  %v5771_v59 = vld [vmem:[#allocation71_spill] sm:$0xff] }
 0x234   :  { %3072 = vrcp.f32 %v913_v49  ;;  %v3071_v55 = vpop.eup %3070  ;;  %v926_v29 = vadd.f32 1.0, %v3069_v52  ;;  %v946_v49 = vadd.f32 %v942_v57, %v5771_v59 }
 0x235   :  { %3074 = vrcp.f32 %v919_v56 }
 0x236   :  { %3076 = vrcp.f32 %v926_v29  ;;  %v943_v29 = vmul.f32 %v939_v36, %v3972_v30 }
 0x23e   :  { %v3073_v50 = vpop.eup %3072 }
 0x23f   :  { %v3075_v48 = vpop.eup %3074  ;;  %v930_v58 = vmul.f32 %v3073_v50, %v3071_v55 }
 0x240   :  { %v929_v63 = vmul.f32 0.0, %v3075_v48  ;;  %v3077_v57 = vpop.eup %3076 }
 0x242   :  { %v4115_v2 = vadd.f32 %v930_v58, %v929_v63  ;;  %v983_v3 = vpop.f32.mrb[8].mxu0  ;;  %v1024_v61 = vpop.f32.mrb[8].mxu1  ;;  %v948_v63 = vadd.f32 %v944_v25, %v3969_v28 }
 0x243   :  { %v1031_v56 = vadd.f32 %v983_v3, %v945_v53  ;;  %v985_v27 = vpop.f32.mrb[9].mxu0  ;;  %v1026_v26 = vpop.f32.mrb[9].mxu1  ;;  %v947_v3 = vadd.f32 %v943_v29, %v3977_v39 }
 0x244   :  { %3078 = vtanh.f32 %v4115_v2  ;;  %v1032_v54 = vadd.f32 %v985_v27, %v946_v49  ;;  %v987_v55 = vpop.f32.mrb[10].mxu0  ;;  %v1028_v52 = vpop.f32.mrb[10].mxu1  ;;  %v1034_v53 = vadd.f32 %v1026_v26, %v948_v63 }
 0x245   :  { %v2769_v50 = vmul.f32 -1.442695, %v1031_v56  ;;  %v988_v48 = vpop.f32.mrb[11].mxu0  ;;  %v1029_v62 = vpop.f32.mrb[11].mxu1  ;;  %v1033_v49 = vadd.f32 %v1024_v61, %v947_v3  ;;  %v4130_v3 = vld [vmem:[#allocation3 + $0x8] ss:$16 sps:$4 sm:$0xff]  }
 0x246   :  { %v2770_v58 = vmul.f32 -1.442695, %v1032_v54  ;;  %v2771_v27 = vmul.f32 -1.442695, %v1034_v53 }
 0x247   :  { %3080 = vpow2.f32 %v2769_v50 }
 0x248   :  { %3082 = vpow2.f32 %v2770_v58 }
 0x249   :  { %3084 = vpow2.f32 %v2771_v27  ;;  %v4136_v27 = vld [vmem:[#allocation3 + $0x2c] ss:$16 sps:$4 sm:$0xff]  }
 0x24a   :  { %3086 = vtanh.f32 %v1033_v49  ;;  %v4141_v49 = vld [vmem:[#allocation3 + $0x20] ss:$16 sps:$4 sm:$0xff]  }
 0x24e   :  { %v3079_v59 = vpop.eup %3078 }
 0x24f   :  { %v933_v1 = vmul.f32 %v3079_v59, %v3077_v57  ;;  %v4127_v57 = vld [vmem:[#allocation3] ss:$16 sps:$4 sm:$0xff]  }
 0x251   :  { %v3081_v55 = vpop.eup %3080  ;;  %v1060_v52 = vpack.c.bf16 %v933_v1, %v933_v1 }
 0x252   :  { %v3083_v56 = vpop.eup %3082  ;;  %v1038_v48 = vadd.f32 1.0, %v3081_v55  ;;  %v4144_v55 = vld [vmem:[#allocation3 + $0x28] ss:$16 sps:$4 sm:$0xff]  }
 0x253   :  { %v1044_v54 = vadd.f32 1.0, %v3083_v56  ;;  %1093 = vmatprep.mubr.bf16.mxu0 %v1060_v52  ;;  %1134 = vmatprep.mubr.bf16.mxu1 %v1060_v52  ;;  %v3085_v25 = vpop.eup %3084  ;;  %v4147_v52 = vld [vmem:[#allocation3 + $0x44] ss:$16 sps:$4 sm:$0xff]   ;;  %v4150_v56 = vld [vmem:[#allocation3 + $0x4c] ss:$16 sps:$4 sm:$0xff]  }
 0x254   :  { %3088 = vrcp.f32 %v1038_v48  ;;  %v3087_v26 = vpop.eup %3086  ;;  %v1051_v58 = vadd.f32 1.0, %v3085_v25  ;;  %v4153_v48 = vld [vmem:[#allocation3 + $0x40] ss:$16 sps:$4 sm:$0xff]   ;;  %v4159_v25 = vld [vmem:[#allocation3 + $0x64] ss:$16 sps:$4 sm:$0xff]  }
 0x255   :  { %3090 = vrcp.f32 %v1044_v54  ;;  %v4156_v54 = vld [vmem:[#allocation3 + $0x48] ss:$16 sps:$4 sm:$0xff]  }
 0x256   :  { %3092 = vrcp.f32 %v1051_v58  ;;  %v4174_v58 = vld [vmem:[#allocation3 + $0x8c] ss:$16 sps:$4 sm:$0xff]  }
 0x257   :  { %5774 = vst [vmem:[#allocation16_spill] sm:$0xff] %v4174_v58 }
 0x25e   :  { %v3089_v36 = vpop.eup %3088 }
 0x25f   :  { %v3091_v50 = vpop.eup %3090  ;;  %v1055_v62 = vmul.f32 %v3089_v36, %v3087_v26  ;;  %v4162_v26 = vld [vmem:[#allocation3 + $0x6c] ss:$16 sps:$4 sm:$0xff]   ;;  %v4165_v36 = vld [vmem:[#allocation3 + $0x60] ss:$16 sps:$4 sm:$0xff]  }
 0x260   :  { %v1054_v61 = vmul.f32 %v3091_v50, %v3980_v51  ;;  %v3093_v1 = vpop.eup %3092  ;;  %v4133_v51 = vld [vmem:[#allocation3 + $0x24] ss:$16 sps:$4 sm:$0xff]   ;;  %v4168_v50 = vld [vmem:[#allocation3 + $0x68] ss:$16 sps:$4 sm:$0xff]  }
 0x262   :  { %v4124_v59 = vadd.f32 %v1055_v62, %v1054_v61  ;;  %v4171_v62 = vld [vmem:[#allocation3 + $0x84] ss:$16 sps:$4 sm:$0xff]   ;;  %v4177_v61 = vld [vmem:[#allocation3 + $0x80] ss:$16 sps:$4 sm:$0xff]  }
 0x263   :  { %5773 = vst [vmem:[#allocation15_spill] sm:$0xff] %v4171_v62  ;;  %5775 = vst [vmem:[#allocation17_spill] sm:$0xff] %v4177_v61 }
 0x264   :  { %3094 = vtanh.f32 %v4124_v59 }
 0x26e   :  { %v3095_v63 = vpop.eup %3094 }
 0x26f   :  { %v1058_v29 = vmul.f32 %v3095_v63, %v3093_v1  ;;  %v4180_v1 = vld [vmem:[#allocation3 + $0x88] ss:$16 sps:$4 sm:$0xff]   ;;  %v4183_v63 = vld [vmem:[#allocation3 + $0xa4] ss:$16 sps:$4 sm:$0xff]  }
 0x270   :  { %5776 = vst [vmem:[#allocation18_spill] sm:$0xff] %v4180_v1  ;;  %5777 = vst [vmem:[#allocation19_spill] sm:$0xff] %v4183_v63 }
 0x271   :  { %v1059_v53 = vpack.c.bf16 %v1058_v29, %v1058_v29  ;;  %v4186_v29 = vld [vmem:[#allocation3 + $0xac] ss:$16 sps:$4 sm:$0xff]  }
 0x273   :  { %1094 = vmatmul.mubr.bf16.vlgmr.msra.gmra.mrb[12].mxu0 %v1059_v53  ;;  %1135 = vmatmul.mubr.bf16.vlgmr.msra.gmra.mrb[12].mxu1 %v1059_v53 }
 0x274   :  { %1183 = vmatpush1.bf16.msra.mxu0 %v4127_v57  ;;  %1224 = vmatpush1.bf16.msra.mxu1 %v4130_v3 }
 0x275   :  { %1184 = vmatprep.subr.bf16.mxu0 %v4133_v51  ;;  %1225 = vmatprep.subr.bf16.mxu1 %v4136_v27 }
 0x276   :  { %1214 = vmatprep.mubr.bf16.mxu0 %v5704_v0  ;;  %1255 = vmatprep.mubr.bf16.mxu1 %v5704_v0 }
 0x278   :  { %1185 = vmatpush1.bf16.msra.mxu0 %v4141_v49  ;;  %1226 = vmatpush1.bf16.msra.mxu1 %v4144_v55 }
 0x279   :  { %1186 = vmatprep.subr.bf16.mxu0 %v4147_v52  ;;  %1227 = vmatprep.subr.bf16.mxu1 %v4150_v56 }
 0x27c   :  { %1187 = vmatpush1.bf16.msra.mxu0 %v4153_v48  ;;  %1228 = vmatpush1.bf16.msra.mxu1 %v4156_v54 }
 0x27d   :  { %1188 = vmatprep.subr.bf16.mxu0 %v4159_v25  ;;  %1229 = vmatprep.subr.bf16.mxu1 %v4162_v26 }
 0x280   :  { %1189 = vmatpush1.bf16.msra.mxu0 %v4165_v36  ;;  %1230 = vmatpush1.bf16.msra.mxu1 %v4168_v50 }
 0x281   :  { %1190 = vmatprep.subr.bf16.mxu0 %v4171_v62  ;;  %1231 = vmatprep.subr.bf16.mxu1 %v4174_v58  ;;  %v4189_v62 = vld [vmem:[#allocation3 + $0xa0] ss:$16 sps:$4 sm:$0xff]   ;;  %v4192_v58 = vld [vmem:[#allocation3 + $0xa8] ss:$16 sps:$4 sm:$0xff]  }
 0x284   :  { %1191 = vmatpush1.bf16.msra.mxu0 %v4177_v61  ;;  %1232 = vmatpush1.bf16.msra.mxu1 %v4180_v1  ;;  %v4195_v61 = vld [vmem:[#allocation3 + $0xc4] ss:$16 sps:$4 sm:$0xff]   ;;  %v4198_v1 = vld [vmem:[#allocation3 + $0xcc] ss:$16 sps:$4 sm:$0xff]  }
 0x285   :  { %1192 = vmatprep.subr.bf16.mxu0 %v4183_v63  ;;  %1233 = vmatprep.subr.bf16.mxu1 %v4186_v29  ;;  %v4201_v63 = vld [vmem:[#allocation3 + $0xc0] ss:$16 sps:$4 sm:$0xff]  }
 0x288   :  { %1193 = vmatpush1.bf16.msra.mxu0 %v4189_v62  ;;  %1234 = vmatpush1.bf16.msra.mxu1 %v4192_v58 }
 0x289   :  { %1194 = vmatprep.subr.bf16.mxu0 %v4195_v61  ;;  %1235 = vmatprep.subr.bf16.mxu1 %v4198_v1 }
 0x28c   :  { %1195 = vmatpush1.bf16.msra.mxu0 %v4201_v63  ;;  %1236 = vmatpush1.bf16.msra.mxu1 %v3712_v31  ;;  %v5778_v31 = vld [vmem:[#allocation32_spill] sm:$0xff] }
 0x28d   :  { %1196 = vmatprep.subr.bf16.mxu0 %v3714_v32  ;;  %1237 = vmatprep.subr.bf16.mxu1 %v3718_v33  ;;  %v5779_v32 = vld [vmem:[#allocation33_spill] sm:$0xff]  ;;  %v5780_v33 = vld [vmem:[#allocation34_spill] sm:$0xff] }
 0x290   :  { %1197 = vmatpush1.bf16.msra.mxu0 %v3720_v34  ;;  %1238 = vmatpush1.bf16.msra.mxu1 %v3722_v35  ;;  %v5781_v34 = vld [vmem:[#allocation35_spill] sm:$0xff]  ;;  %v5782_v35 = vld [vmem:[#allocation36_spill] sm:$0xff] }
 0x291   :  { %1294 = vmatprep.subr.bf16.mxu0 %v3729_v37  ;;  %1335 = vmatprep.subr.bf16.mxu1 %v3733_v38  ;;  %v5783_v37 = vld [vmem:[#allocation37_spill] sm:$0xff]  ;;  %v5784_v38 = vld [vmem:[#allocation38_spill] sm:$0xff] }
 0x293   :  { %1215 = vmatmul.mubr.bf16.vlgmr.msra.gmra.mrb[16].mxu0 %v1059_v53  ;;  %1256 = vmatmul.mubr.bf16.vlgmr.msra.gmra.mrb[16].mxu1 %v1059_v53 }
 0x294   :  { %1295 = vmatpush1.bf16.msra.mxu0 %v3738_v40  ;;  %1336 = vmatpush1.bf16.msra.mxu1 %v3742_v41  ;;  %v5785_v40 = vld [vmem:[#allocation39_spill] sm:$0xff]  ;;  %v5786_v41 = vld [vmem:[#allocation40_spill] sm:$0xff] }
 0x295   :  { %1296 = vmatprep.subr.bf16.mxu0 %v3746_v42  ;;  %1337 = vmatprep.subr.bf16.mxu1 %v3748_v43  ;;  %v5787_v42 = vld [vmem:[#allocation41_spill] sm:$0xff]  ;;  %v5788_v43 = vld [vmem:[#allocation42_spill] sm:$0xff] }
 0x298   :  { %1297 = vmatpush1.bf16.msra.mxu0 %v3750_v44  ;;  %1338 = vmatpush1.bf16.msra.mxu1 %v3752_v45  ;;  %v5789_v44 = vld [vmem:[#allocation43_spill] sm:$0xff]  ;;  %v5790_v45 = vld [vmem:[#allocation44_spill] sm:$0xff] }
 0x299   :  { %1298 = vmatprep.subr.bf16.mxu0 %v3756_v46  ;;  %1339 = vmatprep.subr.bf16.mxu1 %v3758_v47  ;;  %v5791_v46 = vld [vmem:[#allocation45_spill] sm:$0xff]  ;;  %v5792_v47 = vld [vmem:[#allocation46_spill] sm:$0xff] }
 0x29c   :  { %1299 = vmatpush1.bf16.msra.mxu0 %v5705_v4  ;;  %1340 = vmatpush1.bf16.msra.mxu1 %v5706_v5  ;;  %v5793_v4 = vld [vmem:[#allocation47_spill] sm:$0xff]  ;;  %v5794_v5 = vld [vmem:[#allocation48_spill] sm:$0xff] }
 0x29d   :  { %1300 = vmatprep.subr.bf16.mxu0 %v5707_v6  ;;  %1341 = vmatprep.subr.bf16.mxu1 %v5708_v7  ;;  %v5795_v6 = vld [vmem:[#allocation49_spill] sm:$0xff]  ;;  %v5796_v7 = vld [vmem:[#allocation50_spill] sm:$0xff] }
 0x2a0   :  { %1301 = vmatpush1.bf16.msra.mxu0 %v5709_v8  ;;  %1342 = vmatpush1.bf16.msra.mxu1 %v5710_v9  ;;  %v5797_v8 = vld [vmem:[#allocation51_spill] sm:$0xff]  ;;  %v5798_v9 = vld [vmem:[#allocation52_spill] sm:$0xff] }
 0x2a1   :  { %1302 = vmatprep.subr.bf16.mxu0 %v5711_v10  ;;  %1343 = vmatprep.subr.bf16.mxu1 %v5712_v11  ;;  %v5799_v10 = vld [vmem:[#allocation53_spill] sm:$0xff]  ;;  %v5800_v11 = vld [vmem:[#allocation54_spill] sm:$0xff] }
 0x2a4   :  { %1303 = vmatpush1.bf16.msra.mxu0 %v5713_v12  ;;  %1344 = vmatpush1.bf16.msra.mxu1 %v5714_v13  ;;  %v5801_v12 = vld [vmem:[#allocation55_spill] sm:$0xff]  ;;  %v5802_v13 = vld [vmem:[#allocation56_spill] sm:$0xff] }
 0x2a5   :  { %1304 = vmatprep.subr.bf16.mxu0 %v5715_v14  ;;  %1345 = vmatprep.subr.bf16.mxu1 %v5716_v15  ;;  %v5803_v14 = vld [vmem:[#allocation57_spill] sm:$0xff]  ;;  %v5804_v15 = vld [vmem:[#allocation58_spill] sm:$0xff] }
 0x2a8   :  { %1305 = vmatpush1.bf16.msra.mxu0 %v5717_v16  ;;  %1346 = vmatpush1.bf16.msra.mxu1 %v5718_v17  ;;  %v5805_v16 = vld [vmem:[#allocation59_spill] sm:$0xff]  ;;  %v5806_v17 = vld [vmem:[#allocation60_spill] sm:$0xff] }
 0x2a9   :  { %1306 = vmatprep.subr.bf16.mxu0 %v5719_v18  ;;  %1347 = vmatprep.subr.bf16.mxu1 %v5720_v19  ;;  %v5807_v18 = vld [vmem:[#allocation61_spill] sm:$0xff]  ;;  %v5808_v19 = vld [vmem:[#allocation62_spill] sm:$0xff] }
 0x2ac   :  { %1307 = vmatpush1.bf16.msra.mxu0 %v5721_v20  ;;  %1348 = vmatpush1.bf16.msra.mxu1 %v5722_v21  ;;  %v5809_v20 = vld [vmem:[#allocation63_spill] sm:$0xff]  ;;  %v5810_v21 = vld [vmem:[#allocation64_spill] sm:$0xff] }
 0x2ad   :  { %1308 = vmatprep.subr.bf16.mxu0 %v5723_v22  ;;  %1349 = vmatprep.subr.bf16.mxu1 %v5724_v23  ;;  %v4273_v22 = vld [vmem:[#allocation3 + $0x4] ss:$16 sps:$4 sm:$0xff]   ;;  %v4276_v23 = vld [vmem:[#allocation3 + $0xc] ss:$16 sps:$4 sm:$0xff]  }
 0x2ae   :  { %5811 = vst [vmem:[#allocation20_spill] sm:$0xff] %v4273_v22  ;;  %5812 = vst [vmem:[#allocation21_spill] sm:$0xff] %v4276_v23 }
 0x2b0   :  { %1309 = vmatpush1.bf16.msra.mxu0 %v5725_v24  ;;  %1350 = vmatpush1.bf16.msra.mxu1 %v5778_v31  ;;  %v5813_v31 = vld [vmem:[#allocation11_spill] sm:$0xff] }
 0x2b1   :  { %1310 = vmatprep.subr.bf16.mxu0 %v5779_v32  ;;  %1351 = vmatprep.subr.bf16.mxu1 %v5780_v33 }
 0x2b4   :  { %1311 = vmatpush1.bf16.msra.mxu0 %v5781_v34  ;;  %1352 = vmatpush1.bf16.msra.mxu1 %v5782_v35  ;;  %v5814_v35 = vld [vmem:[#allocation12_spill] sm:$0xff] }
 0x2b5   :  { %1312 = vmatprep.subr.bf16.mxu0 %v5783_v37  ;;  %1353 = vmatprep.subr.bf16.mxu1 %v5784_v38 }
 0x2b8   :  { %1313 = vmatpush1.bf16.msra.mxu0 %v5785_v40  ;;  %1354 = vmatpush1.bf16.msra.mxu1 %v5786_v41 }
 0x2b9   :  { %1314 = vmatprep.subr.bf16.mxu0 %v5787_v42  ;;  %1355 = vmatprep.subr.bf16.mxu1 %v5788_v43 }
 0x2bc   :  { %1315 = vmatpush1.bf16.msra.mxu0 %v5789_v44  ;;  %1356 = vmatpush1.bf16.msra.mxu1 %v5790_v45  ;;  %v5815_v45 = vld [vmem:[#allocation13_spill] sm:$0xff] }
 0x2bd   :  { %1316 = vmatprep.subr.bf16.mxu0 %v5791_v46  ;;  %1357 = vmatprep.subr.bf16.mxu1 %v5792_v47 }
 0x2c0   :  { %1317 = vmatpush1.bf16.msra.mxu0 %v5793_v4  ;;  %1358 = vmatpush1.bf16.msra.mxu1 %v5794_v5  ;;  %v5816_v4 = vld [vmem:[#allocation14_spill] sm:$0xff] }
 0x2c1   :  { %1318 = vmatprep.subr.bf16.mxu0 %v5795_v6  ;;  %1359 = vmatprep.subr.bf16.mxu1 %v5796_v7 }
 0x2c4   :  { %1319 = vmatpush1.bf16.msra.mxu0 %v5797_v8  ;;  %1360 = vmatpush1.bf16.msra.mxu1 %v5798_v9 }
 0x2c5   :  { %1320 = vmatprep.subr.bf16.mxu0 %v5799_v10  ;;  %1361 = vmatprep.subr.bf16.mxu1 %v5800_v11  ;;  %v1172_v10 = vpop.permute.xlu1 %1171  ;;  %v5817_v11 = vld [vmem:[#allocation67_spill] sm:$0xff] }
 0x2c8   :  { %1321 = vmatpush1.bf16.msra.mxu0 %v5801_v12  ;;  %1362 = vmatpush1.bf16.msra.mxu1 %v5802_v13  ;;  %v1174_v12 = vmul.f32 %v1172_v10, %v5817_v11 }
 0x2c9   :  { %1322 = vmatprep.subr.bf16.mxu0 %v5803_v14  ;;  %1363 = vmatprep.subr.bf16.mxu1 %v5804_v15  ;;  %v5818_v14 = vld [vmem:[#allocation68_spill] sm:$0xff] }
 0x2ca   :  { %v1175_v15 = vmul.f32 %v1172_v10, %v5818_v14 }
 0x2cc   :  { %1323 = vmatpush1.bf16.msra.mxu0 %v5805_v16  ;;  %1364 = vmatpush1.bf16.msra.mxu1 %v5806_v17 }
 0x2cd   :  { %1324 = vmatprep.subr.bf16.mxu0 %v5807_v18  ;;  %1365 = vmatprep.subr.bf16.mxu1 %v5808_v19 }
 0x2d0   :  { %1325 = vmatpush1.bf16.msra.mxu0 %v5809_v20  ;;  %1366 = vmatpush1.bf16.msra.mxu1 %v5810_v21  ;;  %v1178_v21 = vadd.f32 %v1174_v12, %v5770_v60 }
 0x2d1   :  { %1415 = vmatprep.subr.bf16.mxu0 %v4273_v22  ;;  %1456 = vmatprep.subr.bf16.mxu1 %v4276_v23 }
 0x346   :  { %v1095_v24 = vpop.f32.mrb[12].mxu0  ;;  %v1136_v53 = vpop.f32.mrb[12].mxu1 }
 0x347   :  { %v1096_v32 = vadd.f32 %v1095_v24, %v5813_v31  ;;  %v1097_v33 = vpop.f32.mrb[13].mxu0  ;;  %v1138_v34 = vpop.f32.mrb[13].mxu1  ;;  %v1137_v5 = vadd.f32 %v1136_v53, %v5816_v4  ;;  %v5819_v53 = vld [vmem:[#allocation71_spill] sm:$0xff] }
 0x348   :  { %v1098_v37 = vadd.f32 %v1097_v33, %v5814_v35  ;;  %v1099_v38 = vpop.f32.mrb[14].mxu0  ;;  %v1140_v40 = vpop.f32.mrb[14].mxu1  ;;  %v1139_v46 = vadd.f32 %v1138_v34, %v5815_v45 }
 0x349   :  { %v2772_v41 = vmul.f32 -1.442695, %v1096_v32  ;;  %v1100_v42 = vpop.f32.mrb[15].mxu0  ;;  %v1141_v43 = vpop.f32.mrb[15].mxu1  ;;  %v1179_v32 = vadd.f32 %v1175_v15, %v5819_v53 }
 0x34a   :  { %v2773_v44 = vmul.f32 -1.442695, %v1098_v37  ;;  %v2774_v47 = vmul.f32 -1.442695, %v1139_v46  ;;  %v5820_v37 = vld [vmem:[#allocation72_spill] sm:$0xff] }
 0x34b   :  { %3096 = vpow2.f32 %v2772_v41  ;;  %v1177_v38 = vmul.f32 %v1172_v10, %v5820_v37 }
 0x34c   :  { %3098 = vpow2.f32 %v2773_v44 }
 0x34d   :  { %3100 = vpow2.f32 %v2774_v47 }
 0x34e   :  { %3102 = vtanh.f32 %v1137_v5 }
 0x355   :  { %v3097_v6 = vpop.eup %3096 }
 0x356   :  { %v3099_v7 = vpop.eup %3098  ;;  %v1146_v8 = vadd.f32 1.0, %v3097_v6 }
 0x357   :  { %v1152_v9 = vadd.f32 1.0, %v3099_v7  ;;  %v3101_v13 = vpop.eup %3100 }
 0x358   :  { %3104 = vrcp.f32 %v1146_v8  ;;  %v3103_v16 = vpop.eup %3102  ;;  %v1159_v20 = vadd.f32 1.0, %v3101_v13  ;;  %v1181_v8 = vadd.f32 %v1177_v38, %v3969_v28 }
 0x359   :  { %3106 = vrcp.f32 %v1152_v9  ;;  %v1176_v9 = vmul.f32 %v1172_v10, %v3972_v30 }
 0x35a   :  { %3108 = vrcp.f32 %v1159_v20 }
 0x35b   :  { %v1180_v13 = vadd.f32 %v1176_v9, %v3977_v39  ;;  %v5824_v9 = vld [vmem:[#allocation18_spill] sm:$0xff] }
 0x362   :  { %v3105_v17 = vpop.eup %3104 }
 0x363   :  { %v3107_v18 = vpop.eup %3106  ;;  %v1163_v19 = vmul.f32 %v3105_v17, %v3103_v16 }
 0x364   :  { %v1162_v24 = vmul.f32 %v3107_v18, %v4115_v2  ;;  %v3109_v15 = vpop.eup %3108 }
 0x366   :  { %v1216_v33 = vpop.f32.mrb[16].mxu0  ;;  %v1257_v34 = vpop.f32.mrb[16].mxu1  ;;  %v4289_v40 = vadd.f32 %v1163_v19, %v1162_v24 }
 0x367   :  { %v1264_v41 = vadd.f32 %v1216_v33, %v1178_v21  ;;  %v1218_v42 = vpop.f32.mrb[17].mxu0  ;;  %v1259_v43 = vpop.f32.mrb[17].mxu1  ;;  %v1266_v18 = vadd.f32 %v1257_v34, %v1180_v13  ;;  %v4326_v13 = vld [vmem:[#allocation3 + $0xc8] ss:$16 sps:$4 sm:$0xff]  }
 0x368   :  { %v1265_v44 = vadd.f32 %v1218_v42, %v1179_v32  ;;  %v1220_v46 = vpop.f32.mrb[18].mxu0  ;;  %v1261_v47 = vpop.f32.mrb[18].mxu1  ;;  %3110 = vtanh.f32 %v4289_v40  ;;  %v1267_v12 = vadd.f32 %v1259_v43, %v1181_v8  ;;  %v5823_v8 = vld [vmem:[#allocation17_spill] sm:$0xff] }
 0x369   :  { %v2776_v5 = vmul.f32 -1.442695, %v1264_v41  ;;  %v1221_v6 = vpop.f32.mrb[19].mxu0  ;;  %v1262_v2 = vpop.f32.mrb[19].mxu1 }
 0x36a   :  { %v2777_v7 = vmul.f32 -1.442695, %v1265_v44  ;;  %v2778_v17 = vmul.f32 -1.442695, %v1267_v12  ;;  %v5825_v12 = vld [vmem:[#allocation19_spill] sm:$0xff] }
 0x36b   :  { %3112 = vpow2.f32 %v2776_v5 }
 0x36c   :  { %3114 = vpow2.f32 %v2777_v7  ;;  %v5822_v7 = vld [vmem:[#allocation16_spill] sm:$0xff] }
 0x36d   :  { %3116 = vpow2.f32 %v2778_v17  ;;  %v4335_v17 = vld [vmem:[#allocation3 + $0xe0] ss:$16 sps:$4 sm:$0xff]  }
 0x36e   :  { %3118 = vtanh.f32 %v1266_v18  ;;  %v4338_v18 = vld [vmem:[#allocation3 + $0xe8] ss:$16 sps:$4 sm:$0xff]  }
 0x372   :  { %v3111_v16 = vpop.eup %3110 }
 0x373   :  { %v1166_v19 = vmul.f32 %v3111_v16, %v3109_v15  ;;  %v4329_v15 = vld [vmem:[#allocation3 + $0xe4] ss:$16 sps:$4 sm:$0xff]   ;;  %v4332_v16 = vld [vmem:[#allocation3 + $0xec] ss:$16 sps:$4 sm:$0xff]  }
 0x375   :  { %v3113_v20 = vpop.eup %3112  ;;  %v1293_v21 = vpack.c.bf16 %v1166_v19, %v1166_v19  ;;  %v4341_v19 = vld [vmem:[#allocation5 + $0x4] ss:$16 sps:$4 sm:$0xff]  }
 0x376   :  { %v3115_v24 = vpop.eup %3114  ;;  %v1271_v32 = vadd.f32 1.0, %v3113_v20  ;;  %v4344_v20 = vld [vmem:[#allocation5 + $0xc] ss:$16 sps:$4 sm:$0xff]  }
 0x377   :  { %v1277_v33 = vadd.f32 1.0, %v3115_v24  ;;  %1326 = vmatprep.mubr.bf16.mxu0 %v1293_v21  ;;  %1367 = vmatprep.mubr.bf16.mxu1 %v1293_v21  ;;  %v3117_v10 = vpop.eup %3116  ;;  %v4347_v21 = vld [vmem:[#allocation5] ss:$16 sps:$4 sm:$0xff]   ;;  %v4350_v24 = vld [vmem:[#allocation5 + $0x8] ss:$16 sps:$4 sm:$0xff]  }
 0x378   :  { %3120 = vrcp.f32 %v1271_v32  ;;  %v3119_v38 = vpop.eup %3118  ;;  %v1284_v44 = vadd.f32 1.0, %v3117_v10  ;;  %5826 = vst [vmem:[#allocation22_spill] sm:$0xff] %v4347_v21  ;;  %5827 = vst [vmem:[#allocation23_spill] sm:$0xff] %v4350_v24  ;;  %v4353_v32 = vld [vmem:[#allocation5 + $0x24] ss:$16 sps:$4 sm:$0xff]  }
 0x379   :  { %3122 = vrcp.f32 %v1277_v33  ;;  %5828 = vst [vmem:[#allocation24_spill] sm:$0xff] %v4353_v32  ;;  %v4356_v33 = vld [vmem:[#allocation5 + $0x2c] ss:$16 sps:$4 sm:$0xff]   ;;  %v4359_v10 = vld [vmem:[#allocation5 + $0x20] ss:$16 sps:$4 sm:$0xff]  }
 0x37a   :  { %3124 = vrcp.f32 %v1284_v44  ;;  %5829 = vst [vmem:[#allocation25_spill] sm:$0xff] %v4356_v33  ;;  %5830 = vst [vmem:[#allocation26_spill] sm:$0xff] %v4359_v10  ;;  %v4374_v44 = vld [vmem:[#allocation5 + $0x48] ss:$16 sps:$4 sm:$0xff]  }
 0x37b   :  { %5835 = vst [vmem:[#allocation31_spill] sm:$0xff] %v4374_v44 }
 0x382   :  { %v3121_v41 = vpop.eup %3120 }
 0x383   :  { %v3123_v42 = vpop.eup %3122  ;;  %v1288_v43 = vmul.f32 %v3121_v41, %v3119_v38  ;;  %v4362_v38 = vld [vmem:[#allocation5 + $0x28] ss:$16 sps:$4 sm:$0xff]   ;;  %v4365_v41 = vld [vmem:[#allocation5 + $0x44] ss:$16 sps:$4 sm:$0xff]  }
 0x384   :  { %v1287_v34 = vmul.f32 %v3123_v42, %v4124_v59  ;;  %v3125_v47 = vpop.eup %3124  ;;  %v5821_v59 = vld [vmem:[#allocation15_spill] sm:$0xff]  ;;  %5831 = vst [vmem:[#allocation27_spill] sm:$0xff] %v4362_v38  ;;  %5832 = vst [vmem:[#allocation28_spill] sm:$0xff] %v4365_v41  ;;  %v4368_v42 = vld [vmem:[#allocation5 + $0x4c] ss:$16 sps:$4 sm:$0xff]  }
 0x385   :  { %5833 = vst [vmem:[#allocation29_spill] sm:$0xff] %v4368_v42 }
 0x386   :  { %v4296_v46 = vadd.f32 %v1288_v43, %v1287_v34  ;;  %v4371_v43 = vld [vmem:[#allocation5 + $0x40] ss:$16 sps:$4 sm:$0xff]   ;;  %v4377_v34 = vld [vmem:[#allocation5 + $0x64] ss:$16 sps:$4 sm:$0xff]  }
 0x387   :  { %5834 = vst [vmem:[#allocation30_spill] sm:$0xff] %v4371_v43  ;;  %5836 = vst [vmem:[#allocation9_spill] sm:$0xff] %v4377_v34 }
 0x388   :  { %3126 = vtanh.f32 %v4296_v46 }
 0x392   :  { %v3127_v5 = vpop.eup %3126 }
 0x393   :  { %v1291_v6 = vmul.f32 %v3127_v5, %v3125_v47  ;;  %v4380_v47 = vld [vmem:[#allocation5 + $0x6c] ss:$16 sps:$4 sm:$0xff]   ;;  %v4383_v5 = vld [vmem:[#allocation5 + $0x60] ss:$16 sps:$4 sm:$0xff]  }
 0x394   :  { %5837 = vst [vmem:[#allocation10_spill] sm:$0xff] %v4380_v47  ;;  %5838 = vst [vmem:[#allocation65_spill] sm:$0xff] %v4383_v5 }
 0x395   :  { %v1292_v2 = vpack.c.bf16 %v1291_v6, %v1291_v6  ;;  %v4386_v6 = vld [vmem:[#allocation5 + $0x68] ss:$16 sps:$4 sm:$0xff]  }
 0x396   :  { %5839 = vst [vmem:[#allocation66_spill] sm:$0xff] %v4386_v6 }
 0x397   :  { %1327 = vmatmul.mubr.bf16.vlgmr.msra.gmra.mrb[20].mxu0 %v1292_v2  ;;  %1368 = vmatmul.mubr.bf16.vlgmr.msra.gmra.mrb[20].mxu1 %v1292_v2 }
 0x398   :  { %1416 = vmatpush1.bf16.msra.mxu0 %v4127_v57  ;;  %1457 = vmatpush1.bf16.msra.mxu1 %v4130_v3 }
 0x399   :  { %1417 = vmatprep.subr.bf16.mxu0 %v4133_v51  ;;  %1458 = vmatprep.subr.bf16.mxu1 %v4136_v27 }
 0x39a   :  { %1447 = vmatprep.mubr.bf16.mxu0 %v5704_v0  ;;  %1488 = vmatprep.mubr.bf16.mxu1 %v5704_v0 }
 0x39c   :  { %1418 = vmatpush1.bf16.msra.mxu0 %v4141_v49  ;;  %1459 = vmatpush1.bf16.msra.mxu1 %v4144_v55 }
 0x39d   :  { %1419 = vmatprep.subr.bf16.mxu0 %v4147_v52  ;;  %1460 = vmatprep.subr.bf16.mxu1 %v4150_v56 }
 0x3a0   :  { %1420 = vmatpush1.bf16.msra.mxu0 %v4153_v48  ;;  %1461 = vmatpush1.bf16.msra.mxu1 %v4156_v54 }
 0x3a1   :  { %1421 = vmatprep.subr.bf16.mxu0 %v4159_v25  ;;  %1462 = vmatprep.subr.bf16.mxu1 %v4162_v26 }
 0x3a4   :  { %1422 = vmatpush1.bf16.msra.mxu0 %v4165_v36  ;;  %1463 = vmatpush1.bf16.msra.mxu1 %v4168_v50 }
 0x3a5   :  { %1423 = vmatprep.subr.bf16.mxu0 %v5821_v59  ;;  %1464 = vmatprep.subr.bf16.mxu1 %v5822_v7 }
 0x3a8   :  { %1424 = vmatpush1.bf16.msra.mxu0 %v5823_v8  ;;  %1465 = vmatpush1.bf16.msra.mxu1 %v5824_v9 }
 0x3a9   :  { %1425 = vmatprep.subr.bf16.mxu0 %v5825_v12  ;;  %1466 = vmatprep.subr.bf16.mxu1 %v4186_v29 }
 0x3ac   :  { %1426 = vmatpush1.bf16.msra.mxu0 %v4189_v62  ;;  %1467 = vmatpush1.bf16.msra.mxu1 %v4192_v58 }
 0x3ad   :  { %1427 = vmatprep.subr.bf16.mxu0 %v4195_v61  ;;  %1468 = vmatprep.subr.bf16.mxu1 %v4198_v1 }
 0x3b0   :  { %1428 = vmatpush1.bf16.msra.mxu0 %v4201_v63  ;;  %1469 = vmatpush1.bf16.msra.mxu1 %v4326_v13 }
 0x3b1   :  { %1429 = vmatprep.subr.bf16.mxu0 %v4329_v15  ;;  %1470 = vmatprep.subr.bf16.mxu1 %v4332_v16 }
 0x3b4   :  { %1430 = vmatpush1.bf16.msra.mxu0 %v4335_v17  ;;  %1471 = vmatpush1.bf16.msra.mxu1 %v4338_v18 }
 0x3b5   :  { %1527 = vmatprep.subr.bf16.mxu0 %v4341_v19  ;;  %1568 = vmatprep.subr.bf16.mxu1 %v4344_v20 }
 0x3b7   :  { %1448 = vmatmul.mubr.bf16.vlgmr.msra.gmra.mrb[24].mxu0 %v1292_v2  ;;  %1489 = vmatmul.mubr.bf16.vlgmr.msra.gmra.mrb[24].mxu1 %v1292_v2  ;;  %v4389_v2 = vld [vmem:[#allocation5 + $0x84] ss:$16 sps:$4 sm:$0xff]  }
 0x3b8   :  { %1528 = vmatpush1.bf16.msra.mxu0 %v4347_v21  ;;  %1569 = vmatpush1.bf16.msra.mxu1 %v4350_v24  ;;  %5840 = vst [vmem:[#allocation69_spill] sm:$0xff] %v4389_v2 }
 0x3b9   :  { %1529 = vmatprep.subr.bf16.mxu0 %v4353_v32  ;;  %1570 = vmatprep.subr.bf16.mxu1 %v4356_v33 }
 0x3bc   :  { %1530 = vmatpush1.bf16.msra.mxu0 %v4359_v10  ;;  %1571 = vmatpush1.bf16.msra.mxu1 %v4362_v38 }
 0x3bd   :  { %1531 = vmatprep.subr.bf16.mxu0 %v4365_v41  ;;  %1572 = vmatprep.subr.bf16.mxu1 %v4368_v42 }
 0x3c0   :  { %1532 = vmatpush1.bf16.msra.mxu0 %v4371_v43  ;;  %1573 = vmatpush1.bf16.msra.mxu1 %v4374_v44  ;;  %v4392_v44 = vld [vmem:[#allocation5 + $0x8c] ss:$16 sps:$4 sm:$0xff]  }
 0x3c1   :  { %1533 = vmatprep.subr.bf16.mxu0 %v4377_v34  ;;  %1574 = vmatprep.subr.bf16.mxu1 %v4380_v47  ;;  %5841 = vst [vmem:[#allocation70_spill] sm:$0xff] %v4392_v44  ;;  %v4395_v34 = vld [vmem:[#allocation5 + $0x80] ss:$16 sps:$4 sm:$0xff]   ;;  %v4398_v47 = vld [vmem:[#allocation5 + $0x88] ss:$16 sps:$4 sm:$0xff]  }
 0x3c2   :  { %5842 = vst [vmem:[#allocation32_spill] sm:$0xff] %v4395_v34  ;;  %5843 = vst [vmem:[#allocation33_spill] sm:$0xff] %v4398_v47 }
 0x3c4   :  { %1534 = vmatpush1.bf16.msra.mxu0 %v4383_v5  ;;  %1575 = vmatpush1.bf16.msra.mxu1 %v4386_v6  ;;  %v4401_v5 = vld [vmem:[#allocation5 + $0xa4] ss:$16 sps:$4 sm:$0xff]   ;;  %v4404_v6 = vld [vmem:[#allocation5 + $0xac] ss:$16 sps:$4 sm:$0xff]  }
 0x3c5   :  { %1535 = vmatprep.subr.bf16.mxu0 %v4389_v2  ;;  %1576 = vmatprep.subr.bf16.mxu1 %v4392_v44  ;;  %5844 = vst [vmem:[#allocation34_spill] sm:$0xff] %v4401_v5  ;;  %5845 = vst [vmem:[#allocation35_spill] sm:$0xff] %v4404_v6  ;;  %v4407_v2 = vld [vmem:[#allocation5 + $0xa0] ss:$16 sps:$4 sm:$0xff]   ;;  %v4410_v44 = vld [vmem:[#allocation5 + $0xa8] ss:$16 sps:$4 sm:$0xff]  }
 0x3c6   :  { %5846 = vst [vmem:[#allocation36_spill] sm:$0xff] %v4407_v2  ;;  %5847 = vst [vmem:[#allocation37_spill] sm:$0xff] %v4410_v44 }
 0x3c8   :  { %1536 = vmatpush1.bf16.msra.mxu0 %v4395_v34  ;;  %1577 = vmatpush1.bf16.msra.mxu1 %v4398_v47  ;;  %v4413_v34 = vld [vmem:[#allocation5 + $0xc4] ss:$16 sps:$4 sm:$0xff]   ;;  %v4416_v47 = vld [vmem:[#allocation5 + $0xcc] ss:$16 sps:$4 sm:$0xff]  }
 0x3c9   :  { %1537 = vmatprep.subr.bf16.mxu0 %v4401_v5  ;;  %1578 = vmatprep.subr.bf16.mxu1 %v4404_v6  ;;  %5848 = vst [vmem:[#allocation38_spill] sm:$0xff] %v4413_v34  ;;  %5849 = vst [vmem:[#allocation39_spill] sm:$0xff] %v4416_v47  ;;  %v4419_v5 = vld [vmem:[#allocation5 + $0xc0] ss:$16 sps:$4 sm:$0xff]   ;;  %v4422_v6 = vld [vmem:[#allocation5 + $0xc8] ss:$16 sps:$4 sm:$0xff]  }
 0x3ca   :  { %5850 = vst [vmem:[#allocation40_spill] sm:$0xff] %v4419_v5  ;;  %5851 = vst [vmem:[#allocation41_spill] sm:$0xff] %v4422_v6 }
 0x3cc   :  { %1538 = vmatpush1.bf16.msra.mxu0 %v4407_v2  ;;  %1579 = vmatpush1.bf16.msra.mxu1 %v4410_v44  ;;  %v4425_v2 = vld [vmem:[#allocation5 + $0xe4] ss:$16 sps:$4 sm:$0xff]   ;;  %v4428_v44 = vld [vmem:[#allocation5 + $0xec] ss:$16 sps:$4 sm:$0xff]  }
 0x3cd   :  { %1539 = vmatprep.subr.bf16.mxu0 %v4413_v34  ;;  %1580 = vmatprep.subr.bf16.mxu1 %v4416_v47  ;;  %5852 = vst [vmem:[#allocation42_spill] sm:$0xff] %v4425_v2  ;;  %5853 = vst [vmem:[#allocation43_spill] sm:$0xff] %v4428_v44  ;;  %v4431_v34 = vld [vmem:[#allocation5 + $0xe0] ss:$16 sps:$4 sm:$0xff]   ;;  %v4434_v47 = vld [vmem:[#allocation5 + $0xe8] ss:$16 sps:$4 sm:$0xff]  }
 0x3ce   :  { %5854 = vst [vmem:[#allocation44_spill] sm:$0xff] %v4431_v34  ;;  %5855 = vst [vmem:[#allocation45_spill] sm:$0xff] %v4434_v47 }
 0x3d0   :  { %1540 = vmatpush1.bf16.msra.mxu0 %v4419_v5  ;;  %1581 = vmatpush1.bf16.msra.mxu1 %v4422_v6  ;;  %v4437_v5 = vld [vmem:[#allocation5 + $0x104] ss:$16 sps:$4 sm:$0xff]   ;;  %v4440_v6 = vld [vmem:[#allocation5 + $0x10c] ss:$16 sps:$4 sm:$0xff]  }
 0x3d1   :  { %1541 = vmatprep.subr.bf16.mxu0 %v4425_v2  ;;  %1582 = vmatprep.subr.bf16.mxu1 %v4428_v44  ;;  %5856 = vst [vmem:[#allocation46_spill] sm:$0xff] %v4437_v5  ;;  %5857 = vst [vmem:[#allocation47_spill] sm:$0xff] %v4440_v6  ;;  %v4443_v2 = vld [vmem:[#allocation5 + $0x100] ss:$16 sps:$4 sm:$0xff]   ;;  %v4446_v44 = vld [vmem:[#allocation5 + $0x108] ss:$16 sps:$4 sm:$0xff]  }
 0x3d2   :  { %5858 = vst [vmem:[#allocation48_spill] sm:$0xff] %v4443_v2  ;;  %5859 = vst [vmem:[#allocation49_spill] sm:$0xff] %v4446_v44 }
 0x3d4   :  { %1542 = vmatpush1.bf16.msra.mxu0 %v4431_v34  ;;  %1583 = vmatpush1.bf16.msra.mxu1 %v4434_v47  ;;  %v4449_v34 = vld [vmem:[#allocation5 + $0x124] ss:$16 sps:$4 sm:$0xff]   ;;  %v4452_v47 = vld [vmem:[#allocation5 + $0x12c] ss:$16 sps:$4 sm:$0xff]  }
 0x3d5   :  { %1543 = vmatprep.subr.bf16.mxu0 %v4437_v5  ;;  %1584 = vmatprep.subr.bf16.mxu1 %v4440_v6  ;;  %5860 = vst [vmem:[#allocation50_spill] sm:$0xff] %v4449_v34  ;;  %5861 = vst [vmem:[#allocation51_spill] sm:$0xff] %v4452_v47  ;;  %v4455_v5 = vld [vmem:[#allocation5 + $0x120] ss:$16 sps:$4 sm:$0xff]   ;;  %v4458_v6 = vld [vmem:[#allocation5 + $0x128] ss:$16 sps:$4 sm:$0xff]  }
 0x3d6   :  { %5862 = vst [vmem:[#allocation52_spill] sm:$0xff] %v4455_v5  ;;  %5863 = vst [vmem:[#allocation53_spill] sm:$0xff] %v4458_v6 }
 0x3d8   :  { %1544 = vmatpush1.bf16.msra.mxu0 %v4443_v2  ;;  %1585 = vmatpush1.bf16.msra.mxu1 %v4446_v44  ;;  %v4461_v2 = vld [vmem:[#allocation5 + $0x144] ss:$16 sps:$4 sm:$0xff]   ;;  %v4464_v44 = vld [vmem:[#allocation5 + $0x14c] ss:$16 sps:$4 sm:$0xff]  }
 0x3d9   :  { %1545 = vmatprep.subr.bf16.mxu0 %v4449_v34  ;;  %1586 = vmatprep.subr.bf16.mxu1 %v4452_v47  ;;  %5864 = vst [vmem:[#allocation54_spill] sm:$0xff] %v4461_v2  ;;  %5865 = vst [vmem:[#allocation55_spill] sm:$0xff] %v4464_v44  ;;  %v4467_v34 = vld [vmem:[#allocation5 + $0x140] ss:$16 sps:$4 sm:$0xff]   ;;  %v4470_v47 = vld [vmem:[#allocation5 + $0x148] ss:$16 sps:$4 sm:$0xff]  }
 0x3da   :  { %5866 = vst [vmem:[#allocation56_spill] sm:$0xff] %v4467_v34  ;;  %5867 = vst [vmem:[#allocation57_spill] sm:$0xff] %v4470_v47 }
 0x3dc   :  { %1546 = vmatpush1.bf16.msra.mxu0 %v4455_v5  ;;  %1587 = vmatpush1.bf16.msra.mxu1 %v4458_v6  ;;  %v4473_v5 = vld [vmem:[#allocation5 + $0x164] ss:$16 sps:$4 sm:$0xff]   ;;  %v4476_v6 = vld [vmem:[#allocation5 + $0x16c] ss:$16 sps:$4 sm:$0xff]  }
 0x3dd   :  { %1547 = vmatprep.subr.bf16.mxu0 %v4461_v2  ;;  %1588 = vmatprep.subr.bf16.mxu1 %v4464_v44  ;;  %5868 = vst [vmem:[#allocation58_spill] sm:$0xff] %v4473_v5  ;;  %5869 = vst [vmem:[#allocation59_spill] sm:$0xff] %v4476_v6  ;;  %v4479_v2 = vld [vmem:[#allocation5 + $0x160] ss:$16 sps:$4 sm:$0xff]   ;;  %v4482_v44 = vld [vmem:[#allocation5 + $0x168] ss:$16 sps:$4 sm:$0xff]  }
 0x3de   :  { %5870 = vst [vmem:[#allocation60_spill] sm:$0xff] %v4479_v2  ;;  %5871 = vst [vmem:[#allocation61_spill] sm:$0xff] %v4482_v44 }
 0x3e0   :  { %1548 = vmatpush1.bf16.msra.mxu0 %v4467_v34  ;;  %1589 = vmatpush1.bf16.msra.mxu1 %v4470_v47  ;;  %v4485_v34 = vld [vmem:[#allocation5 + $0x184] ss:$16 sps:$4 sm:$0xff]   ;;  %v4488_v47 = vld [vmem:[#allocation5 + $0x18c] ss:$16 sps:$4 sm:$0xff]  }
 0x3e1   :  { %1549 = vmatprep.subr.bf16.mxu0 %v4473_v5  ;;  %1590 = vmatprep.subr.bf16.mxu1 %v4476_v6  ;;  %5872 = vst [vmem:[#allocation62_spill] sm:$0xff] %v4485_v34  ;;  %5873 = vst [vmem:[#allocation63_spill] sm:$0xff] %v4488_v47  ;;  %v4491_v5 = vld [vmem:[#allocation5 + $0x180] ss:$16 sps:$4 sm:$0xff]   ;;  %v4494_v6 = vld [vmem:[#allocation5 + $0x188] ss:$16 sps:$4 sm:$0xff]  }
 0x3e2   :  { %5874 = vst [vmem:[#allocation64_spill] sm:$0xff] %v4491_v5  ;;  %5875 = vst [vmem:[#allocation71_spill] sm:$0xff] %v4494_v6 }
 0x3e4   :  { %1550 = vmatpush1.bf16.msra.mxu0 %v4479_v2  ;;  %1591 = vmatpush1.bf16.msra.mxu1 %v4482_v44  ;;  %v4497_v2 = vld [vmem:[#allocation5 + $0x1a4] ss:$16 sps:$4 sm:$0xff]   ;;  %v4500_v44 = vld [vmem:[#allocation5 + $0x1ac] ss:$16 sps:$4 sm:$0xff]  }
 0x3e5   :  { %1551 = vmatprep.subr.bf16.mxu0 %v4485_v34  ;;  %1592 = vmatprep.subr.bf16.mxu1 %v4488_v47  ;;  %5876 = vst [vmem:[#allocation72_spill] sm:$0xff] %v4497_v2  ;;  %5877 = vst [vmem:[#allocation15_spill] sm:$0xff] %v4500_v44  ;;  %v4503_v34 = vld [vmem:[#allocation5 + $0x1a0] ss:$16 sps:$4 sm:$0xff]   ;;  %v4506_v47 = vld [vmem:[#allocation5 + $0x1a8] ss:$16 sps:$4 sm:$0xff]  }
 0x3e6   :  { %5878 = vst [vmem:[#allocation16_spill] sm:$0xff] %v4503_v34  ;;  %5879 = vst [vmem:[#allocation17_spill] sm:$0xff] %v4506_v47 }
 0x3e8   :  { %1552 = vmatpush1.bf16.msra.mxu0 %v4491_v5  ;;  %1593 = vmatpush1.bf16.msra.mxu1 %v4494_v6  ;;  %v4509_v5 = vld [vmem:[#allocation5 + $0x1c4] ss:$16 sps:$4 sm:$0xff]   ;;  %v4512_v6 = vld [vmem:[#allocation5 + $0x1cc] ss:$16 sps:$4 sm:$0xff]  }
 0x3e9   :  { %1553 = vmatprep.subr.bf16.mxu0 %v4497_v2  ;;  %1594 = vmatprep.subr.bf16.mxu1 %v4500_v44  ;;  %5880 = vst [vmem:[#allocation18_spill] sm:$0xff] %v4509_v5  ;;  %5881 = vst [vmem:[#allocation19_spill] sm:$0xff] %v4512_v6  ;;  %v4515_v2 = vld [vmem:[#allocation5 + $0x1c0] ss:$16 sps:$4 sm:$0xff]   ;;  %v4518_v44 = vld [vmem:[#allocation5 + $0x1c8] ss:$16 sps:$4 sm:$0xff]  }
 0x3ea   :  { %5882 = vst [vmem:[#allocation73_spill] sm:$0xff] %v4515_v2  ;;  %5883 = vst [vmem:[#allocation74_spill] sm:$0xff] %v4518_v44 }
 0x3ec   :  { %1554 = vmatpush1.bf16.msra.mxu0 %v4503_v34  ;;  %1595 = vmatpush1.bf16.msra.mxu1 %v4506_v47  ;;  %v4521_v34 = vld [vmem:[#allocation5 + $0x1e4] ss:$16 sps:$4 sm:$0xff]   ;;  %v4524_v47 = vld [vmem:[#allocation5 + $0x1ec] ss:$16 sps:$4 sm:$0xff]  }
 0x3ed   :  { %1555 = vmatprep.subr.bf16.mxu0 %v4509_v5  ;;  %1596 = vmatprep.subr.bf16.mxu1 %v4512_v6  ;;  %5884 = vst [vmem:[#allocation75_spill] sm:$0xff] %v4521_v34  ;;  %5885 = vst [vmem:[#allocation76_spill] sm:$0xff] %v4524_v47  ;;  %v4527_v5 = vld [vmem:[#allocation5 + $0x1e0] ss:$16 sps:$4 sm:$0xff]   ;;  %v4530_v6 = vld [vmem:[#allocation5 + $0x1e8] ss:$16 sps:$4 sm:$0xff]  }
 0x3ee   :  { %5886 = vst [vmem:[#allocation77_spill] sm:$0xff] %v4527_v5  ;;  %5887 = vst [vmem:[#allocation78_spill] sm:$0xff] %v4530_v6 }
 0x3f0   :  { %1556 = vmatpush1.bf16.msra.mxu0 %v4515_v2  ;;  %1597 = vmatpush1.bf16.msra.mxu1 %v4518_v44 }
 0x3f1   :  { %1557 = vmatprep.subr.bf16.mxu0 %v4521_v34  ;;  %1598 = vmatprep.subr.bf16.mxu1 %v4524_v47 }
 0x3f4   :  { %1558 = vmatpush1.bf16.msra.mxu0 %v4527_v5  ;;  %1599 = vmatpush1.bf16.msra.mxu1 %v4530_v6 }
 0x3f5   :  { %1648 = vmatprep.subr.bf16.mxu0 %v4273_v22  ;;  %1689 = vmatprep.subr.bf16.mxu1 %v4276_v23 }
 0x46a   :  { %v1328_v44 = vpop.f32.mrb[20].mxu0  ;;  %v1369_v2 = vpop.f32.mrb[20].mxu1 }
 0x46b   :  { %v1329_v34 = vadd.f32 %v1328_v44, %v5813_v31  ;;  %v1330_v43 = vpop.f32.mrb[21].mxu0  ;;  %v1371_v42 = vpop.f32.mrb[21].mxu1  ;;  %v1370_v23 = vadd.f32 %v1369_v2, %v5816_v4 }
 0x46c   :  { %v1331_v47 = vadd.f32 %v1330_v43, %v5814_v35  ;;  %v1332_v41 = vpop.f32.mrb[22].mxu0  ;;  %v1373_v38 = vpop.f32.mrb[22].mxu1  ;;  %v1372_v22 = vadd.f32 %v1371_v42, %v5815_v45 }
 0x46d   :  { %v2779_v10 = vmul.f32 -1.442695, %v1329_v34  ;;  %v1333_v5 = vpop.f32.mrb[23].mxu0  ;;  %v1374_v33 = vpop.f32.mrb[23].mxu1 }
 0x46e   :  { %v2780_v32 = vmul.f32 -1.442695, %v1331_v47  ;;  %v2781_v6 = vmul.f32 -1.442695, %v1372_v22  ;;  %v1405_v41 = vpop.permute.xlu1 %1404 }
 0x46f   :  { %3128 = vpow2.f32 %v2779_v10  ;;  %v1407_v33 = vmul.f32 %v1405_v41, %v5817_v11 }
 0x470   :  { %3130 = vpow2.f32 %v2780_v32  ;;  %v1408_v32 = vmul.f32 %v1405_v41, %v5818_v14  ;;  %v1410_v14 = vmul.f32 %v1405_v41, %v5820_v37 }
 0x471   :  { %3132 = vpow2.f32 %v2781_v6 }
 0x472   :  { %3134 = vtanh.f32 %v1370_v23 }
 0x479   :  { %v3129_v24 = vpop.eup %3128 }
 0x47a   :  { %v3131_v21 = vpop.eup %3130  ;;  %v1379_v44 = vadd.f32 1.0, %v3129_v24  ;;  %v1411_v24 = vadd.f32 %v1407_v33, %v5770_v60 }
 0x47b   :  { %v1385_v31 = vadd.f32 1.0, %v3131_v21  ;;  %v3133_v38 = vpop.eup %3132  ;;  %v1412_v21 = vadd.f32 %v1408_v32, %v5819_v53  ;;  %v1414_v32 = vadd.f32 %v1410_v14, %v3969_v28 }
 0x47c   :  { %3136 = vrcp.f32 %v1379_v44  ;;  %v3135_v43 = vpop.eup %3134  ;;  %v1392_v34 = vadd.f32 1.0, %v3133_v38 }
 0x47d   :  { %3138 = vrcp.f32 %v1385_v31 }
 0x47e   :  { %3140 = vrcp.f32 %v1392_v34 }
 0x486   :  { %v3137_v10 = vpop.eup %3136 }
 0x487   :  { %v3139_v42 = vpop.eup %3138  ;;  %v1396_v22 = vmul.f32 %v3137_v10, %v3135_v43 }
 0x488   :  { %v1395_v47 = vmul.f32 %v3139_v42, %v4289_v40  ;;  %v1409_v42 = vmul.f32 %v1405_v41, %v3972_v30  ;;  %v3141_v34 = vpop.eup %3140 }
 0x48a   :  { %v1449_v5 = vpop.f32.mrb[24].mxu0  ;;  %v1490_v23 = vpop.f32.mrb[24].mxu1  ;;  %v4544_v31 = vadd.f32 %v1396_v22, %v1395_v47  ;;  %v1413_v47 = vadd.f32 %v1409_v42, %v3977_v39 }
 0x48b   :  { %v1497_v6 = vadd.f32 %v1449_v5, %v1411_v24  ;;  %v1451_v2 = vpop.f32.mrb[25].mxu0  ;;  %v1492_v44 = vpop.f32.mrb[25].mxu1 }
 0x48c   :  { %v1498_v11 = vadd.f32 %v1451_v2, %v1412_v21  ;;  %v1453_v4 = vpop.f32.mrb[26].mxu0  ;;  %v1494_v43 = vpop.f32.mrb[26].mxu1  ;;  %3142 = vtanh.f32 %v4544_v31  ;;  %v1500_v22 = vadd.f32 %v1492_v44, %v1414_v32 }
 0x48d   :  { %v2783_v40 = vmul.f32 -1.442695, %v1497_v6  ;;  %v1454_v38 = vpop.f32.mrb[27].mxu0  ;;  %v1495_v33 = vpop.f32.mrb[27].mxu1  ;;  %v1499_v4 = vadd.f32 %v1490_v23, %v1413_v47 }
 0x48e   :  { %v2784_v10 = vmul.f32 -1.442695, %v1498_v11  ;;  %v2785_v5 = vmul.f32 -1.442695, %v1500_v22 }
 0x48f   :  { %3144 = vpow2.f32 %v2783_v40 }
 0x490   :  { %3146 = vpow2.f32 %v2784_v10 }
 0x491   :  { %3148 = vpow2.f32 %v2785_v5  ;;  %v5915_v5 = vld [vmem:[#allocation43_spill] sm:$0xff] }
 0x492   :  { %3150 = vtanh.f32 %v1499_v4  ;;  %v5916_v4 = vld [vmem:[#allocation44_spill] sm:$0xff] }
 0x496   :  { %v3143_v24 = vpop.eup %3142 }
 0x497   :  { %v1399_v21 = vmul.f32 %v3143_v24, %v3141_v34  ;;  %v5914_v24 = vld [vmem:[#allocation42_spill] sm:$0xff] }
 0x499   :  { %v3145_v2 = vpop.eup %3144  ;;  %v1526_v43 = vpack.c.bf16 %v1399_v21, %v1399_v21  ;;  %v5917_v21 = vld [vmem:[#allocation45_spill] sm:$0xff] }
 0x49a   :  { %v3147_v6 = vpop.eup %3146  ;;  %v1504_v38 = vadd.f32 1.0, %v3145_v2  ;;  %v5918_v2 = vld [vmem:[#allocation46_spill] sm:$0xff] }
 0x49b   :  { %v1510_v11 = vadd.f32 1.0, %v3147_v6  ;;  %1559 = vmatprep.mubr.bf16.mxu0 %v1526_v43  ;;  %1600 = vmatprep.mubr.bf16.mxu1 %v1526_v43  ;;  %v3149_v14 = vpop.eup %3148  ;;  %v5919_v43 = vld [vmem:[#allocation47_spill] sm:$0xff]  ;;  %v5920_v6 = vld [vmem:[#allocation48_spill] sm:$0xff] }
 0x49c   :  { %3152 = vrcp.f32 %v1504_v38  ;;  %v3151_v41 = vpop.eup %3150  ;;  %v1517_v10 = vadd.f32 1.0, %v3149_v14  ;;  %v5921_v38 = vld [vmem:[#allocation49_spill] sm:$0xff]  ;;  %v5923_v14 = vld [vmem:[#allocation51_spill] sm:$0xff] }
 0x49d   :  { %3154 = vrcp.f32 %v1510_v11  ;;  %v5922_v11 = vld [vmem:[#allocation50_spill] sm:$0xff] }
 0x49e   :  { %3156 = vrcp.f32 %v1517_v10  ;;  %v5928_v10 = vld [vmem:[#allocation56_spill] sm:$0xff] }
 0x4a6   :  { %v3153_v44 = vpop.eup %3152 }
 0x4a7   :  { %v3155_v40 = vpop.eup %3154  ;;  %v1521_v33 = vmul.f32 %v3153_v44, %v3151_v41  ;;  %v5924_v41 = vld [vmem:[#allocation52_spill] sm:$0xff]  ;;  %v5925_v44 = vld [vmem:[#allocation53_spill] sm:$0xff] }
 0x4a8   :  { %v1520_v23 = vmul.f32 %v3155_v40, %v4296_v46  ;;  %v3157_v42 = vpop.eup %3156  ;;  %v5908_v46 = vld [vmem:[#allocation36_spill] sm:$0xff]  ;;  %v5926_v40 = vld [vmem:[#allocation54_spill] sm:$0xff] }
 0x4aa   :  { %v4552_v32 = vadd.f32 %v1521_v33, %v1520_v23  ;;  %v5927_v33 = vld [vmem:[#allocation55_spill] sm:$0xff]  ;;  %v5929_v23 = vld [vmem:[#allocation57_spill] sm:$0xff] }
 0x4ac   :  { %3158 = vtanh.f32 %v4552_v32 }
 0x4b6   :  { %v3159_v22 = vpop.eup %3158 }
 0x4b7   :  { %v1524_v34 = vmul.f32 %v3159_v22, %v3157_v42  ;;  %v5930_v42 = vld [vmem:[#allocation58_spill] sm:$0xff]  ;;  %v5931_v22 = vld [vmem:[#allocation59_spill] sm:$0xff] }
 0x4b9   :  { %v1525_v47 = vpack.c.bf16 %v1524_v34, %v1524_v34  ;;  %v5932_v34 = vld [vmem:[#allocation60_spill] sm:$0xff] }
 0x4bb   :  { %1560 = vmatmul.mubr.bf16.vlgmr.msra.gmra.mrb[28].mxu0 %v1525_v47  ;;  %1601 = vmatmul.mubr.bf16.vlgmr.msra.gmra.mrb[28].mxu1 %v1525_v47 }
 0x4bc   :  { %1649 = vmatpush1.bf16.msra.mxu0 %v4127_v57  ;;  %1690 = vmatpush1.bf16.msra.mxu1 %v4130_v3  ;;  %v5888_v57 = vld [vmem:[#allocation22_spill] sm:$0xff]  ;;  %v5889_v3 = vld [vmem:[#allocation23_spill] sm:$0xff] }
 0x4bd   :  { %1650 = vmatprep.subr.bf16.mxu0 %v4133_v51  ;;  %1691 = vmatprep.subr.bf16.mxu1 %v4136_v27  ;;  %v5890_v51 = vld [vmem:[#allocation24_spill] sm:$0xff]  ;;  %v5891_v27 = vld [vmem:[#allocation25_spill] sm:$0xff] }
 0x4be   :  { %1680 = vmatprep.mubr.bf16.mxu0 %v5704_v0  ;;  %1721 = vmatprep.mubr.bf16.mxu1 %v5704_v0 }
 0x4c0   :  { %1651 = vmatpush1.bf16.msra.mxu0 %v4141_v49  ;;  %1692 = vmatpush1.bf16.msra.mxu1 %v4144_v55  ;;  %v5892_v49 = vld [vmem:[#allocation26_spill] sm:$0xff]  ;;  %v5893_v55 = vld [vmem:[#allocation27_spill] sm:$0xff] }
 0x4c1   :  { %1652 = vmatprep.subr.bf16.mxu0 %v4147_v52  ;;  %1693 = vmatprep.subr.bf16.mxu1 %v4150_v56  ;;  %v5894_v52 = vld [vmem:[#allocation28_spill] sm:$0xff]  ;;  %v5895_v56 = vld [vmem:[#allocation29_spill] sm:$0xff] }
 0x4c4   :  { %1653 = vmatpush1.bf16.msra.mxu0 %v4153_v48  ;;  %1694 = vmatpush1.bf16.msra.mxu1 %v4156_v54  ;;  %v5896_v48 = vld [vmem:[#allocation30_spill] sm:$0xff]  ;;  %v5897_v54 = vld [vmem:[#allocation31_spill] sm:$0xff] }
 0x4c5   :  { %1654 = vmatprep.subr.bf16.mxu0 %v4159_v25  ;;  %1695 = vmatprep.subr.bf16.mxu1 %v4162_v26  ;;  %v5898_v25 = vld [vmem:[#allocation9_spill] sm:$0xff]  ;;  %v5899_v26 = vld [vmem:[#allocation10_spill] sm:$0xff] }
 0x4c8   :  { %1655 = vmatpush1.bf16.msra.mxu0 %v4165_v36  ;;  %1696 = vmatpush1.bf16.msra.mxu1 %v4168_v50  ;;  %v5900_v36 = vld [vmem:[#allocation65_spill] sm:$0xff]  ;;  %v5901_v50 = vld [vmem:[#allocation66_spill] sm:$0xff] }
 0x4c9   :  { %1656 = vmatprep.subr.bf16.mxu0 %v5821_v59  ;;  %1697 = vmatprep.subr.bf16.mxu1 %v5822_v7  ;;  %v5909_v59 = vld [vmem:[#allocation37_spill] sm:$0xff]  ;;  %v5910_v7 = vld [vmem:[#allocation38_spill] sm:$0xff] }
 0x4cc   :  { %1657 = vmatpush1.bf16.msra.mxu0 %v5823_v8  ;;  %1698 = vmatpush1.bf16.msra.mxu1 %v5824_v9  ;;  %v5911_v8 = vld [vmem:[#allocation39_spill] sm:$0xff]  ;;  %v5912_v9 = vld [vmem:[#allocation40_spill] sm:$0xff] }
 0x4cd   :  { %1658 = vmatprep.subr.bf16.mxu0 %v5825_v12  ;;  %1699 = vmatprep.subr.bf16.mxu1 %v4186_v29  ;;  %v5907_v29 = vld [vmem:[#allocation35_spill] sm:$0xff]  ;;  %v5913_v12 = vld [vmem:[#allocation41_spill] sm:$0xff] }
 0x4d0   :  { %1659 = vmatpush1.bf16.msra.mxu0 %v4189_v62  ;;  %1700 = vmatpush1.bf16.msra.mxu1 %v4192_v58  ;;  %v5902_v62 = vld [vmem:[#allocation69_spill] sm:$0xff]  ;;  %v5903_v58 = vld [vmem:[#allocation70_spill] sm:$0xff] }
 0x4d1   :  { %1660 = vmatprep.subr.bf16.mxu0 %v4195_v61  ;;  %1701 = vmatprep.subr.bf16.mxu1 %v4198_v1  ;;  %v5904_v61 = vld [vmem:[#allocation32_spill] sm:$0xff]  ;;  %v5905_v1 = vld [vmem:[#allocation33_spill] sm:$0xff] }
 0x4d4   :  { %1661 = vmatpush1.bf16.msra.mxu0 %v4201_v63  ;;  %1702 = vmatpush1.bf16.msra.mxu1 %v4326_v13  ;;  %v5906_v63 = vld [vmem:[#allocation34_spill] sm:$0xff] }
 0x4d5   :  { %1662 = vmatprep.subr.bf16.mxu0 %v4329_v15  ;;  %1703 = vmatprep.subr.bf16.mxu1 %v4332_v16 }
 0x4d8   :  { %1663 = vmatpush1.bf16.msra.mxu0 %v4335_v17  ;;  %1704 = vmatpush1.bf16.msra.mxu1 %v4338_v18 }
 0x4d9   :  { %1760 = vmatprep.subr.bf16.mxu0 %v4341_v19  ;;  %1801 = vmatprep.subr.bf16.mxu1 %v4344_v20 }
 0x4db   :  { %1681 = vmatmul.mubr.bf16.vlgmr.msra.gmra.mrb[32].mxu0 %v1525_v47  ;;  %1722 = vmatmul.mubr.bf16.vlgmr.msra.gmra.mrb[32].mxu1 %v1525_v47  ;;  %v5933_v47 = vld [vmem:[#allocation61_spill] sm:$0xff] }
 0x4dc   :  { %1761 = vmatpush1.bf16.msra.mxu0 %v5888_v57  ;;  %1802 = vmatpush1.bf16.msra.mxu1 %v5889_v3 }
 0x4dd   :  { %1762 = vmatprep.subr.bf16.mxu0 %v5890_v51  ;;  %1803 = vmatprep.subr.bf16.mxu1 %v5891_v27 }
 0x4e0   :  { %1763 = vmatpush1.bf16.msra.mxu0 %v5892_v49  ;;  %1804 = vmatpush1.bf16.msra.mxu1 %v5893_v55 }
 0x4e1   :  { %1764 = vmatprep.subr.bf16.mxu0 %v5894_v52  ;;  %1805 = vmatprep.subr.bf16.mxu1 %v5895_v56 }
 0x4e4   :  { %1765 = vmatpush1.bf16.msra.mxu0 %v5896_v48  ;;  %1806 = vmatpush1.bf16.msra.mxu1 %v5897_v54 }
 0x4e5   :  { %1766 = vmatprep.subr.bf16.mxu0 %v5898_v25  ;;  %1807 = vmatprep.subr.bf16.mxu1 %v5899_v26 }
 0x4e8   :  { %1767 = vmatpush1.bf16.msra.mxu0 %v5900_v36  ;;  %1808 = vmatpush1.bf16.msra.mxu1 %v5901_v50 }
 0x4e9   :  { %1768 = vmatprep.subr.bf16.mxu0 %v5902_v62  ;;  %1809 = vmatprep.subr.bf16.mxu1 %v5903_v58 }
 0x4ec   :  { %1769 = vmatpush1.bf16.msra.mxu0 %v5904_v61  ;;  %1810 = vmatpush1.bf16.msra.mxu1 %v5905_v1 }
 0x4ed   :  { %1770 = vmatprep.subr.bf16.mxu0 %v5906_v63  ;;  %1811 = vmatprep.subr.bf16.mxu1 %v5907_v29 }
 0x4f0   :  { %1771 = vmatpush1.bf16.msra.mxu0 %v5908_v46  ;;  %1812 = vmatpush1.bf16.msra.mxu1 %v5909_v59 }
 0x4f1   :  { %1772 = vmatprep.subr.bf16.mxu0 %v5910_v7  ;;  %1813 = vmatprep.subr.bf16.mxu1 %v5911_v8 }
 0x4f4   :  { %1773 = vmatpush1.bf16.msra.mxu0 %v5912_v9  ;;  %1814 = vmatpush1.bf16.msra.mxu1 %v5913_v12 }
 0x4f5   :  { %1774 = vmatprep.subr.bf16.mxu0 %v5914_v24  ;;  %1815 = vmatprep.subr.bf16.mxu1 %v5915_v5 }
 0x4f8   :  { %1775 = vmatpush1.bf16.msra.mxu0 %v5916_v4  ;;  %1816 = vmatpush1.bf16.msra.mxu1 %v5917_v21 }
 0x4f9   :  { %1776 = vmatprep.subr.bf16.mxu0 %v5918_v2  ;;  %1817 = vmatprep.subr.bf16.mxu1 %v5919_v43 }
 0x4fc   :  { %1777 = vmatpush1.bf16.msra.mxu0 %v5920_v6  ;;  %1818 = vmatpush1.bf16.msra.mxu1 %v5921_v38 }
 0x4fd   :  { %1778 = vmatprep.subr.bf16.mxu0 %v5922_v11  ;;  %1819 = vmatprep.subr.bf16.mxu1 %v5923_v14  ;;  %v5934_v14 = vld [vmem:[#allocation62_spill] sm:$0xff]  ;;  %v5952_v11 = vld [vmem:[#allocation11_spill] sm:$0xff] }
 0x500   :  { %1779 = vmatpush1.bf16.msra.mxu0 %v5924_v41  ;;  %1820 = vmatpush1.bf16.msra.mxu1 %v5925_v44  ;;  %v5935_v41 = vld [vmem:[#allocation63_spill] sm:$0xff]  ;;  %v5936_v44 = vld [vmem:[#allocation64_spill] sm:$0xff] }
 0x501   :  { %1780 = vmatprep.subr.bf16.mxu0 %v5926_v40  ;;  %1821 = vmatprep.subr.bf16.mxu1 %v5927_v33  ;;  %v5937_v40 = vld [vmem:[#allocation71_spill] sm:$0xff]  ;;  %v5938_v33 = vld [vmem:[#allocation72_spill] sm:$0xff] }
 0x504   :  { %1781 = vmatpush1.bf16.msra.mxu0 %v5928_v10  ;;  %1822 = vmatpush1.bf16.msra.mxu1 %v5929_v23  ;;  %v5939_v10 = vld [vmem:[#allocation15_spill] sm:$0xff]  ;;  %v5940_v23 = vld [vmem:[#allocation16_spill] sm:$0xff] }
 0x505   :  { %1782 = vmatprep.subr.bf16.mxu0 %v5930_v42  ;;  %1823 = vmatprep.subr.bf16.mxu1 %v5931_v22  ;;  %v5941_v42 = vld [vmem:[#allocation17_spill] sm:$0xff]  ;;  %v5942_v22 = vld [vmem:[#allocation18_spill] sm:$0xff] }
 0x508   :  { %1783 = vmatpush1.bf16.msra.mxu0 %v5932_v34  ;;  %1824 = vmatpush1.bf16.msra.mxu1 %v5933_v47  ;;  %v5943_v34 = vld [vmem:[#allocation19_spill] sm:$0xff]  ;;  %v5944_v47 = vld [vmem:[#allocation73_spill] sm:$0xff] }
 0x509   :  { %1784 = vmatprep.subr.bf16.mxu0 %v5934_v14  ;;  %1825 = vmatprep.subr.bf16.mxu1 %v5935_v41  ;;  %v5945_v14 = vld [vmem:[#allocation74_spill] sm:$0xff]  ;;  %v5946_v41 = vld [vmem:[#allocation75_spill] sm:$0xff] }
 0x50c   :  { %1785 = vmatpush1.bf16.msra.mxu0 %v5936_v44  ;;  %1826 = vmatpush1.bf16.msra.mxu1 %v5937_v40  ;;  %v5947_v44 = vld [vmem:[#allocation76_spill] sm:$0xff]  ;;  %v5948_v40 = vld [vmem:[#allocation77_spill] sm:$0xff] }
 0x50d   :  { %1786 = vmatprep.subr.bf16.mxu0 %v5938_v33  ;;  %1827 = vmatprep.subr.bf16.mxu1 %v5939_v10  ;;  %v5949_v33 = vld [vmem:[#allocation78_spill] sm:$0xff]  ;;  %v5950_v10 = vld [vmem:[#allocation20_spill] sm:$0xff] }
 0x510   :  { %1787 = vmatpush1.bf16.msra.mxu0 %v5940_v23  ;;  %1828 = vmatpush1.bf16.msra.mxu1 %v5941_v42  ;;  %v5951_v23 = vld [vmem:[#allocation21_spill] sm:$0xff] }
 0x511   :  { %1788 = vmatprep.subr.bf16.mxu0 %v5942_v22  ;;  %1829 = vmatprep.subr.bf16.mxu1 %v5943_v34 }
 0x514   :  { %1789 = vmatpush1.bf16.msra.mxu0 %v5944_v47  ;;  %1830 = vmatpush1.bf16.msra.mxu1 %v5945_v14 }
 0x515   :  { %1790 = vmatprep.subr.bf16.mxu0 %v5946_v41  ;;  %1831 = vmatprep.subr.bf16.mxu1 %v5947_v44 }
 0x518   :  { %1791 = vmatpush1.bf16.msra.mxu0 %v5948_v40  ;;  %1832 = vmatpush1.bf16.msra.mxu1 %v5949_v33 }
 0x519   :  { %1881 = vmatprep.subr.bf16.mxu0 %v5950_v10  ;;  %1922 = vmatprep.subr.bf16.mxu1 %v5951_v23  ;;  %v5953_v23 = vld [vmem:[#allocation14_spill] sm:$0xff] }
 0x58e   :  { %v1561_v42 = vpop.f32.mrb[28].mxu0  ;;  %v1602_v22 = vpop.f32.mrb[28].mxu1 }
 0x58f   :  { %v1562_v34 = vadd.f32 %v1561_v42, %v5952_v11  ;;  %v1563_v38 = vpop.f32.mrb[29].mxu0  ;;  %v1604_v47 = vpop.f32.mrb[29].mxu1  ;;  %v1603_v21 = vadd.f32 %v1602_v22, %v5953_v23 }
 0x590   :  { %v1564_v14 = vadd.f32 %v1563_v38, %v5814_v35  ;;  %v1565_v6 = vpop.f32.mrb[30].mxu0  ;;  %v1606_v41 = vpop.f32.mrb[30].mxu1  ;;  %v1605_v10 = vadd.f32 %v1604_v47, %v5815_v45 }
 0x591   :  { %v2786_v43 = vmul.f32 -1.442695, %v1562_v34  ;;  %v1566_v44 = vpop.f32.mrb[31].mxu0  ;;  %v1607_v2 = vpop.f32.mrb[31].mxu1 }
 0x592   :  { %v2787_v40 = vmul.f32 -1.442695, %v1564_v14  ;;  %v2788_v33 = vmul.f32 -1.442695, %v1605_v10  ;;  %v1638_v38 = vpop.permute.xlu0 %1637  ;;  %v5954_v2 = vld [vmem:[#allocation67_spill] sm:$0xff]  ;;  %v5955_v44 = vld [vmem:[#allocation68_spill] sm:$0xff] }
 0x593   :  { %3160 = vpow2.f32 %v2786_v43  ;;  %v1640_v14 = vmul.f32 %v1638_v38, %v5954_v2 }
 0x594   :  { %3162 = vpow2.f32 %v2787_v40  ;;  %v1641_v40 = vmul.f32 %v1638_v38, %v5955_v44  ;;  %v1643_v44 = vmul.f32 %v1638_v38, %v5820_v37 }
 0x595   :  { %3164 = vpow2.f32 %v2788_v33 }
 0x596   :  { %3166 = vtanh.f32 %v1603_v21 }
 0x59d   :  { %v3161_v4 = vpop.eup %3160 }
 0x59e   :  { %v3163_v5 = vpop.eup %3162  ;;  %v1612_v42 = vadd.f32 1.0, %v3161_v4  ;;  %v1644_v4 = vadd.f32 %v1640_v14, %v5770_v60 }
 0x59f   :  { %v1618_v11 = vadd.f32 1.0, %v3163_v5  ;;  %v3165_v6 = vpop.eup %3164  ;;  %v1645_v5 = vadd.f32 %v1641_v40, %v5819_v53  ;;  %v1647_v40 = vadd.f32 %v1643_v44, %v3969_v28 }
 0x5a0   :  { %3168 = vrcp.f32 %v1612_v42  ;;  %v3167_v41 = vpop.eup %3166  ;;  %v1625_v10 = vadd.f32 1.0, %v3165_v6 }
 0x5a1   :  { %3170 = vrcp.f32 %v1618_v11 }
 0x5a2   :  { %3172 = vrcp.f32 %v1625_v10 }
 0x5aa   :  { %v3169_v43 = vpop.eup %3168 }
 0x5ab   :  { %v3171_v34 = vpop.eup %3170  ;;  %v1629_v47 = vmul.f32 %v3169_v43, %v3167_v41 }
 0x5ac   :  { %v1628_v22 = vmul.f32 %v3171_v34, %v4544_v31  ;;  %v1642_v34 = vmul.f32 %v1638_v38, %v3972_v30  ;;  %v3173_v10 = vpop.eup %3172 }
 0x5ae   :  { %v1682_v33 = vpop.f32.mrb[32].mxu0  ;;  %v1723_v21 = vpop.f32.mrb[32].mxu1  ;;  %v4662_v11 = vadd.f32 %v1629_v47, %v1628_v22 }
 0x5af   :  { %v1730_v42 = vadd.f32 %v1682_v33, %v1644_v4  ;;  %v1684_v23 = vpop.f32.mrb[33].mxu0  ;;  %v1725_v2 = vpop.f32.mrb[33].mxu1 }
 0x5b0   :  { %v1731_v45 = vadd.f32 %v1684_v23, %v1645_v5  ;;  %v1686_v35 = vpop.f32.mrb[34].mxu0  ;;  %v1727_v41 = vpop.f32.mrb[34].mxu1  ;;  %3174 = vtanh.f32 %v4662_v11  ;;  %v1733_v47 = vadd.f32 %v1725_v2, %v1647_v40  ;;  %v1646_v23 = vadd.f32 %v1642_v34, %v3977_v39 }
 0x5b1   :  { %v2790_v31 = vmul.f32 -1.442695, %v1730_v42  ;;  %v1687_v6 = vpop.f32.mrb[35].mxu0  ;;  %v1728_v14 = vpop.f32.mrb[35].mxu1 }
 0x5b2   :  { %v2791_v43 = vmul.f32 -1.442695, %v1731_v45  ;;  %v2792_v4 = vmul.f32 -1.442695, %v1733_v47  ;;  %v1732_v35 = vadd.f32 %v1723_v21, %v1646_v23 }
 0x5b3   :  { %3176 = vpow2.f32 %v2790_v31 }
 0x5b4   :  { %3178 = vpow2.f32 %v2791_v43 }
 0x5b5   :  { %3180 = vpow2.f32 %v2792_v4  ;;  %v4676_v4 = vld [vmem:[#allocation3 + $0x8] ss:$16 sps:$4 sm:$0xff]  }
 0x5b6   :  { %3182 = vtanh.f32 %v1732_v35  ;;  %v4682_v35 = vld [vmem:[#allocation3 + $0x2c] ss:$16 sps:$4 sm:$0xff]  }
 0x5ba   :  { %v3175_v22 = vpop.eup %3174 }
 0x5bb   :  { %v1632_v33 = vmul.f32 %v3175_v22, %v3173_v10  ;;  %v4673_v22 = vld [vmem:[#allocation3] ss:$16 sps:$4 sm:$0xff]  }
 0x5bd   :  { %v3177_v5 = vpop.eup %3176  ;;  %v1759_v41 = vpack.c.bf16 %v1632_v33, %v1632_v33  ;;  %v4687_v33 = vld [vmem:[#allocation3 + $0x20] ss:$16 sps:$4 sm:$0xff]  }
 0x5be   :  { %v3179_v42 = vpop.eup %3178  ;;  %v1737_v6 = vadd.f32 1.0, %v3177_v5  ;;  %v4690_v5 = vld [vmem:[#allocation3 + $0x28] ss:$16 sps:$4 sm:$0xff]  }
 0x5bf   :  { %v1743_v45 = vadd.f32 1.0, %v3179_v42  ;;  %1792 = vmatprep.mubr.bf16.mxu0 %v1759_v41  ;;  %1833 = vmatprep.mubr.bf16.mxu1 %v1759_v41  ;;  %v3181_v38 = vpop.eup %3180  ;;  %v4693_v41 = vld [vmem:[#allocation3 + $0x44] ss:$16 sps:$4 sm:$0xff]   ;;  %v4696_v42 = vld [vmem:[#allocation3 + $0x4c] ss:$16 sps:$4 sm:$0xff]  }
 0x5c0   :  { %3184 = vrcp.f32 %v1737_v6  ;;  %v3183_v2 = vpop.eup %3182  ;;  %v1750_v43 = vadd.f32 1.0, %v3181_v38  ;;  %v4699_v6 = vld [vmem:[#allocation3 + $0x40] ss:$16 sps:$4 sm:$0xff]   ;;  %v4705_v38 = vld [vmem:[#allocation3 + $0x64] ss:$16 sps:$4 sm:$0xff]  }
 0x5c1   :  { %3186 = vrcp.f32 %v1743_v45  ;;  %v4702_v45 = vld [vmem:[#allocation3 + $0x48] ss:$16 sps:$4 sm:$0xff]  }
 0x5c2   :  { %3188 = vrcp.f32 %v1750_v43  ;;  %v4720_v43 = vld [vmem:[#allocation3 + $0x8c] ss:$16 sps:$4 sm:$0xff]  }
 0x5c3   :  { %5957 = vst [vmem:[#allocation23_spill] sm:$0xff] %v4720_v43 }
 0x5ca   :  { %v3185_v44 = vpop.eup %3184 }
 0x5cb   :  { %v3187_v31 = vpop.eup %3186  ;;  %v1754_v14 = vmul.f32 %v3185_v44, %v3183_v2  ;;  %v4708_v2 = vld [vmem:[#allocation3 + $0x6c] ss:$16 sps:$4 sm:$0xff]   ;;  %v4711_v44 = vld [vmem:[#allocation3 + $0x60] ss:$16 sps:$4 sm:$0xff]  }
 0x5cc   :  { %v1753_v21 = vmul.f32 %v3187_v31, %v4552_v32  ;;  %v3189_v34 = vpop.eup %3188  ;;  %v4679_v32 = vld [vmem:[#allocation3 + $0x24] ss:$16 sps:$4 sm:$0xff]   ;;  %v4714_v31 = vld [vmem:[#allocation3 + $0x68] ss:$16 sps:$4 sm:$0xff]  }
 0x5ce   :  { %v4670_v40 = vadd.f32 %v1754_v14, %v1753_v21  ;;  %v4717_v14 = vld [vmem:[#allocation3 + $0x84] ss:$16 sps:$4 sm:$0xff]   ;;  %v4723_v21 = vld [vmem:[#allocation3 + $0x80] ss:$16 sps:$4 sm:$0xff]  }
 0x5cf   :  { %5956 = vst [vmem:[#allocation22_spill] sm:$0xff] %v4717_v14  ;;  %5958 = vst [vmem:[#allocation24_spill] sm:$0xff] %v4723_v21 }
 0x5d0   :  { %3190 = vtanh.f32 %v4670_v40 }
 0x5da   :  { %v3191_v47 = vpop.eup %3190 }
 0x5db   :  { %v1757_v10 = vmul.f32 %v3191_v47, %v3189_v34  ;;  %v4726_v34 = vld [vmem:[#allocation3 + $0x88] ss:$16 sps:$4 sm:$0xff]   ;;  %v4729_v47 = vld [vmem:[#allocation3 + $0xa4] ss:$16 sps:$4 sm:$0xff]  }
 0x5dc   :  { %5959 = vst [vmem:[#allocation25_spill] sm:$0xff] %v4726_v34  ;;  %5960 = vst [vmem:[#allocation26_spill] sm:$0xff] %v4729_v47 }
 0x5dd   :  { %v1758_v23 = vpack.c.bf16 %v1757_v10, %v1757_v10  ;;  %v4732_v10 = vld [vmem:[#allocation3 + $0xac] ss:$16 sps:$4 sm:$0xff]  }
 0x5df   :  { %1793 = vmatmul.mubr.bf16.vlgmr.msra.gmra.mrb[36].mxu0 %v1758_v23  ;;  %1834 = vmatmul.mubr.bf16.vlgmr.msra.gmra.mrb[36].mxu1 %v1758_v23 }
 0x5e0   :  { %1882 = vmatpush1.bf16.msra.mxu0 %v4673_v22  ;;  %1923 = vmatpush1.bf16.msra.mxu1 %v4676_v4 }
 0x5e1   :  { %1883 = vmatprep.subr.bf16.mxu0 %v4679_v32  ;;  %1924 = vmatprep.subr.bf16.mxu1 %v4682_v35 }
 0x5e2   :  { %1913 = vmatprep.mubr.bf16.mxu0 %v5704_v0  ;;  %1954 = vmatprep.mubr.bf16.mxu1 %v5704_v0 }
 0x5e4   :  { %1884 = vmatpush1.bf16.msra.mxu0 %v4687_v33  ;;  %1925 = vmatpush1.bf16.msra.mxu1 %v4690_v5 }
 0x5e5   :  { %1885 = vmatprep.subr.bf16.mxu0 %v4693_v41  ;;  %1926 = vmatprep.subr.bf16.mxu1 %v4696_v42 }
 0x5e8   :  { %1886 = vmatpush1.bf16.msra.mxu0 %v4699_v6  ;;  %1927 = vmatpush1.bf16.msra.mxu1 %v4702_v45 }
 0x5e9   :  { %1887 = vmatprep.subr.bf16.mxu0 %v4705_v38  ;;  %1928 = vmatprep.subr.bf16.mxu1 %v4708_v2 }
 0x5ec   :  { %1888 = vmatpush1.bf16.msra.mxu0 %v4711_v44  ;;  %1929 = vmatpush1.bf16.msra.mxu1 %v4714_v31 }
 0x5ed   :  { %1889 = vmatprep.subr.bf16.mxu0 %v4717_v14  ;;  %1930 = vmatprep.subr.bf16.mxu1 %v4720_v43  ;;  %v4735_v14 = vld [vmem:[#allocation3 + $0xa0] ss:$16 sps:$4 sm:$0xff]   ;;  %v4738_v43 = vld [vmem:[#allocation3 + $0xa8] ss:$16 sps:$4 sm:$0xff]  }
 0x5f0   :  { %1890 = vmatpush1.bf16.msra.mxu0 %v4723_v21  ;;  %1931 = vmatpush1.bf16.msra.mxu1 %v4726_v34  ;;  %v4741_v21 = vld [vmem:[#allocation3 + $0xc4] ss:$16 sps:$4 sm:$0xff]   ;;  %v4744_v34 = vld [vmem:[#allocation3 + $0xcc] ss:$16 sps:$4 sm:$0xff]  }
 0x5f1   :  { %1891 = vmatprep.subr.bf16.mxu0 %v4729_v47  ;;  %1932 = vmatprep.subr.bf16.mxu1 %v4732_v10  ;;  %v4747_v47 = vld [vmem:[#allocation3 + $0xc0] ss:$16 sps:$4 sm:$0xff]  }
 0x5f4   :  { %1892 = vmatpush1.bf16.msra.mxu0 %v4735_v14  ;;  %1933 = vmatpush1.bf16.msra.mxu1 %v4738_v43 }
 0x5f5   :  { %1893 = vmatprep.subr.bf16.mxu0 %v4741_v21  ;;  %1934 = vmatprep.subr.bf16.mxu1 %v4744_v34 }
 0x5f8   :  { %1894 = vmatpush1.bf16.msra.mxu0 %v4747_v47  ;;  %1935 = vmatpush1.bf16.msra.mxu1 %v4326_v13  ;;  %v5961_v13 = vld [vmem:[#allocation43_spill] sm:$0xff] }
 0x5f9   :  { %1895 = vmatprep.subr.bf16.mxu0 %v4329_v15  ;;  %1936 = vmatprep.subr.bf16.mxu1 %v4332_v16  ;;  %v5962_v15 = vld [vmem:[#allocation44_spill] sm:$0xff]  ;;  %v5963_v16 = vld [vmem:[#allocation45_spill] sm:$0xff] }
 0x5fc   :  { %1896 = vmatpush1.bf16.msra.mxu0 %v4335_v17  ;;  %1937 = vmatpush1.bf16.msra.mxu1 %v4338_v18  ;;  %v5964_v17 = vld [vmem:[#allocation46_spill] sm:$0xff]  ;;  %v5965_v18 = vld [vmem:[#allocation47_spill] sm:$0xff] }
 0x5fd   :  { %1993 = vmatprep.subr.bf16.mxu0 %v4341_v19  ;;  %2034 = vmatprep.subr.bf16.mxu1 %v4344_v20  ;;  %v5966_v19 = vld [vmem:[#allocation48_spill] sm:$0xff]  ;;  %v5967_v20 = vld [vmem:[#allocation49_spill] sm:$0xff] }
 0x5ff   :  { %1914 = vmatmul.mubr.bf16.vlgmr.msra.gmra.mrb[40].mxu0 %v1758_v23  ;;  %1955 = vmatmul.mubr.bf16.vlgmr.msra.gmra.mrb[40].mxu1 %v1758_v23  ;;  %v5995_v23 = vld [vmem:[#allocation78_spill] sm:$0xff] }
 0x600   :  { %1994 = vmatpush1.bf16.msra.mxu0 %v5888_v57  ;;  %2035 = vmatpush1.bf16.msra.mxu1 %v5889_v3  ;;  %v5968_v57 = vld [vmem:[#allocation50_spill] sm:$0xff]  ;;  %v5969_v3 = vld [vmem:[#allocation51_spill] sm:$0xff] }
 0x601   :  { %1995 = vmatprep.subr.bf16.mxu0 %v5890_v51  ;;  %2036 = vmatprep.subr.bf16.mxu1 %v5891_v27  ;;  %v5970_v51 = vld [vmem:[#allocation52_spill] sm:$0xff]  ;;  %v5971_v27 = vld [vmem:[#allocation53_spill] sm:$0xff] }
 0x604   :  { %1996 = vmatpush1.bf16.msra.mxu0 %v5892_v49  ;;  %2037 = vmatpush1.bf16.msra.mxu1 %v5893_v55  ;;  %v5972_v49 = vld [vmem:[#allocation54_spill] sm:$0xff]  ;;  %v5973_v55 = vld [vmem:[#allocation55_spill] sm:$0xff] }
 0x605   :  { %1997 = vmatprep.subr.bf16.mxu0 %v5894_v52  ;;  %2038 = vmatprep.subr.bf16.mxu1 %v5895_v56  ;;  %v5974_v52 = vld [vmem:[#allocation56_spill] sm:$0xff]  ;;  %v5975_v56 = vld [vmem:[#allocation57_spill] sm:$0xff] }
 0x608   :  { %1998 = vmatpush1.bf16.msra.mxu0 %v5896_v48  ;;  %2039 = vmatpush1.bf16.msra.mxu1 %v5897_v54  ;;  %v5976_v48 = vld [vmem:[#allocation58_spill] sm:$0xff]  ;;  %v5977_v54 = vld [vmem:[#allocation59_spill] sm:$0xff] }
 0x609   :  { %1999 = vmatprep.subr.bf16.mxu0 %v5898_v25  ;;  %2040 = vmatprep.subr.bf16.mxu1 %v5899_v26  ;;  %v5978_v25 = vld [vmem:[#allocation60_spill] sm:$0xff]  ;;  %v5979_v26 = vld [vmem:[#allocation61_spill] sm:$0xff] }
 0x60c   :  { %2000 = vmatpush1.bf16.msra.mxu0 %v5900_v36  ;;  %2041 = vmatpush1.bf16.msra.mxu1 %v5901_v50  ;;  %v5980_v36 = vld [vmem:[#allocation62_spill] sm:$0xff]  ;;  %v5981_v50 = vld [vmem:[#allocation63_spill] sm:$0xff] }
 0x60d   :  { %2001 = vmatprep.subr.bf16.mxu0 %v5902_v62  ;;  %2042 = vmatprep.subr.bf16.mxu1 %v5903_v58  ;;  %v5982_v62 = vld [vmem:[#allocation64_spill] sm:$0xff]  ;;  %v5983_v58 = vld [vmem:[#allocation71_spill] sm:$0xff] }
 0x610   :  { %2002 = vmatpush1.bf16.msra.mxu0 %v5904_v61  ;;  %2043 = vmatpush1.bf16.msra.mxu1 %v5905_v1  ;;  %v5984_v61 = vld [vmem:[#allocation72_spill] sm:$0xff]  ;;  %v5985_v1 = vld [vmem:[#allocation15_spill] sm:$0xff] }
 0x611   :  { %2003 = vmatprep.subr.bf16.mxu0 %v5906_v63  ;;  %2044 = vmatprep.subr.bf16.mxu1 %v5907_v29  ;;  %v5986_v63 = vld [vmem:[#allocation16_spill] sm:$0xff]  ;;  %v5987_v29 = vld [vmem:[#allocation17_spill] sm:$0xff] }
 0x614   :  { %2004 = vmatpush1.bf16.msra.mxu0 %v5908_v46  ;;  %2045 = vmatpush1.bf16.msra.mxu1 %v5909_v59  ;;  %v5988_v46 = vld [vmem:[#allocation18_spill] sm:$0xff]  ;;  %v5989_v59 = vld [vmem:[#allocation19_spill] sm:$0xff] }
 0x615   :  { %2005 = vmatprep.subr.bf16.mxu0 %v5910_v7  ;;  %2046 = vmatprep.subr.bf16.mxu1 %v5911_v8  ;;  %v5990_v7 = vld [vmem:[#allocation73_spill] sm:$0xff]  ;;  %v5991_v8 = vld [vmem:[#allocation74_spill] sm:$0xff] }
 0x618   :  { %2006 = vmatpush1.bf16.msra.mxu0 %v5912_v9  ;;  %2047 = vmatpush1.bf16.msra.mxu1 %v5913_v12  ;;  %v5992_v9 = vld [vmem:[#allocation75_spill] sm:$0xff]  ;;  %v5993_v12 = vld [vmem:[#allocation76_spill] sm:$0xff] }
 0x619   :  { %2007 = vmatprep.subr.bf16.mxu0 %v5914_v24  ;;  %2048 = vmatprep.subr.bf16.mxu1 %v5961_v13  ;;  %v5994_v24 = vld [vmem:[#allocation77_spill] sm:$0xff] }
 0x61a   :  { %v4819_v13 = vld [vmem:[#allocation3 + $0x4] ss:$16 sps:$4 sm:$0xff]  }
 0x61c   :  { %2008 = vmatpush1.bf16.msra.mxu0 %v5962_v15  ;;  %2049 = vmatpush1.bf16.msra.mxu1 %v5963_v16  ;;  %v4822_v15 = vld [vmem:[#allocation3 + $0xc] ss:$16 sps:$4 sm:$0xff]  }
 0x61d   :  { %2009 = vmatprep.subr.bf16.mxu0 %v5964_v17  ;;  %2050 = vmatprep.subr.bf16.mxu1 %v5965_v18  ;;  %v5996_v18 = vld [vmem:[#allocation11_spill] sm:$0xff] }
 0x620   :  { %2010 = vmatpush1.bf16.msra.mxu0 %v5966_v19  ;;  %2051 = vmatpush1.bf16.msra.mxu1 %v5967_v20 }
 0x621   :  { %2011 = vmatprep.subr.bf16.mxu0 %v5968_v57  ;;  %2052 = vmatprep.subr.bf16.mxu1 %v5969_v3  ;;  %v5997_v3 = vld [vmem:[#allocation12_spill] sm:$0xff] }
 0x624   :  { %2012 = vmatpush1.bf16.msra.mxu0 %v5970_v51  ;;  %2053 = vmatpush1.bf16.msra.mxu1 %v5971_v27 }
 0x625   :  { %2013 = vmatprep.subr.bf16.mxu0 %v5972_v49  ;;  %2054 = vmatprep.subr.bf16.mxu1 %v5973_v55 }
 0x628   :  { %2014 = vmatpush1.bf16.msra.mxu0 %v5974_v52  ;;  %2055 = vmatpush1.bf16.msra.mxu1 %v5975_v56 }
 0x629   :  { %2015 = vmatprep.subr.bf16.mxu0 %v5976_v48  ;;  %2056 = vmatprep.subr.bf16.mxu1 %v5977_v54  ;;  %v5998_v54 = vld [vmem:[#allocation13_spill] sm:$0xff] }
 0x62c   :  { %2016 = vmatpush1.bf16.msra.mxu0 %v5978_v25  ;;  %2057 = vmatpush1.bf16.msra.mxu1 %v5979_v26 }
 0x62d   :  { %2017 = vmatprep.subr.bf16.mxu0 %v5980_v36  ;;  %2058 = vmatprep.subr.bf16.mxu1 %v5981_v50  ;;  %v5999_v36 = vld [vmem:[#allocation14_spill] sm:$0xff] }
 0x630   :  { %2018 = vmatpush1.bf16.msra.mxu0 %v5982_v62  ;;  %2059 = vmatpush1.bf16.msra.mxu1 %v5983_v58 }
 0x631   :  { %2019 = vmatprep.subr.bf16.mxu0 %v5984_v61  ;;  %2060 = vmatprep.subr.bf16.mxu1 %v5985_v1 }
 0x634   :  { %2020 = vmatpush1.bf16.msra.mxu0 %v5986_v63  ;;  %2061 = vmatpush1.bf16.msra.mxu1 %v5987_v29  ;;  %v1871_v29 = vpop.permute.xlu1 %1870 }
 0x635   :  { %2021 = vmatprep.subr.bf16.mxu0 %v5988_v46  ;;  %2062 = vmatprep.subr.bf16.mxu1 %v5989_v59  ;;  %v6000_v59 = vld [vmem:[#allocation67_spill] sm:$0xff] }
 0x638   :  { %2022 = vmatpush1.bf16.msra.mxu0 %v5990_v7  ;;  %2063 = vmatpush1.bf16.msra.mxu1 %v5991_v8  ;;  %v1873_v7 = vmul.f32 %v1871_v29, %v6000_v59 }
 0x639   :  { %2023 = vmatprep.subr.bf16.mxu0 %v5992_v9  ;;  %2064 = vmatprep.subr.bf16.mxu1 %v5993_v12  ;;  %v6001_v9 = vld [vmem:[#allocation68_spill] sm:$0xff] }
 0x63a   :  { %v1874_v12 = vmul.f32 %v1871_v29, %v6001_v9 }
 0x63c   :  { %2024 = vmatpush1.bf16.msra.mxu0 %v5994_v24  ;;  %2065 = vmatpush1.bf16.msra.mxu1 %v5995_v23 }
 0x63d   :  { %2114 = vmatprep.subr.bf16.mxu0 %v4819_v13  ;;  %2155 = vmatprep.subr.bf16.mxu1 %v4822_v15 }
 0x6b2   :  { %v1794_v16 = vpop.f32.mrb[36].mxu0  ;;  %v1835_v17 = vpop.f32.mrb[36].mxu1 }
 0x6b3   :  { %v1795_v19 = vadd.f32 %v1794_v16, %v5996_v18  ;;  %v1796_v20 = vpop.f32.mrb[37].mxu0  ;;  %v1837_v57 = vpop.f32.mrb[37].mxu1  ;;  %v1836_v50 = vadd.f32 %v1835_v17, %v5999_v36 }
 0x6b4   :  { %v1797_v51 = vadd.f32 %v1796_v20, %v5997_v3  ;;  %v1798_v27 = vpop.f32.mrb[38].mxu0  ;;  %v1839_v49 = vpop.f32.mrb[38].mxu1  ;;  %v1838_v25 = vadd.f32 %v1837_v57, %v5998_v54 }
 0x6b5   :  { %v2793_v55 = vmul.f32 -1.442695, %v1795_v19  ;;  %v1799_v52 = vpop.f32.mrb[39].mxu0  ;;  %v1840_v56 = vpop.f32.mrb[39].mxu1  ;;  %v1877_v19 = vadd.f32 %v1873_v7, %v5770_v60 }
 0x6b6   :  { %v2794_v48 = vmul.f32 -1.442695, %v1797_v51  ;;  %v2795_v26 = vmul.f32 -1.442695, %v1838_v25  ;;  %v1878_v51 = vadd.f32 %v1874_v12, %v5819_v53 }
 0x6b7   :  { %3192 = vpow2.f32 %v2793_v55 }
 0x6b8   :  { %3194 = vpow2.f32 %v2794_v48  ;;  %v1876_v48 = vmul.f32 %v1871_v29, %v5820_v37 }
 0x6b9   :  { %3196 = vpow2.f32 %v2795_v26 }
 0x6ba   :  { %3198 = vtanh.f32 %v1836_v50 }
 0x6c1   :  { %v3193_v62 = vpop.eup %3192 }
 0x6c2   :  { %v3195_v58 = vpop.eup %3194  ;;  %v1845_v61 = vadd.f32 1.0, %v3193_v62 }
 0x6c3   :  { %v1851_v1 = vadd.f32 1.0, %v3195_v58  ;;  %v3197_v63 = vpop.eup %3196 }
 0x6c4   :  { %3200 = vrcp.f32 %v1845_v61  ;;  %v3199_v46 = vpop.eup %3198  ;;  %v1858_v16 = vadd.f32 1.0, %v3197_v63  ;;  %v1880_v61 = vadd.f32 %v1876_v48, %v3969_v28 }
 0x6c5   :  { %3202 = vrcp.f32 %v1851_v1  ;;  %v1875_v1 = vmul.f32 %v1871_v29, %v3972_v30 }
 0x6c6   :  { %3204 = vrcp.f32 %v1858_v16 }
 0x6c7   :  { %v1879_v7 = vadd.f32 %v1875_v1, %v3977_v39  ;;  %v6005_v1 = vld [vmem:[#allocation25_spill] sm:$0xff] }
 0x6ce   :  { %v3201_v8 = vpop.eup %3200 }
 0x6cf   :  { %v3203_v24 = vpop.eup %3202  ;;  %v1862_v23 = vmul.f32 %v3201_v8, %v3199_v46 }
 0x6d0   :  { %v1861_v17 = vmul.f32 %v3203_v24, %v4662_v11  ;;  %v3205_v46 = vpop.eup %3204 }
 0x6d2   :  { %v1915_v20 = vpop.f32.mrb[40].mxu0  ;;  %v1956_v57 = vpop.f32.mrb[40].mxu1  ;;  %v4834_v27 = vadd.f32 %v1862_v23, %v1861_v17 }
 0x6d3   :  { %v1963_v49 = vadd.f32 %v1915_v20, %v1877_v19  ;;  %v1917_v55 = vpop.f32.mrb[41].mxu0  ;;  %v1958_v52 = vpop.f32.mrb[41].mxu1  ;;  %v1965_v24 = vadd.f32 %v1956_v57, %v1879_v7  ;;  %v4875_v7 = vld [vmem:[#allocation3 + $0xe4] ss:$16 sps:$4 sm:$0xff]  }
 0x6d4   :  { %v1964_v56 = vadd.f32 %v1917_v55, %v1878_v51  ;;  %v1919_v25 = vpop.f32.mrb[42].mxu0  ;;  %v1960_v26 = vpop.f32.mrb[42].mxu1  ;;  %3206 = vtanh.f32 %v4834_v27  ;;  %v1966_v63 = vadd.f32 %v1958_v52, %v1880_v61  ;;  %v6004_v61 = vld [vmem:[#allocation24_spill] sm:$0xff] }
 0x6d5   :  { %v2797_v11 = vmul.f32 -1.442695, %v1963_v49  ;;  %v1920_v50 = vpop.f32.mrb[43].mxu0  ;;  %v1961_v62 = vpop.f32.mrb[43].mxu1 }
 0x6d6   :  { %v2798_v58 = vmul.f32 -1.442695, %v1964_v56  ;;  %v2799_v12 = vmul.f32 -1.442695, %v1966_v63  ;;  %v6006_v63 = vld [vmem:[#allocation26_spill] sm:$0xff] }
 0x6d7   :  { %3208 = vpow2.f32 %v2797_v11 }
 0x6d8   :  { %3210 = vpow2.f32 %v2798_v58  ;;  %v6003_v58 = vld [vmem:[#allocation23_spill] sm:$0xff] }
 0x6d9   :  { %3212 = vpow2.f32 %v2799_v12  ;;  %v4881_v12 = vld [vmem:[#allocation3 + $0xe0] ss:$16 sps:$4 sm:$0xff]  }
 0x6da   :  { %3214 = vtanh.f32 %v1965_v24  ;;  %v4884_v24 = vld [vmem:[#allocation3 + $0xe8] ss:$16 sps:$4 sm:$0xff]  }
 0x6de   :  { %v3207_v8 = vpop.eup %3206 }
 0x6df   :  { %v1865_v23 = vmul.f32 %v3207_v8, %v3205_v46  ;;  %v4872_v46 = vld [vmem:[#allocation3 + $0xc8] ss:$16 sps:$4 sm:$0xff]   ;;  %v4878_v8 = vld [vmem:[#allocation3 + $0xec] ss:$16 sps:$4 sm:$0xff]  }
 0x6e1   :  { %v3209_v16 = vpop.eup %3208  ;;  %v1992_v17 = vpack.c.bf16 %v1865_v23, %v1865_v23  ;;  %v4887_v23 = vld [vmem:[#allocation5 + $0x4] ss:$16 sps:$4 sm:$0xff]  }
 0x6e2   :  { %v3211_v19 = vpop.eup %3210  ;;  %v1970_v20 = vadd.f32 1.0, %v3209_v16  ;;  %v4890_v16 = vld [vmem:[#allocation5 + $0xc] ss:$16 sps:$4 sm:$0xff]  }
 0x6e3   :  { %v1976_v51 = vadd.f32 1.0, %v3211_v19  ;;  %2025 = vmatprep.mubr.bf16.mxu0 %v1992_v17  ;;  %2066 = vmatprep.mubr.bf16.mxu1 %v1992_v17  ;;  %v3213_v29 = vpop.eup %3212  ;;  %v4893_v17 = vld [vmem:[#allocation5] ss:$16 sps:$4 sm:$0xff]   ;;  %v4896_v19 = vld [vmem:[#allocation5 + $0x8] ss:$16 sps:$4 sm:$0xff]  }
 0x6e4   :  { %3216 = vrcp.f32 %v1970_v20  ;;  %v3215_v49 = vpop.eup %3214  ;;  %v1983_v48 = vadd.f32 1.0, %v3213_v29  ;;  %6007 = vst [vmem:[#allocation27_spill] sm:$0xff] %v4893_v17  ;;  %6008 = vst [vmem:[#allocation28_spill] sm:$0xff] %v4896_v19  ;;  %v4899_v20 = vld [vmem:[#allocation5 + $0x24] ss:$16 sps:$4 sm:$0xff]  }
 0x6e5   :  { %3218 = vrcp.f32 %v1976_v51  ;;  %6009 = vst [vmem:[#allocation29_spill] sm:$0xff] %v4899_v20  ;;  %v4902_v51 = vld [vmem:[#allocation5 + $0x2c] ss:$16 sps:$4 sm:$0xff]   ;;  %v4905_v29 = vld [vmem:[#allocation5 + $0x20] ss:$16 sps:$4 sm:$0xff]  }
 0x6e6   :  { %3220 = vrcp.f32 %v1983_v48  ;;  %6010 = vst [vmem:[#allocation30_spill] sm:$0xff] %v4902_v51  ;;  %6011 = vst [vmem:[#allocation31_spill] sm:$0xff] %v4905_v29  ;;  %v4920_v48 = vld [vmem:[#allocation5 + $0x48] ss:$16 sps:$4 sm:$0xff]  }
 0x6e7   :  { %6016 = vst [vmem:[#allocation69_spill] sm:$0xff] %v4920_v48 }
 0x6ee   :  { %v3217_v55 = vpop.eup %3216 }
 0x6ef   :  { %v3219_v52 = vpop.eup %3218  ;;  %v1987_v56 = vmul.f32 %v3217_v55, %v3215_v49  ;;  %v4908_v49 = vld [vmem:[#allocation5 + $0x28] ss:$16 sps:$4 sm:$0xff]   ;;  %v4911_v55 = vld [vmem:[#allocation5 + $0x44] ss:$16 sps:$4 sm:$0xff]  }
 0x6f0   :  { %v1986_v57 = vmul.f32 %v3219_v52, %v4670_v40  ;;  %v3221_v26 = vpop.eup %3220  ;;  %v6002_v40 = vld [vmem:[#allocation22_spill] sm:$0xff]  ;;  %6012 = vst [vmem:[#allocation9_spill] sm:$0xff] %v4908_v49  ;;  %6013 = vst [vmem:[#allocation10_spill] sm:$0xff] %v4911_v55 }
 0x6f1   :  { %v4914_v52 = vld [vmem:[#allocation5 + $0x4c] ss:$16 sps:$4 sm:$0xff]  }
 0x6f2   :  { %v4842_v25 = vadd.f32 %v1987_v56, %v1986_v57  ;;  %6014 = vst [vmem:[#allocation65_spill] sm:$0xff] %v4914_v52  ;;  %v4917_v56 = vld [vmem:[#allocation5 + $0x40] ss:$16 sps:$4 sm:$0xff]   ;;  %v4923_v57 = vld [vmem:[#allocation5 + $0x64] ss:$16 sps:$4 sm:$0xff]  }
 0x6f3   :  { %6015 = vst [vmem:[#allocation66_spill] sm:$0xff] %v4917_v56  ;;  %6017 = vst [vmem:[#allocation70_spill] sm:$0xff] %v4923_v57 }
 0x6f4   :  { %3222 = vtanh.f32 %v4842_v25 }
 0x6fe   :  { %v3223_v11 = vpop.eup %3222 }
 0x6ff   :  { %v1990_v50 = vmul.f32 %v3223_v11, %v3221_v26  ;;  %v4926_v26 = vld [vmem:[#allocation5 + $0x6c] ss:$16 sps:$4 sm:$0xff]   ;;  %v4929_v11 = vld [vmem:[#allocation5 + $0x60] ss:$16 sps:$4 sm:$0xff]  }
 0x700   :  { %6018 = vst [vmem:[#allocation32_spill] sm:$0xff] %v4926_v26  ;;  %6019 = vst [vmem:[#allocation33_spill] sm:$0xff] %v4929_v11 }
 0x701   :  { %v1991_v62 = vpack.c.bf16 %v1990_v50, %v1990_v50  ;;  %v4932_v50 = vld [vmem:[#allocation5 + $0x68] ss:$16 sps:$4 sm:$0xff]  }
 0x702   :  { %6020 = vst [vmem:[#allocation34_spill] sm:$0xff] %v4932_v50 }
 0x703   :  { %2026 = vmatmul.mubr.bf16.vlgmr.msra.gmra.mrb[44].mxu0 %v1991_v62  ;;  %2067 = vmatmul.mubr.bf16.vlgmr.msra.gmra.mrb[44].mxu1 %v1991_v62 }
 0x704   :  { %2115 = vmatpush1.bf16.msra.mxu0 %v4673_v22  ;;  %2156 = vmatpush1.bf16.msra.mxu1 %v4676_v4 }
 0x705   :  { %2116 = vmatprep.subr.bf16.mxu0 %v4679_v32  ;;  %2157 = vmatprep.subr.bf16.mxu1 %v4682_v35 }
 0x706   :  { %2146 = vmatprep.mubr.bf16.mxu0 %v5704_v0  ;;  %2187 = vmatprep.mubr.bf16.mxu1 %v5704_v0 }
 0x708   :  { %2117 = vmatpush1.bf16.msra.mxu0 %v4687_v33  ;;  %2158 = vmatpush1.bf16.msra.mxu1 %v4690_v5 }
 0x709   :  { %2118 = vmatprep.subr.bf16.mxu0 %v4693_v41  ;;  %2159 = vmatprep.subr.bf16.mxu1 %v4696_v42 }
 0x70c   :  { %2119 = vmatpush1.bf16.msra.mxu0 %v4699_v6  ;;  %2160 = vmatpush1.bf16.msra.mxu1 %v4702_v45 }
 0x70d   :  { %2120 = vmatprep.subr.bf16.mxu0 %v4705_v38  ;;  %2161 = vmatprep.subr.bf16.mxu1 %v4708_v2 }
 0x710   :  { %2121 = vmatpush1.bf16.msra.mxu0 %v4711_v44  ;;  %2162 = vmatpush1.bf16.msra.mxu1 %v4714_v31 }
 0x711   :  { %2122 = vmatprep.subr.bf16.mxu0 %v6002_v40  ;;  %2163 = vmatprep.subr.bf16.mxu1 %v6003_v58 }
 0x714   :  { %2123 = vmatpush1.bf16.msra.mxu0 %v6004_v61  ;;  %2164 = vmatpush1.bf16.msra.mxu1 %v6005_v1 }
 0x715   :  { %2124 = vmatprep.subr.bf16.mxu0 %v6006_v63  ;;  %2165 = vmatprep.subr.bf16.mxu1 %v4732_v10 }
 0x718   :  { %2125 = vmatpush1.bf16.msra.mxu0 %v4735_v14  ;;  %2166 = vmatpush1.bf16.msra.mxu1 %v4738_v43 }
 0x719   :  { %2126 = vmatprep.subr.bf16.mxu0 %v4741_v21  ;;  %2167 = vmatprep.subr.bf16.mxu1 %v4744_v34 }
 0x71c   :  { %2127 = vmatpush1.bf16.msra.mxu0 %v4747_v47  ;;  %2168 = vmatpush1.bf16.msra.mxu1 %v4872_v46 }
 0x71d   :  { %2128 = vmatprep.subr.bf16.mxu0 %v4875_v7  ;;  %2169 = vmatprep.subr.bf16.mxu1 %v4878_v8 }
 0x720   :  { %2129 = vmatpush1.bf16.msra.mxu0 %v4881_v12  ;;  %2170 = vmatpush1.bf16.msra.mxu1 %v4884_v24 }
 0x721   :  { %2226 = vmatprep.subr.bf16.mxu0 %v4887_v23  ;;  %2267 = vmatprep.subr.bf16.mxu1 %v4890_v16 }
 0x723   :  { %2147 = vmatmul.mubr.bf16.vlgmr.msra.gmra.mrb[48].mxu0 %v1991_v62  ;;  %2188 = vmatmul.mubr.bf16.vlgmr.msra.gmra.mrb[48].mxu1 %v1991_v62  ;;  %v4935_v62 = vld [vmem:[#allocation5 + $0x84] ss:$16 sps:$4 sm:$0xff]  }
 0x724   :  { %2227 = vmatpush1.bf16.msra.mxu0 %v4893_v17  ;;  %2268 = vmatpush1.bf16.msra.mxu1 %v4896_v19  ;;  %6021 = vst [vmem:[#allocation35_spill] sm:$0xff] %v4935_v62 }
 0x725   :  { %2228 = vmatprep.subr.bf16.mxu0 %v4899_v20  ;;  %2269 = vmatprep.subr.bf16.mxu1 %v4902_v51 }
 0x728   :  { %2229 = vmatpush1.bf16.msra.mxu0 %v4905_v29  ;;  %2270 = vmatpush1.bf16.msra.mxu1 %v4908_v49 }
 0x729   :  { %2230 = vmatprep.subr.bf16.mxu0 %v4911_v55  ;;  %2271 = vmatprep.subr.bf16.mxu1 %v4914_v52 }
 0x72c   :  { %2231 = vmatpush1.bf16.msra.mxu0 %v4917_v56  ;;  %2272 = vmatpush1.bf16.msra.mxu1 %v4920_v48  ;;  %v4938_v48 = vld [vmem:[#allocation5 + $0x8c] ss:$16 sps:$4 sm:$0xff]  }
 0x72d   :  { %2232 = vmatprep.subr.bf16.mxu0 %v4923_v57  ;;  %2273 = vmatprep.subr.bf16.mxu1 %v4926_v26  ;;  %6022 = vst [vmem:[#allocation36_spill] sm:$0xff] %v4938_v48  ;;  %v4941_v57 = vld [vmem:[#allocation5 + $0x80] ss:$16 sps:$4 sm:$0xff]   ;;  %v4944_v26 = vld [vmem:[#allocation5 + $0x88] ss:$16 sps:$4 sm:$0xff]  }
 0x72e   :  { %6023 = vst [vmem:[#allocation37_spill] sm:$0xff] %v4941_v57  ;;  %6024 = vst [vmem:[#allocation38_spill] sm:$0xff] %v4944_v26 }
 0x730   :  { %2233 = vmatpush1.bf16.msra.mxu0 %v4929_v11  ;;  %2274 = vmatpush1.bf16.msra.mxu1 %v4932_v50  ;;  %v4947_v11 = vld [vmem:[#allocation5 + $0xa4] ss:$16 sps:$4 sm:$0xff]   ;;  %v4950_v50 = vld [vmem:[#allocation5 + $0xac] ss:$16 sps:$4 sm:$0xff]  }
 0x731   :  { %2234 = vmatprep.subr.bf16.mxu0 %v4935_v62  ;;  %2275 = vmatprep.subr.bf16.mxu1 %v4938_v48  ;;  %6025 = vst [vmem:[#allocation39_spill] sm:$0xff] %v4947_v11  ;;  %6026 = vst [vmem:[#allocation40_spill] sm:$0xff] %v4950_v50  ;;  %v4953_v62 = vld [vmem:[#allocation5 + $0xa0] ss:$16 sps:$4 sm:$0xff]   ;;  %v4956_v48 = vld [vmem:[#allocation5 + $0xa8] ss:$16 sps:$4 sm:$0xff]  }
 0x732   :  { %6027 = vst [vmem:[#allocation41_spill] sm:$0xff] %v4953_v62  ;;  %6028 = vst [vmem:[#allocation42_spill] sm:$0xff] %v4956_v48 }
 0x734   :  { %2235 = vmatpush1.bf16.msra.mxu0 %v4941_v57  ;;  %2276 = vmatpush1.bf16.msra.mxu1 %v4944_v26  ;;  %v4959_v57 = vld [vmem:[#allocation5 + $0xc4] ss:$16 sps:$4 sm:$0xff]   ;;  %v4962_v26 = vld [vmem:[#allocation5 + $0xcc] ss:$16 sps:$4 sm:$0xff]  }
 0x735   :  { %2236 = vmatprep.subr.bf16.mxu0 %v4947_v11  ;;  %2277 = vmatprep.subr.bf16.mxu1 %v4950_v50  ;;  %6029 = vst [vmem:[#allocation20_spill] sm:$0xff] %v4959_v57  ;;  %6030 = vst [vmem:[#allocation21_spill] sm:$0xff] %v4962_v26  ;;  %v4965_v11 = vld [vmem:[#allocation5 + $0xc0] ss:$16 sps:$4 sm:$0xff]   ;;  %v4968_v50 = vld [vmem:[#allocation5 + $0xc8] ss:$16 sps:$4 sm:$0xff]  }
 0x736   :  { %6031 = vst [vmem:[#allocation43_spill] sm:$0xff] %v4965_v11  ;;  %6032 = vst [vmem:[#allocation44_spill] sm:$0xff] %v4968_v50 }
 0x738   :  { %2237 = vmatpush1.bf16.msra.mxu0 %v4953_v62  ;;  %2278 = vmatpush1.bf16.msra.mxu1 %v4956_v48  ;;  %v4971_v62 = vld [vmem:[#allocation5 + $0xe4] ss:$16 sps:$4 sm:$0xff]   ;;  %v4974_v48 = vld [vmem:[#allocation5 + $0xec] ss:$16 sps:$4 sm:$0xff]  }
 0x739   :  { %2238 = vmatprep.subr.bf16.mxu0 %v4959_v57  ;;  %2279 = vmatprep.subr.bf16.mxu1 %v4962_v26  ;;  %6033 = vst [vmem:[#allocation45_spill] sm:$0xff] %v4971_v62  ;;  %6034 = vst [vmem:[#allocation46_spill] sm:$0xff] %v4974_v48  ;;  %v4977_v57 = vld [vmem:[#allocation5 + $0xe0] ss:$16 sps:$4 sm:$0xff]   ;;  %v4980_v26 = vld [vmem:[#allocation5 + $0xe8] ss:$16 sps:$4 sm:$0xff]  }
 0x73a   :  { %6035 = vst [vmem:[#allocation47_spill] sm:$0xff] %v4977_v57  ;;  %6036 = vst [vmem:[#allocation48_spill] sm:$0xff] %v4980_v26 }
 0x73c   :  { %2239 = vmatpush1.bf16.msra.mxu0 %v4965_v11  ;;  %2280 = vmatpush1.bf16.msra.mxu1 %v4968_v50  ;;  %v4983_v11 = vld [vmem:[#allocation5 + $0x104] ss:$16 sps:$4 sm:$0xff]   ;;  %v4986_v50 = vld [vmem:[#allocation5 + $0x10c] ss:$16 sps:$4 sm:$0xff]  }
 0x73d   :  { %2240 = vmatprep.subr.bf16.mxu0 %v4971_v62  ;;  %2281 = vmatprep.subr.bf16.mxu1 %v4974_v48  ;;  %6037 = vst [vmem:[#allocation49_spill] sm:$0xff] %v4983_v11  ;;  %6038 = vst [vmem:[#allocation50_spill] sm:$0xff] %v4986_v50  ;;  %v4989_v62 = vld [vmem:[#allocation5 + $0x100] ss:$16 sps:$4 sm:$0xff]   ;;  %v4992_v48 = vld [vmem:[#allocation5 + $0x108] ss:$16 sps:$4 sm:$0xff]  }
 0x73e   :  { %6039 = vst [vmem:[#allocation51_spill] sm:$0xff] %v4989_v62  ;;  %6040 = vst [vmem:[#allocation52_spill] sm:$0xff] %v4992_v48 }
 0x740   :  { %2241 = vmatpush1.bf16.msra.mxu0 %v4977_v57  ;;  %2282 = vmatpush1.bf16.msra.mxu1 %v4980_v26  ;;  %v4995_v57 = vld [vmem:[#allocation5 + $0x124] ss:$16 sps:$4 sm:$0xff]   ;;  %v4998_v26 = vld [vmem:[#allocation5 + $0x12c] ss:$16 sps:$4 sm:$0xff]  }
 0x741   :  { %2242 = vmatprep.subr.bf16.mxu0 %v4983_v11  ;;  %2283 = vmatprep.subr.bf16.mxu1 %v4986_v50  ;;  %6041 = vst [vmem:[#allocation53_spill] sm:$0xff] %v4995_v57  ;;  %6042 = vst [vmem:[#allocation54_spill] sm:$0xff] %v4998_v26  ;;  %v5001_v11 = vld [vmem:[#allocation5 + $0x120] ss:$16 sps:$4 sm:$0xff]   ;;  %v5004_v50 = vld [vmem:[#allocation5 + $0x128] ss:$16 sps:$4 sm:$0xff]  }
 0x742   :  { %6043 = vst [vmem:[#allocation55_spill] sm:$0xff] %v5001_v11  ;;  %6044 = vst [vmem:[#allocation56_spill] sm:$0xff] %v5004_v50 }
 0x744   :  { %2243 = vmatpush1.bf16.msra.mxu0 %v4989_v62  ;;  %2284 = vmatpush1.bf16.msra.mxu1 %v4992_v48  ;;  %v5007_v62 = vld [vmem:[#allocation5 + $0x144] ss:$16 sps:$4 sm:$0xff]   ;;  %v5010_v48 = vld [vmem:[#allocation5 + $0x14c] ss:$16 sps:$4 sm:$0xff]  }
 0x745   :  { %2244 = vmatprep.subr.bf16.mxu0 %v4995_v57  ;;  %2285 = vmatprep.subr.bf16.mxu1 %v4998_v26  ;;  %6045 = vst [vmem:[#allocation57_spill] sm:$0xff] %v5007_v62  ;;  %6046 = vst [vmem:[#allocation58_spill] sm:$0xff] %v5010_v48  ;;  %v5013_v57 = vld [vmem:[#allocation5 + $0x140] ss:$16 sps:$4 sm:$0xff]   ;;  %v5016_v26 = vld [vmem:[#allocation5 + $0x148] ss:$16 sps:$4 sm:$0xff]  }
 0x746   :  { %6047 = vst [vmem:[#allocation59_spill] sm:$0xff] %v5013_v57  ;;  %6048 = vst [vmem:[#allocation60_spill] sm:$0xff] %v5016_v26 }
 0x748   :  { %2245 = vmatpush1.bf16.msra.mxu0 %v5001_v11  ;;  %2286 = vmatpush1.bf16.msra.mxu1 %v5004_v50  ;;  %v5019_v11 = vld [vmem:[#allocation5 + $0x164] ss:$16 sps:$4 sm:$0xff]   ;;  %v5022_v50 = vld [vmem:[#allocation5 + $0x16c] ss:$16 sps:$4 sm:$0xff]  }
 0x749   :  { %2246 = vmatprep.subr.bf16.mxu0 %v5007_v62  ;;  %2287 = vmatprep.subr.bf16.mxu1 %v5010_v48  ;;  %6049 = vst [vmem:[#allocation61_spill] sm:$0xff] %v5019_v11  ;;  %6050 = vst [vmem:[#allocation62_spill] sm:$0xff] %v5022_v50  ;;  %v5025_v62 = vld [vmem:[#allocation5 + $0x160] ss:$16 sps:$4 sm:$0xff]   ;;  %v5028_v48 = vld [vmem:[#allocation5 + $0x168] ss:$16 sps:$4 sm:$0xff]  }
 0x74a   :  { %6051 = vst [vmem:[#allocation63_spill] sm:$0xff] %v5025_v62  ;;  %6052 = vst [vmem:[#allocation64_spill] sm:$0xff] %v5028_v48 }
 0x74c   :  { %2247 = vmatpush1.bf16.msra.mxu0 %v5013_v57  ;;  %2288 = vmatpush1.bf16.msra.mxu1 %v5016_v26  ;;  %v5031_v57 = vld [vmem:[#allocation5 + $0x184] ss:$16 sps:$4 sm:$0xff]   ;;  %v5034_v26 = vld [vmem:[#allocation5 + $0x18c] ss:$16 sps:$4 sm:$0xff]  }
 0x74d   :  { %2248 = vmatprep.subr.bf16.mxu0 %v5019_v11  ;;  %2289 = vmatprep.subr.bf16.mxu1 %v5022_v50  ;;  %6053 = vst [vmem:[#allocation71_spill] sm:$0xff] %v5031_v57  ;;  %6054 = vst [vmem:[#allocation72_spill] sm:$0xff] %v5034_v26  ;;  %v5037_v11 = vld [vmem:[#allocation5 + $0x180] ss:$16 sps:$4 sm:$0xff]   ;;  %v5040_v50 = vld [vmem:[#allocation5 + $0x188] ss:$16 sps:$4 sm:$0xff]  }
 0x74e   :  { %6055 = vst [vmem:[#allocation15_spill] sm:$0xff] %v5037_v11  ;;  %6056 = vst [vmem:[#allocation16_spill] sm:$0xff] %v5040_v50 }
 0x750   :  { %2249 = vmatpush1.bf16.msra.mxu0 %v5025_v62  ;;  %2290 = vmatpush1.bf16.msra.mxu1 %v5028_v48  ;;  %v5043_v62 = vld [vmem:[#allocation5 + $0x1a4] ss:$16 sps:$4 sm:$0xff]   ;;  %v5046_v48 = vld [vmem:[#allocation5 + $0x1ac] ss:$16 sps:$4 sm:$0xff]  }
 0x751   :  { %2250 = vmatprep.subr.bf16.mxu0 %v5031_v57  ;;  %2291 = vmatprep.subr.bf16.mxu1 %v5034_v26  ;;  %6057 = vst [vmem:[#allocation17_spill] sm:$0xff] %v5043_v62  ;;  %6058 = vst [vmem:[#allocation18_spill] sm:$0xff] %v5046_v48  ;;  %v5049_v57 = vld [vmem:[#allocation5 + $0x1a0] ss:$16 sps:$4 sm:$0xff]   ;;  %v5052_v26 = vld [vmem:[#allocation5 + $0x1a8] ss:$16 sps:$4 sm:$0xff]  }
 0x752   :  { %6059 = vst [vmem:[#allocation19_spill] sm:$0xff] %v5049_v57  ;;  %6060 = vst [vmem:[#allocation73_spill] sm:$0xff] %v5052_v26 }
 0x754   :  { %2251 = vmatpush1.bf16.msra.mxu0 %v5037_v11  ;;  %2292 = vmatpush1.bf16.msra.mxu1 %v5040_v50  ;;  %v5055_v11 = vld [vmem:[#allocation5 + $0x1c4] ss:$16 sps:$4 sm:$0xff]   ;;  %v5058_v50 = vld [vmem:[#allocation5 + $0x1cc] ss:$16 sps:$4 sm:$0xff]  }
 0x755   :  { %2252 = vmatprep.subr.bf16.mxu0 %v5043_v62  ;;  %2293 = vmatprep.subr.bf16.mxu1 %v5046_v48  ;;  %6061 = vst [vmem:[#allocation74_spill] sm:$0xff] %v5055_v11  ;;  %6062 = vst [vmem:[#allocation75_spill] sm:$0xff] %v5058_v50  ;;  %v5061_v62 = vld [vmem:[#allocation5 + $0x1c0] ss:$16 sps:$4 sm:$0xff]   ;;  %v5064_v48 = vld [vmem:[#allocation5 + $0x1c8] ss:$16 sps:$4 sm:$0xff]  }
 0x756   :  { %6063 = vst [vmem:[#allocation76_spill] sm:$0xff] %v5061_v62  ;;  %6064 = vst [vmem:[#allocation77_spill] sm:$0xff] %v5064_v48 }
 0x758   :  { %2253 = vmatpush1.bf16.msra.mxu0 %v5049_v57  ;;  %2294 = vmatpush1.bf16.msra.mxu1 %v5052_v26  ;;  %v5067_v57 = vld [vmem:[#allocation5 + $0x1e4] ss:$16 sps:$4 sm:$0xff]   ;;  %v5070_v26 = vld [vmem:[#allocation5 + $0x1ec] ss:$16 sps:$4 sm:$0xff]  }
 0x759   :  { %2254 = vmatprep.subr.bf16.mxu0 %v5055_v11  ;;  %2295 = vmatprep.subr.bf16.mxu1 %v5058_v50  ;;  %6065 = vst [vmem:[#allocation78_spill] sm:$0xff] %v5067_v57  ;;  %6066 = vst [vmem:[#allocation12_spill] sm:$0xff] %v5070_v26  ;;  %v5073_v11 = vld [vmem:[#allocation5 + $0x1e0] ss:$16 sps:$4 sm:$0xff]   ;;  %v5076_v50 = vld [vmem:[#allocation5 + $0x1e8] ss:$16 sps:$4 sm:$0xff]  }
 0x75a   :  { %6067 = vst [vmem:[#allocation13_spill] sm:$0xff] %v5073_v11  ;;  %6068 = vst [vmem:[#allocation22_spill] sm:$0xff] %v5076_v50 }
 0x75c   :  { %2255 = vmatpush1.bf16.msra.mxu0 %v5061_v62  ;;  %2296 = vmatpush1.bf16.msra.mxu1 %v5064_v48 }
 0x75d   :  { %2256 = vmatprep.subr.bf16.mxu0 %v5067_v57  ;;  %2297 = vmatprep.subr.bf16.mxu1 %v5070_v26 }
 0x760   :  { %2257 = vmatpush1.bf16.msra.mxu0 %v5073_v11  ;;  %2298 = vmatpush1.bf16.msra.mxu1 %v5076_v50 }
 0x761   :  { %2347 = vmatprep.subr.bf16.mxu0 %v4819_v13  ;;  %2388 = vmatprep.subr.bf16.mxu1 %v4822_v15 }
 0x7d6   :  { %v2027_v48 = vpop.f32.mrb[44].mxu0  ;;  %v2068_v62 = vpop.f32.mrb[44].mxu1 }
 0x7d7   :  { %v2028_v57 = vadd.f32 %v2027_v48, %v5996_v18  ;;  %v2029_v56 = vpop.f32.mrb[45].mxu0  ;;  %v2070_v52 = vpop.f32.mrb[45].mxu1  ;;  %v2069_v15 = vadd.f32 %v2068_v62, %v5999_v36 }
 0x7d8   :  { %v2030_v26 = vadd.f32 %v2029_v56, %v5997_v3  ;;  %v2031_v55 = vpop.f32.mrb[46].mxu0  ;;  %v2072_v49 = vpop.f32.mrb[46].mxu1  ;;  %v2071_v13 = vadd.f32 %v2070_v52, %v5998_v54 }
 0x7d9   :  { %v2800_v29 = vmul.f32 -1.442695, %v2028_v57  ;;  %v2032_v11 = vpop.f32.mrb[47].mxu0  ;;  %v2073_v51 = vpop.f32.mrb[47].mxu1 }
 0x7da   :  { %v2801_v20 = vmul.f32 -1.442695, %v2030_v26  ;;  %v2802_v50 = vmul.f32 -1.442695, %v2071_v13  ;;  %v2104_v49 = vpop.permute.xlu0 %2103 }
 0x7db   :  { %3224 = vpow2.f32 %v2800_v29  ;;  %v2106_v51 = vmul.f32 %v2104_v49, %v6000_v59  ;;  %v2109_v59 = vmul.f32 %v2104_v49, %v5820_v37 }
 0x7dc   :  { %3226 = vpow2.f32 %v2801_v20  ;;  %v2107_v20 = vmul.f32 %v2104_v49, %v6001_v9 }
 0x7dd   :  { %3228 = vpow2.f32 %v2802_v50 }
 0x7de   :  { %3230 = vtanh.f32 %v2069_v15 }
 0x7e5   :  { %v3225_v19 = vpop.eup %3224 }
 0x7e6   :  { %v3227_v17 = vpop.eup %3226  ;;  %v2078_v48 = vadd.f32 1.0, %v3225_v19  ;;  %v2110_v19 = vadd.f32 %v2106_v51, %v5770_v60 }
 0x7e7   :  { %v2084_v18 = vadd.f32 1.0, %v3227_v17  ;;  %v3229_v55 = vpop.eup %3228  ;;  %v2111_v17 = vadd.f32 %v2107_v20, %v5819_v53  ;;  %v2113_v20 = vadd.f32 %v2109_v59, %v3969_v28 }
 0x7e8   :  { %3232 = vrcp.f32 %v2078_v48  ;;  %v3231_v56 = vpop.eup %3230  ;;  %v2091_v26 = vadd.f32 1.0, %v3229_v55 }
 0x7e9   :  { %3234 = vrcp.f32 %v2084_v18 }
 0x7ea   :  { %3236 = vrcp.f32 %v2091_v26 }
 0x7f2   :  { %v3233_v29 = vpop.eup %3232 }
 0x7f3   :  { %v3235_v52 = vpop.eup %3234  ;;  %v2095_v57 = vmul.f32 %v3233_v29, %v3231_v56 }
 0x7f4   :  { %v2094_v11 = vmul.f32 %v3235_v52, %v4834_v27  ;;  %v2108_v52 = vmul.f32 %v2104_v49, %v3972_v30  ;;  %v3237_v26 = vpop.eup %3236 }
 0x7f6   :  { %v2148_v50 = vpop.f32.mrb[48].mxu0  ;;  %v2189_v62 = vpop.f32.mrb[48].mxu1  ;;  %v5090_v18 = vadd.f32 %v2095_v57, %v2094_v11  ;;  %v2112_v11 = vadd.f32 %v2108_v52, %v3977_v39 }
 0x7f7   :  { %v2196_v13 = vadd.f32 %v2148_v50, %v2110_v19  ;;  %v2150_v15 = vpop.f32.mrb[49].mxu0  ;;  %v2191_v48 = vpop.f32.mrb[49].mxu1 }
 0x7f8   :  { %v2197_v9 = vadd.f32 %v2150_v15, %v2111_v17  ;;  %v2152_v36 = vpop.f32.mrb[50].mxu0  ;;  %v2193_v56 = vpop.f32.mrb[50].mxu1  ;;  %3238 = vtanh.f32 %v5090_v18  ;;  %v2199_v57 = vadd.f32 %v2191_v48, %v2113_v20 }
 0x7f9   :  { %v2804_v27 = vmul.f32 -1.442695, %v2196_v13  ;;  %v2153_v55 = vpop.f32.mrb[51].mxu0  ;;  %v2194_v51 = vpop.f32.mrb[51].mxu1  ;;  %v2198_v36 = vadd.f32 %v2189_v62, %v2112_v11 }
 0x7fa   :  { %v2805_v29 = vmul.f32 -1.442695, %v2197_v9  ;;  %v2806_v50 = vmul.f32 -1.442695, %v2199_v57 }
 0x7fb   :  { %3240 = vpow2.f32 %v2804_v27 }
 0x7fc   :  { %3242 = vpow2.f32 %v2805_v29 }
 0x7fd   :  { %3244 = vpow2.f32 %v2806_v50  ;;  %v6104_v50 = vld [vmem:[#allocation54_spill] sm:$0xff] }
 0x7fe   :  { %3246 = vtanh.f32 %v2198_v36  ;;  %v6105_v36 = vld [vmem:[#allocation55_spill] sm:$0xff] }
 0x802   :  { %v3239_v19 = vpop.eup %3238 }
 0x803   :  { %v2098_v17 = vmul.f32 %v3239_v19, %v3237_v26  ;;  %v6103_v19 = vld [vmem:[#allocation53_spill] sm:$0xff] }
 0x805   :  { %v3241_v15 = vpop.eup %3240  ;;  %v2225_v56 = vpack.c.bf16 %v2098_v17, %v2098_v17  ;;  %v6106_v17 = vld [vmem:[#allocation56_spill] sm:$0xff] }
 0x806   :  { %v3243_v13 = vpop.eup %3242  ;;  %v2203_v55 = vadd.f32 1.0, %v3241_v15  ;;  %v6107_v15 = vld [vmem:[#allocation57_spill] sm:$0xff] }
 0x807   :  { %v2209_v9 = vadd.f32 1.0, %v3243_v13  ;;  %2258 = vmatprep.mubr.bf16.mxu0 %v2225_v56  ;;  %2299 = vmatprep.mubr.bf16.mxu1 %v2225_v56  ;;  %v3245_v59 = vpop.eup %3244  ;;  %v6108_v56 = vld [vmem:[#allocation58_spill] sm:$0xff]  ;;  %v6109_v13 = vld [vmem:[#allocation59_spill] sm:$0xff] }
 0x808   :  { %3248 = vrcp.f32 %v2203_v55  ;;  %v3247_v49 = vpop.eup %3246  ;;  %v2216_v29 = vadd.f32 1.0, %v3245_v59  ;;  %v6110_v55 = vld [vmem:[#allocation60_spill] sm:$0xff]  ;;  %v6112_v59 = vld [vmem:[#allocation62_spill] sm:$0xff] }
 0x809   :  { %3250 = vrcp.f32 %v2209_v9  ;;  %v6111_v9 = vld [vmem:[#allocation61_spill] sm:$0xff] }
 0x80a   :  { %3252 = vrcp.f32 %v2216_v29  ;;  %v6117_v29 = vld [vmem:[#allocation15_spill] sm:$0xff] }
 0x812   :  { %v3249_v48 = vpop.eup %3248 }
 0x813   :  { %v3251_v27 = vpop.eup %3250  ;;  %v2220_v51 = vmul.f32 %v3249_v48, %v3247_v49  ;;  %v6113_v49 = vld [vmem:[#allocation63_spill] sm:$0xff]  ;;  %v6114_v48 = vld [vmem:[#allocation64_spill] sm:$0xff] }
 0x814   :  { %v2219_v62 = vmul.f32 %v3251_v27, %v4842_v25  ;;  %v3253_v52 = vpop.eup %3252  ;;  %v6090_v25 = vld [vmem:[#allocation42_spill] sm:$0xff]  ;;  %v6115_v27 = vld [vmem:[#allocation71_spill] sm:$0xff] }
 0x816   :  { %v5098_v20 = vadd.f32 %v2220_v51, %v2219_v62  ;;  %v6116_v51 = vld [vmem:[#allocation72_spill] sm:$0xff] }
 0x817   :  { %v6118_v62 = vld [vmem:[#allocation16_spill] sm:$0xff] }
 0x818   :  { %3254 = vtanh.f32 %v5098_v20 }
 0x822   :  { %v3255_v57 = vpop.eup %3254 }
 0x823   :  { %v2223_v26 = vmul.f32 %v3255_v57, %v3253_v52  ;;  %v6119_v52 = vld [vmem:[#allocation17_spill] sm:$0xff]  ;;  %v6120_v57 = vld [vmem:[#allocation18_spill] sm:$0xff] }
 0x825   :  { %v2224_v11 = vpack.c.bf16 %v2223_v26, %v2223_v26  ;;  %v6121_v26 = vld [vmem:[#allocation19_spill] sm:$0xff] }
 0x827   :  { %2259 = vmatmul.mubr.bf16.vlgmr.msra.gmra.mrb[52].mxu0 %v2224_v11  ;;  %2300 = vmatmul.mubr.bf16.vlgmr.msra.gmra.mrb[52].mxu1 %v2224_v11 }
 0x828   :  { %2348 = vmatpush1.bf16.msra.mxu0 %v4673_v22  ;;  %2389 = vmatpush1.bf16.msra.mxu1 %v4676_v4  ;;  %v6070_v22 = vld [vmem:[#allocation28_spill] sm:$0xff]  ;;  %v6071_v4 = vld [vmem:[#allocation29_spill] sm:$0xff] }
 0x829   :  { %2349 = vmatprep.subr.bf16.mxu0 %v4679_v32  ;;  %2390 = vmatprep.subr.bf16.mxu1 %v4682_v35  ;;  %v6072_v32 = vld [vmem:[#allocation30_spill] sm:$0xff]  ;;  %v6073_v35 = vld [vmem:[#allocation31_spill] sm:$0xff] }
 0x82a   :  { %2379 = vmatprep.mubr.bf16.mxu0 %v5704_v0  ;;  %2420 = vmatprep.mubr.bf16.mxu1 %v5704_v0  ;;  %v6069_v0 = vld [vmem:[#allocation27_spill] sm:$0xff] }
 0x82c   :  { %2350 = vmatpush1.bf16.msra.mxu0 %v4687_v33  ;;  %2391 = vmatpush1.bf16.msra.mxu1 %v4690_v5  ;;  %v6074_v33 = vld [vmem:[#allocation9_spill] sm:$0xff]  ;;  %v6075_v5 = vld [vmem:[#allocation10_spill] sm:$0xff] }
 0x82d   :  { %2351 = vmatprep.subr.bf16.mxu0 %v4693_v41  ;;  %2392 = vmatprep.subr.bf16.mxu1 %v4696_v42  ;;  %v6076_v41 = vld [vmem:[#allocation65_spill] sm:$0xff]  ;;  %v6077_v42 = vld [vmem:[#allocation66_spill] sm:$0xff] }
 0x830   :  { %2352 = vmatpush1.bf16.msra.mxu0 %v4699_v6  ;;  %2393 = vmatpush1.bf16.msra.mxu1 %v4702_v45  ;;  %v6078_v6 = vld [vmem:[#allocation69_spill] sm:$0xff]  ;;  %v6079_v45 = vld [vmem:[#allocation70_spill] sm:$0xff] }
 0x831   :  { %2353 = vmatprep.subr.bf16.mxu0 %v4705_v38  ;;  %2394 = vmatprep.subr.bf16.mxu1 %v4708_v2  ;;  %v6080_v38 = vld [vmem:[#allocation32_spill] sm:$0xff]  ;;  %v6081_v2 = vld [vmem:[#allocation33_spill] sm:$0xff] }
 0x834   :  { %2354 = vmatpush1.bf16.msra.mxu0 %v4711_v44  ;;  %2395 = vmatpush1.bf16.msra.mxu1 %v4714_v31  ;;  %v6082_v44 = vld [vmem:[#allocation34_spill] sm:$0xff]  ;;  %v6083_v31 = vld [vmem:[#allocation35_spill] sm:$0xff] }
 0x835   :  { %2355 = vmatprep.subr.bf16.mxu0 %v6002_v40  ;;  %2396 = vmatprep.subr.bf16.mxu1 %v6003_v58  ;;  %v6091_v40 = vld [vmem:[#allocation20_spill] sm:$0xff]  ;;  %v6092_v58 = vld [vmem:[#allocation21_spill] sm:$0xff] }
 0x838   :  { %2356 = vmatpush1.bf16.msra.mxu0 %v6004_v61  ;;  %2397 = vmatpush1.bf16.msra.mxu1 %v6005_v1  ;;  %v6093_v61 = vld [vmem:[#allocation43_spill] sm:$0xff]  ;;  %v6094_v1 = vld [vmem:[#allocation44_spill] sm:$0xff] }
 0x839   :  { %2357 = vmatprep.subr.bf16.mxu0 %v6006_v63  ;;  %2398 = vmatprep.subr.bf16.mxu1 %v4732_v10  ;;  %v6089_v10 = vld [vmem:[#allocation41_spill] sm:$0xff] }
 0x83a   :  { %v6095_v63 = vld [vmem:[#allocation45_spill] sm:$0xff] }
 0x83c   :  { %2358 = vmatpush1.bf16.msra.mxu0 %v4735_v14  ;;  %2399 = vmatpush1.bf16.msra.mxu1 %v4738_v43  ;;  %v6084_v14 = vld [vmem:[#allocation36_spill] sm:$0xff]  ;;  %v6085_v43 = vld [vmem:[#allocation37_spill] sm:$0xff] }
 0x83d   :  { %2359 = vmatprep.subr.bf16.mxu0 %v4741_v21  ;;  %2400 = vmatprep.subr.bf16.mxu1 %v4744_v34  ;;  %v6086_v21 = vld [vmem:[#allocation38_spill] sm:$0xff]  ;;  %v6087_v34 = vld [vmem:[#allocation39_spill] sm:$0xff] }
 0x840   :  { %2360 = vmatpush1.bf16.msra.mxu0 %v4747_v47  ;;  %2401 = vmatpush1.bf16.msra.mxu1 %v4872_v46  ;;  %v6088_v47 = vld [vmem:[#allocation40_spill] sm:$0xff]  ;;  %v6096_v46 = vld [vmem:[#allocation46_spill] sm:$0xff] }
 0x841   :  { %2361 = vmatprep.subr.bf16.mxu0 %v4875_v7  ;;  %2402 = vmatprep.subr.bf16.mxu1 %v4878_v8  ;;  %v6097_v7 = vld [vmem:[#allocation47_spill] sm:$0xff]  ;;  %v6098_v8 = vld [vmem:[#allocation48_spill] sm:$0xff] }
 0x844   :  { %2362 = vmatpush1.bf16.msra.mxu0 %v4881_v12  ;;  %2403 = vmatpush1.bf16.msra.mxu1 %v4884_v24  ;;  %v6099_v12 = vld [vmem:[#allocation49_spill] sm:$0xff]  ;;  %v6100_v24 = vld [vmem:[#allocation50_spill] sm:$0xff] }
 0x845   :  { %2459 = vmatprep.subr.bf16.mxu0 %v4887_v23  ;;  %2500 = vmatprep.subr.bf16.mxu1 %v4890_v16  ;;  %v6101_v23 = vld [vmem:[#allocation51_spill] sm:$0xff]  ;;  %v6102_v16 = vld [vmem:[#allocation52_spill] sm:$0xff] }
 0x847   :  { %2380 = vmatmul.mubr.bf16.vlgmr.msra.gmra.mrb[56].mxu0 %v2224_v11  ;;  %2421 = vmatmul.mubr.bf16.vlgmr.msra.gmra.mrb[56].mxu1 %v2224_v11  ;;  %v6122_v11 = vld [vmem:[#allocation73_spill] sm:$0xff] }
 0x848   :  { %2460 = vmatpush1.bf16.msra.mxu0 %v6069_v0  ;;  %2501 = vmatpush1.bf16.msra.mxu1 %v6070_v22  ;;  %v6123_v0 = vld [vmem:[#allocation74_spill] sm:$0xff]  ;;  %v6124_v22 = vld [vmem:[#allocation75_spill] sm:$0xff] }
 0x849   :  { %2461 = vmatprep.subr.bf16.mxu0 %v6071_v4  ;;  %2502 = vmatprep.subr.bf16.mxu1 %v6072_v32  ;;  %v6125_v4 = vld [vmem:[#allocation76_spill] sm:$0xff]  ;;  %v6126_v32 = vld [vmem:[#allocation77_spill] sm:$0xff] }
 0x84c   :  { %2462 = vmatpush1.bf16.msra.mxu0 %v6073_v35  ;;  %2503 = vmatpush1.bf16.msra.mxu1 %v6074_v33  ;;  %v6127_v35 = vld [vmem:[#allocation78_spill] sm:$0xff]  ;;  %v6128_v33 = vld [vmem:[#allocation12_spill] sm:$0xff] }
 0x84d   :  { %2463 = vmatprep.subr.bf16.mxu0 %v6075_v5  ;;  %2504 = vmatprep.subr.bf16.mxu1 %v6076_v41  ;;  %v6129_v5 = vld [vmem:[#allocation13_spill] sm:$0xff]  ;;  %v6130_v41 = vld [vmem:[#allocation22_spill] sm:$0xff] }
 0x850   :  { %2464 = vmatpush1.bf16.msra.mxu0 %v6077_v42  ;;  %2505 = vmatpush1.bf16.msra.mxu1 %v6078_v6  ;;  %v6131_v42 = vmov 0.0|0.0  }
 0x851   :  { %2465 = vmatprep.subr.bf16.mxu0 %v6079_v45  ;;  %2506 = vmatprep.subr.bf16.mxu1 %v6080_v38  ;;  %v6132_v38 = vld [vmem:[#allocation11_spill] sm:$0xff] }
 0x854   :  { %2466 = vmatpush1.bf16.msra.mxu0 %v6081_v2  ;;  %2507 = vmatpush1.bf16.msra.mxu1 %v6082_v44 }
 0x855   :  { %2467 = vmatprep.subr.bf16.mxu0 %v6083_v31  ;;  %2508 = vmatprep.subr.bf16.mxu1 %v6084_v14 }
 0x858   :  { %2468 = vmatpush1.bf16.msra.mxu0 %v6085_v43  ;;  %2509 = vmatpush1.bf16.msra.mxu1 %v6086_v21 }
 0x859   :  { %2469 = vmatprep.subr.bf16.mxu0 %v6087_v34  ;;  %2510 = vmatprep.subr.bf16.mxu1 %v6088_v47 }
 0x85c   :  { %2470 = vmatpush1.bf16.msra.mxu0 %v6089_v10  ;;  %2511 = vmatpush1.bf16.msra.mxu1 %v6090_v25 }
 0x85d   :  { %2471 = vmatprep.subr.bf16.mxu0 %v6091_v40  ;;  %2512 = vmatprep.subr.bf16.mxu1 %v6092_v58 }
 0x860   :  { %2472 = vmatpush1.bf16.msra.mxu0 %v6093_v61  ;;  %2513 = vmatpush1.bf16.msra.mxu1 %v6094_v1  ;;  %v6133_v61 = vld [vmem:[#allocation14_spill] sm:$0xff] }
 0x861   :  { %2473 = vmatprep.subr.bf16.mxu0 %v6095_v63  ;;  %2514 = vmatprep.subr.bf16.mxu1 %v6096_v46 }
 0x864   :  { %2474 = vmatpush1.bf16.msra.mxu0 %v6097_v7  ;;  %2515 = vmatpush1.bf16.msra.mxu1 %v6098_v8 }
 0x865   :  { %2475 = vmatprep.subr.bf16.mxu0 %v6099_v12  ;;  %2516 = vmatprep.subr.bf16.mxu1 %v6100_v24  ;;  %v2337_v12 = vpop.permute.xlu1 %2336 }
 0x868   :  { %2476 = vmatpush1.bf16.msra.mxu0 %v6101_v23  ;;  %2517 = vmatpush1.bf16.msra.mxu1 %v6102_v16  ;;  %v6134_v16 = vld [vmem:[#allocation67_spill] sm:$0xff] }
 0x869   :  { %2477 = vmatprep.subr.bf16.mxu0 %v6103_v19  ;;  %2518 = vmatprep.subr.bf16.mxu1 %v6104_v50  ;;  %v2339_v19 = vmul.f32 %v2337_v12, %v6134_v16 }
 0x86c   :  { %2478 = vmatpush1.bf16.msra.mxu0 %v6105_v36  ;;  %2519 = vmatpush1.bf16.msra.mxu1 %v6106_v17  ;;  %v6135_v36 = vld [vmem:[#allocation68_spill] sm:$0xff] }
 0x86d   :  { %2479 = vmatprep.subr.bf16.mxu0 %v6107_v15  ;;  %2520 = vmatprep.subr.bf16.mxu1 %v6108_v56  ;;  %v2340_v17 = vmul.f32 %v2337_v12, %v6135_v36 }
 0x870   :  { %2480 = vmatpush1.bf16.msra.mxu0 %v6109_v13  ;;  %2521 = vmatpush1.bf16.msra.mxu1 %v6110_v55 }
 0x871   :  { %2481 = vmatprep.subr.bf16.mxu0 %v6111_v9  ;;  %2522 = vmatprep.subr.bf16.mxu1 %v6112_v59  ;;  %v2343_v9 = vadd.f32 %v2339_v19, %v5770_v60  ;;  %v2571_v19 = vld [vmem:[%s5284_s6 + $0x30] sm:$0xff] }
 0x874   :  { %2482 = vmatpush1.bf16.msra.mxu0 %v6113_v49  ;;  %2523 = vmatpush1.bf16.msra.mxu1 %v6114_v48  ;;  %v2344_v48 = vadd.f32 %v2340_v17, %v5819_v53  ;;  %v2573_v17 = vld [vmem:[%s5284_s6 + $0x40] sm:$0xff] }
 0x875   :  { %2483 = vmatprep.subr.bf16.mxu0 %v6115_v27  ;;  %2524 = vmatprep.subr.bf16.mxu1 %v6116_v51 }
 0x878   :  { %2484 = vmatpush1.bf16.msra.mxu0 %v6117_v29  ;;  %2525 = vmatpush1.bf16.msra.mxu1 %v6118_v62 }
 0x879   :  { %2485 = vmatprep.subr.bf16.mxu0 %v6119_v52  ;;  %2526 = vmatprep.subr.bf16.mxu1 %v6120_v57  ;;  %v2342_v52 = vmul.f32 %v2337_v12, %v5820_v37 }
 0x87b   :  { %v2346_v53 = vadd.f32 %v2342_v52, %v3969_v28 }
 0x87c   :  { %2486 = vmatpush1.bf16.msra.mxu0 %v6121_v26  ;;  %2527 = vmatpush1.bf16.msra.mxu1 %v6122_v11 }
 0x87d   :  { %2487 = vmatprep.subr.bf16.mxu0 %v6123_v0  ;;  %2528 = vmatprep.subr.bf16.mxu1 %v6124_v22 }
 0x880   :  { %2488 = vmatpush1.bf16.msra.mxu0 %v6125_v4  ;;  %2529 = vmatpush1.bf16.msra.mxu1 %v6126_v32  ;;  %v2341_v4 = vmul.f32 %v2337_v12, %v3972_v30 }
 0x881   :  { %2489 = vmatprep.subr.bf16.mxu0 %v6127_v35  ;;  %2530 = vmatprep.subr.bf16.mxu1 %v6128_v33 }
 0x882   :  { %v2345_v33 = vadd.f32 %v2341_v4, %v3977_v39 }
 0x884   :  { %2490 = vmatpush1.bf16.msra.mxu0 %v6129_v5  ;;  %2531 = vmatpush1.bf16.msra.mxu1 %v6130_v41 }
 0x885   :  { %2870 = vmatprep.subr.bf16.mxu0 %v6131_v42 }
 0x8fa   :  { %v2260_v6 = vpop.f32.mrb[52].mxu0  ;;  %v2301_v45 = vpop.f32.mrb[52].mxu1 }
 0x8fb   :  { %v2261_v2 = vadd.f32 %v2260_v6, %v6132_v38  ;;  %v2262_v44 = vpop.f32.mrb[53].mxu0  ;;  %v2303_v31 = vpop.f32.mrb[53].mxu1  ;;  %v2302_v1 = vadd.f32 %v2301_v45, %v6133_v61 }
 0x8fc   :  { %v2263_v14 = vadd.f32 %v2262_v44, %v5997_v3  ;;  %v2264_v43 = vpop.f32.mrb[54].mxu0  ;;  %v2305_v21 = vpop.f32.mrb[54].mxu1  ;;  %v2304_v40 = vadd.f32 %v2303_v31, %v5998_v54 }
 0x8fd   :  { %v2807_v34 = vmul.f32 -1.442695, %v2261_v2  ;;  %v2265_v47 = vpop.f32.mrb[55].mxu0  ;;  %v2306_v10 = vpop.f32.mrb[55].mxu1 }
 0x8fe   :  { %v2808_v25 = vmul.f32 -1.442695, %v2263_v14  ;;  %v2809_v58 = vmul.f32 -1.442695, %v2304_v40 }
 0x8ff   :  { %3256 = vpow2.f32 %v2807_v34 }
 0x900   :  { %3258 = vpow2.f32 %v2808_v25 }
 0x901   :  { %3260 = vpow2.f32 %v2809_v58 }
 0x902   :  { %3262 = vtanh.f32 %v2302_v1 }
 0x909   :  { %v3257_v63 = vpop.eup %3256 }
 0x90a   :  { %v3259_v46 = vpop.eup %3258  ;;  %v2311_v7 = vadd.f32 1.0, %v3257_v63  ;;  %v2565_v63 = vld [vmem:[%s5284_s6] sm:$0xff] }
 0x90b   :  { %v2317_v8 = vadd.f32 1.0, %v3259_v46  ;;  %v3261_v24 = vpop.eup %3260  ;;  %v2566_v46 = vld [vmem:[%s5284_s6 + $0x8] sm:$0xff] }
 0x90c   :  { %3264 = vrcp.f32 %v2311_v7  ;;  %v3263_v23 = vpop.eup %3262  ;;  %v2324_v13 = vadd.f32 1.0, %v3261_v24  ;;  %v2871_v7 = vpack.c.bf16 %v2566_v46, %v2565_v63  ;;  %v2569_v24 = vld [vmem:[%s5284_s6 + $0x20] sm:$0xff] }
 0x90d   :  { %3266 = vrcp.f32 %v2317_v8  ;;  %v2568_v8 = vld [vmem:[%s5284_s6 + $0x18] sm:$0xff] }
 0x90e   :  { %3268 = vrcp.f32 %v2324_v13  ;;  %v2575_v13 = vld [vmem:[%s5284_s6 + $0x50] sm:$0xff] }
 0x916   :  { %v3265_v50 = vpop.eup %3264 }
 0x917   :  { %v3267_v15 = vpop.eup %3266  ;;  %v2328_v56 = vmul.f32 %v3265_v50, %v3263_v23  ;;  %v2570_v23 = vld [vmem:[%s5284_s6 + $0x28] sm:$0xff]  ;;  %v2572_v50 = vld [vmem:[%s5284_s6 + $0x38] sm:$0xff] }
 0x918   :  { %v2327_v55 = vmul.f32 %v3267_v15, %v5090_v18  ;;  %v3269_v35 = vpop.eup %3268  ;;  %v2877_v16 = vpack.c.bf16 %v2570_v23, %v2569_v24  ;;  %v2880_v36 = vpack.c.bf16 %v2572_v50, %v2571_v19  ;;  %v2574_v15 = vld [vmem:[%s5284_s6 + $0x48] sm:$0xff] }
 0x91a   :  { %v2381_v59 = vpop.f32.mrb[56].mxu0  ;;  %v2422_v49 = vpop.f32.mrb[56].mxu1  ;;  %v5207_v27 = vadd.f32 %v2328_v56, %v2327_v55  ;;  %v2883_v56 = vpack.c.bf16 %v2574_v15, %v2573_v17  ;;  %v2576_v55 = vld [vmem:[%s5284_s6 + $0x58] sm:$0xff] }
 0x91b   :  { %v2429_v51 = vadd.f32 %v2381_v59, %v2343_v9  ;;  %v2383_v29 = vpop.f32.mrb[57].mxu0  ;;  %v2424_v62 = vpop.f32.mrb[57].mxu1  ;;  %v2431_v41 = vadd.f32 %v2422_v49, %v2345_v33  ;;  %v2577_v9 = vld [vmem:[%s5284_s6 + $0x60] sm:$0xff]  ;;  %v2886_v59 = vpack.c.bf16 %v2576_v55, %v2575_v13  ;;  %v2578_v49 = vld [vmem:[%s5284_s6 + $0x68] sm:$0xff] }
 0x91c   :  { %v2430_v57 = vadd.f32 %v2383_v29, %v2344_v48  ;;  %v2385_v26 = vpop.f32.mrb[58].mxu0  ;;  %v2426_v11 = vpop.f32.mrb[58].mxu1  ;;  %3270 = vtanh.f32 %v5207_v27  ;;  %v2432_v32 = vadd.f32 %v2424_v62, %v2346_v53  ;;  %v3551_v48 = vmov 0.0   ;;  %v2579_v29 = vld [vmem:[%s5284_s6 + $0x70] sm:$0xff]  ;;  %v2580_v62 = vld [vmem:[%s5284_s6 + $0x78] sm:$0xff] }
 0x91d   :  { %v2811_v18 = vmul.f32 -1.442695, %v2429_v51  ;;  %v2386_v0 = vpop.f32.mrb[59].mxu0  ;;  %v2427_v60 = vpop.f32.mrb[59].mxu1  ;;  %v2889_v51 = vpack.c.bf16 %v2578_v49, %v2577_v9  ;;  %v2892_v52 = vpack.c.bf16 %v2580_v62, %v2579_v29 }
 0x91e   :  { %v2812_v22 = vmul.f32 -1.442695, %v2430_v57  ;;  %v2813_v5 = vmul.f32 -1.442695, %v2432_v32 }
 0x91f   :  { %3272 = vpow2.f32 %v2811_v18 }
 0x920   :  { %3274 = vpow2.f32 %v2812_v22 }
 0x921   :  { %3276 = vpow2.f32 %v2813_v5 }
 0x922   :  { %3278 = vtanh.f32 %v2431_v41 }
 0x926   :  { %v3271_v37 = vpop.eup %3270 }
 0x927   :  { %v2331_v6 = vmul.f32 %v3271_v37, %v3269_v35 }
 0x929   :  { %v3273_v45 = vpop.eup %3272  ;;  %v2458_v2 = vpack.c.bf16 %v2331_v6, %v2331_v6 }
 0x92a   :  { %v3275_v44 = vpop.eup %3274  ;;  %v2436_v31 = vadd.f32 1.0, %v3273_v45 }
 0x92b   :  { %v2442_v14 = vadd.f32 1.0, %v3275_v44  ;;  %2491 = vmatprep.mubr.bf16.mxu0 %v2458_v2  ;;  %2532 = vmatprep.mubr.bf16.mxu1 %v2458_v2  ;;  %v3277_v28 = vpop.eup %3276 }
 0x92c   :  { %3280 = vrcp.f32 %v2436_v31  ;;  %v3279_v30 = vpop.eup %3278  ;;  %v2449_v34 = vadd.f32 1.0, %v3277_v28 }
 0x92d   :  { %3282 = vrcp.f32 %v2442_v14 }
 0x92e   :  { %3284 = vrcp.f32 %v2449_v34 }
 0x936   :  { %v3281_v43 = vpop.eup %3280 }
 0x937   :  { %v3283_v21 = vpop.eup %3282  ;;  %v2453_v39 = vmul.f32 %v3281_v43, %v3279_v30 }
 0x938   :  { %v2452_v47 = vmul.f32 %v3283_v21, %v5098_v20  ;;  %v3285_v25 = vpop.eup %3284  ;;  %v2567_v20 = vld [vmem:[%s5284_s6 + $0x10] sm:$0xff] }
 0x939   :  { %v2874_v12 = vpack.c.bf16 %v2568_v8, %v2567_v20 }
 0x93a   :  { %v2454_v10 = vadd.f32 %v2453_v39, %v2452_v47  ;;  %v2817_v39 = vld [vmem:[#allocation2] ss:$0 sm:$0xff] }
 0x93c   :  { %3286 = vtanh.f32 %v2454_v10 }
 0x946   :  { %v3287_v40 = vpop.eup %3286 }
 0x947   :  { %v2456_v58 = vmul.f32 %v3287_v40, %v3285_v25 }
 0x949   :  { %v2457_v1 = vpack.c.bf16 %v2456_v58, %v2456_v58 }
 0x94b   :  { %2492 = vmatmul.mubr.bf16.vlgmr.msra.gmra.mrb[60].mxu0 %v2457_v1  ;;  %2533 = vmatmul.mubr.bf16.vlgmr.msra.gmra.mrb[60].mxu1 %v2457_v1 }
 0x94c   :  { %2872 = vmatpush3.bf16.msra.mxu0 %v2871_v7  ;;  %2867 = vmatprep.mubr.msk.f32.mxu0 %vm3550_vm0, %v3551_v48 }
 0x94d   :  { %2873 = vmatprep.subr.bf16.mxu0 %v6131_v42 }
 0x950   :  { %2875 = vmatpush3.bf16.msra.mxu0 %v2874_v12 }
 0x951   :  { %2876 = vmatprep.subr.bf16.mxu0 %v6131_v42 }
 0x954   :  { %2878 = vmatpush3.bf16.msra.mxu0 %v2877_v16 }
 0x955   :  { %2879 = vmatprep.subr.bf16.mxu0 %v6131_v42 }
 0x958   :  { %2881 = vmatpush3.bf16.msra.mxu0 %v2880_v36 }
 0x959   :  { %2882 = vmatprep.subr.bf16.mxu0 %v6131_v42 }
 0x95c   :  { %2884 = vmatpush3.bf16.msra.mxu0 %v2883_v56 }
 0x95d   :  { %2885 = vmatprep.subr.bf16.mxu0 %v6131_v42 }
 0x960   :  { %2887 = vmatpush3.bf16.msra.mxu0 %v2886_v59 }
 0x961   :  { %2888 = vmatprep.subr.bf16.mxu0 %v6131_v42 }
 0x964   :  { %2890 = vmatpush3.bf16.msra.mxu0 %v2889_v51 }
 0x965   :  { %2891 = vmatprep.subr.bf16.mxu0 %v6131_v42 }
 0x968   :  { %2893 = vmatpush3.bf16.msra.mxu0 %v2892_v52 }
 0xa1e   :  { %v2493_v57 = vpop.f32.mrb[60].mxu0  ;;  %v2534_v26 = vpop.f32.mrb[60].mxu1 }
 0xa1f   :  { %v2494_v11 = vadd.f32 %v2493_v57, %v6132_v38  ;;  %v2495_v18 = vpop.f32.mrb[61].mxu0  ;;  %v2536_v0 = vpop.f32.mrb[61].mxu1  ;;  %v2535_v5 = vadd.f32 %v2534_v26, %v6133_v61 }
 0xa20   :  { %v2496_v60 = vadd.f32 %v2495_v18, %v5997_v3  ;;  %v2497_v22 = vpop.f32.mrb[62].mxu0  ;;  %v2538_v53 = vpop.f32.mrb[62].mxu1  ;;  %v2537_v37 = vadd.f32 %v2536_v0, %v5998_v54 }
 0xa21   :  { %v2814_v4 = vmul.f32 -1.442695, %v2494_v11  ;;  %v2498_v32 = vpop.f32.mrb[63].mxu0  ;;  %v2539_v35 = vpop.f32.mrb[63].mxu1 }
 0xa22   :  { %v2815_v33 = vmul.f32 -1.442695, %v2496_v60  ;;  %v2816_v42 = vmul.f32 -1.442695, %v2537_v37 }
 0xa23   :  { %3288 = vpow2.f32 %v2814_v4 }
 0xa24   :  { %3290 = vpow2.f32 %v2815_v33 }
 0xa25   :  { %3292 = vpow2.f32 %v2816_v42 }
 0xa26   :  { %3294 = vtanh.f32 %v2535_v5 }
 0xa2d   :  { %v3289_v41 = vpop.eup %3288 }
 0xa2e   :  { %v3291_v6 = vpop.eup %3290  ;;  %v2544_v38 = vadd.f32 1.0, %v3289_v41 }
 0xa2f   :  { %v2550_v45 = vadd.f32 1.0, %v3291_v6  ;;  %v3293_v3 = vpop.eup %3292 }
 0xa30   :  { %3296 = vrcp.f32 %v2544_v38  ;;  %v3295_v2 = vpop.eup %3294  ;;  %v2557_v28 = vadd.f32 1.0, %v3293_v3 }
 0xa31   :  { %3298 = vrcp.f32 %v2550_v45 }
 0xa32   :  { %3300 = vrcp.f32 %v2557_v28 }
 0xa3a   :  { %v3297_v44 = vpop.eup %3296 }
 0xa3b   :  { %v3299_v31 = vpop.eup %3298  ;;  %v2561_v14 = vmul.f32 %v3297_v44, %v3295_v2 }
 0xa3c   :  { %v2560_v30 = vmul.f32 %v3299_v31, %v5207_v27  ;;  %v3301_v61 = vpop.eup %3300 }
 0xa3e   :  { %v2562_v54 = vadd.f32 %v2561_v14, %v2560_v30 }
 0xa40   :  { %3302 = vtanh.f32 %v2562_v54 }
 0xa4a   :  { %v3303_v43 = vpop.eup %3302 }
 0xa4b   :  { %v2564_v21 = vmul.f32 %v3303_v43, %v3301_v61 }
 0xa4d   :  { %2868 = vmatmul.mubr.f32.vlgmr.msra.gmra.mrb[64].mxu0 %v2564_v21 }
 0xb20   :  { %v2654_v34 = vpop.f32.mrb[64].mxu0 }
 0xb21   :  { %v2655_v47 = vadd.f32 %v2817_v39, %v2654_v34  ;;  %v2869_v10 = vpop.f32.mrb[65].mxu0 }
 0xb23   :  { %2659 = vst.msk [vmem:[%s5286_s8] sm:$0x3] %vm2658_vm1, %v2655_v47 }
 0xb24   :  { %2664 = vsyncpa [#allocation4], 1 }
 0xb25   :  { %2665 = vsyncpa [#allocation6], 1 }

</bundles_post_ra>
